<compile_context>
chip_gen: v7x
topology: tpu7x:2x2x1
jax: 0.10.0
libtpu: 0.0.40
codegen_flags: <defaults>
</compile_context>

<pallas_src>
import functools

import jax
import jax.numpy as jnp
from jax.experimental import pallas as pl
from jax.experimental.pallas import tpu as pltpu

# ---------------- synthetic configuration ----------------
B = 2                      # batch size
S = 8                      # max sequence length
EMB = 32                   # sentence embedding dim
TYPE_VOCAB = 5
TYPE_EMB = 8
D_IN = EMB + TYPE_EMB      # BiLSTM input dim
H = 32                     # LSTM hidden per direction (hidden_dim // 2)
NUM_REAL_LABELS = 10
L = NUM_REAL_LABELS + 2    # + START + STOP
START_IDX = L - 2
END_IDX = L - 1
B_SUB = 8                  # f32 sublane count: pad batch to a multiple of this


# ---------------- fused Pallas kernel ----------------
def _nncrf_fused_kernel(x_ref, w_ih_ref, b_gate_ref, w_hhf_ref, w_hhb_ref,
                        w_tagf_ref, w_tagb_ref, b_tag_ref,
                        trans_ref, end_row_ref,
                        tags_oh_ref, mask_ref, islast_ref,
                        out_ref,
                        *, bsz, slen, hid, start_idx, end_idx):
    f32 = jnp.float32
    mask = mask_ref[...]          # (S*B, 1)  1.0 for valid tokens (time-major)
    islast = islast_ref[...]      # (S*B, 1)  1.0 at t == seq_len-1 of its sentence
    tags_oh = tags_oh_ref[...]    # (S*B, L)  one-hot gold tags, pre-masked
    trans = trans_ref[...]        # (L, L)    trans[i, j] = score(i -> j)
    end_row = end_row_ref[...]    # (1, L)    trans[:, END] as a row
    w_hhf = w_hhf_ref[...]        # (H, 4H)
    w_hhb = w_hhb_ref[...]        # (H, 4H)

    # ---- fused input-gate projection for BOTH directions: one MXU matmul ----
    # b_gate already contains b_ih + b_hh of both directions.
    gx = jnp.dot(x_ref[...], w_ih_ref[...], preferred_element_type=f32) + b_gate_ref[...]
    # gx: (S*B, 8H); [:, :4H] forward gates, [:, 4H:] backward gates (i,f,g,o)

    def cell(gates, c_prev):
        i_g = jax.nn.sigmoid(gates[:, 0 * hid:1 * hid])
        f_g = jax.nn.sigmoid(gates[:, 1 * hid:2 * hid])
        g_g = jnp.tanh(gates[:, 2 * hid:3 * hid])
        o_g = jax.nn.sigmoid(gates[:, 3 * hid:4 * hid])
        c_new = f_g * c_prev + i_g * g_g
        return o_g * jnp.tanh(c_new), c_new

    hf = jnp.zeros((bsz, hid), f32)
    cf = jnp.zeros((bsz, hid), f32)
    hb = jnp.zeros((bsz, hid), f32)
    cb = jnp.zeros((bsz, hid), f32)
    hf_list = [None] * slen      # vreg-resident per-timestep hiddens (no scratch)
    hb_list = [None] * slen

    # S is small and static -> full unroll (switch to lax.fori_loop for S >~ 16).
    for step in range(slen):
        tf = step               # forward-direction time index
        tb = slen - 1 - step    # backward-direction time index
        # Two small per-direction recurrent dots (no lane concat on the chain).
        rec_f = jnp.dot(hf, w_hhf, preferred_element_type=f32)          # (B, 4H)
        rec_b = jnp.dot(hb, w_hhb, preferred_element_type=f32)          # (B, 4H)
        g_f = gx[tf * bsz:(tf + 1) * bsz, 0:4 * hid] + rec_f
        g_b = gx[tb * bsz:(tb + 1) * bsz, 4 * hid:8 * hid] + rec_b

        hf, cf = cell(g_f, cf)
        hf_list[tf] = hf

        hb_new, cb_new = cell(g_b, cb)
        hb_list[tb] = hb_new
        # Freeze the backward carry on padded steps so each sentence's backward
        # pass starts from a zero state at its own last token (packed-seq semantics).
        v = mask[tb * bsz:(tb + 1) * bsz, :]                            # (B, 1)
        hb = v * hb_new + (1.0 - v) * hb
        cb = v * cb_new + (1.0 - v) * cb

    # ---- hidden2tag projection (emission scores), one stack + two matmuls ----
    hf_all = jnp.concatenate(hf_list, axis=0)                           # (S*B, H)
    hb_all = jnp.concatenate(hb_list, axis=0)                           # (S*B, H)
    scores = (jnp.dot(hf_all, w_tagf_ref[...], preferred_element_type=f32)
              + jnp.dot(hb_all, w_tagb_ref[...], preferred_element_type=f32)
              + b_tag_ref[...])                                         # (S*B, L)
    # Padded positions carry garbage scores; they are never read by the CRF
    # (final_alpha is captured at islast) nor by the emission term (tags_oh is
    # pre-masked), matching the pad_packed-zeroed reference exactly.

    # ---- CRF log-partition: logsumexp-as-matmul forward algorithm ----
    start_row = trans[start_idx:start_idx + 1, :]                       # (1, L)
    exp_trans = jnp.exp(trans)   # f32; -10000 forbidden entries flush to exact 0

    alpha = start_row + scores[0:bsz, :]                                # (B, L)
    final_alpha = jnp.where(islast[0:bsz, :] > 0.5, alpha, 0.0)
    for t in range(1, slen):
        m = jnp.max(alpha, axis=-1, keepdims=True)                      # (B, 1)
        alpha = (jnp.log(jnp.dot(jnp.exp(alpha - m), exp_trans,
                                 preferred_element_type=f32))
                 + m + scores[t * bsz:(t + 1) * bsz, :])
        final_alpha = jnp.where(islast[t * bsz:(t + 1) * bsz, :] > 0.5,
                                alpha, final_alpha)

    # Direct ->STOP fold: logsumexp over the single needed column set.
    z = final_alpha + end_row                                           # (B, L)
    mz = jnp.max(z, axis=-1, keepdims=True)
    lse = jnp.log(jnp.sum(jnp.exp(z - mz), axis=-1, keepdims=True)) + mz  # (B, 1)
    # Gate out dummy (padded-batch) sentences: mask at t=0 is 1 iff seq_len >= 1.
    unlabeled = jnp.sum(mask[0:bsz, :] * lse, axis=0, keepdims=True)    # (1, 1)

    # ---- gold-path (labeled) score, matmul-ized over all timesteps at once ----
    def sum_all(x2d):
        return jnp.sum(jnp.sum(x2d, axis=-1, keepdims=True), axis=0, keepdims=True)

    emit = sum_all(tags_oh * scores)                    # tags_oh already masked
    begin = sum_all(tags_oh[0:bsz, :] * start_row)
    endsc = sum_all(islast * tags_oh * end_row)
    prev_oh = tags_oh[0:(slen - 1) * bsz, :]            # tags at t   (t = 0..S-2)
    next_oh = tags_oh[bsz:slen * bsz, :]                # tags at t+1 (t = 0..S-2)
    pair = jnp.sum(jnp.dot(prev_oh, trans, preferred_element_type=f32) * next_oh,
                   axis=-1, keepdims=True)              # ((S-1)*B, 1); 0 at pads
    mid = jnp.sum(pair, axis=0, keepdims=True)
    labeled = emit + begin + endsc + mid

    out_ref[...] = unlabeled - labeled


# ---------------- NNCRF.forward (thin XLA glue + one pallas_call) ----------------
def nncrf_forward(params, sent_emb, type_ids, seq_lens, batch_context_emb,
                  chars, char_seq_lens, tags):
    # unused with context_emb='none', use_char_rnn=False
    del batch_context_emb, chars, char_seq_lens
    b, s, _ = sent_emb.shape

    # Pad the batch to a multiple of 8 (f32 sublane count) so every in-kernel
    # vector op fills whole sublane groups; dummy sentences have seq_len=0 and
    # are fully neutralised by the masks.
    b_pad = ((b + B_SUB - 1) // B_SUB) * B_SUB
    pad = b_pad - b
    if pad:
        sent_emb = jnp.pad(sent_emb, ((0, pad), (0, 0), (0, 0)))
        type_ids = jnp.pad(type_ids, ((0, pad), (0, 0)))
        seq_lens = jnp.pad(seq_lens, ((0, pad),))
        tags = jnp.pad(tags, ((0, pad), (0, 0)))

    # light glue: embedding lookup, concat, mask/one-hot, time-major flattening
    type_vec = params['type_emb'][type_ids]                       # (Bp, S, TYPE_EMB)
    x = jnp.concatenate([sent_emb, type_vec], axis=-1)            # (Bp, S, D_IN)
    x_tm = jnp.transpose(x, (1, 0, 2)).reshape(s * b_pad, D_IN)   # row = t*Bp + b

    t_idx = jnp.arange(s)
    mask = (t_idx[None, :] < seq_lens[:, None]).astype(jnp.float32)            # (Bp, S)
    islast = (t_idx[None, :] == seq_lens[:, None] - 1).astype(jnp.float32)
    mask_tm = mask.T.reshape(s * b_pad, 1)
    islast_tm = islast.T.reshape(s * b_pad, 1)
    tags_oh_tm = (jnp.transpose(jax.nn.one_hot(tags, L, dtype=jnp.float32),
                                (1, 0, 2)).reshape(s * b_pad, L) * mask_tm)

    kern = functools.partial(_nncrf_fused_kernel, bsz=b_pad, slen=s, hid=H,
                             start_idx=START_IDX, end_idx=END_IDX)
    vmem = pl.BlockSpec(memory_space=pltpu.MemorySpace.VMEM)
    out = pl.pallas_call(
        kern,
        out_shape=jax.ShapeDtypeStruct((1, 1), jnp.float32),
        in_specs=[vmem] * 13,
        out_specs=vmem,
    )(x_tm, params['w_ih'], params['b_gate'], params['w_hh_f'], params['w_hh_b'],
      params['w_tag_f'], params['w_tag_b'], params['b_tag'],
      params['transition'], params['trans_end'],
      tags_oh_tm, mask_tm, islast_tm)
    return out[0, 0]


# ---------------- deterministic parameter init ----------------
def init_raw_params(key):
    ks = jax.random.split(key, 12)
    sc = 0.1
    raw = {
        'type_emb': sc * jax.random.normal(ks[0], (TYPE_VOCAB, TYPE_EMB), jnp.float32),
        'w_ih_f': sc * jax.random.normal(ks[1], (4 * H, D_IN), jnp.float32),
        'w_hh_f': sc * jax.random.normal(ks[2], (4 * H, H), jnp.float32),
        'b_ih_f': sc * jax.random.normal(ks[3], (4 * H,), jnp.float32),
        'b_hh_f': sc * jax.random.normal(ks[4], (4 * H,), jnp.float32),
        'w_ih_b': sc * jax.random.normal(ks[5], (4 * H, D_IN), jnp.float32),
        'w_hh_b': sc * jax.random.normal(ks[6], (4 * H, H), jnp.float32),
        'b_ih_b': sc * jax.random.normal(ks[7], (4 * H,), jnp.float32),
        'b_hh_b': sc * jax.random.normal(ks[8], (4 * H,), jnp.float32),
        'w_tag': sc * jax.random.normal(ks[9], (L, 2 * H), jnp.float32),
        'b_tag': sc * jax.random.normal(ks[10], (L,), jnp.float32),
    }
    trans = jax.random.normal(ks[11], (L, L), jnp.float32)
    trans = trans.at[:, START_IDX].set(-10000.0)   # never transition into START
    trans = trans.at[END_IDX, :].set(-10000.0)     # never transition out of STOP
    raw['transition'] = trans
    return raw


def build_fused_params(raw):
    """Pre-transposed / pre-split / pre-folded weights: no runtime .T or concat."""
    return {
        'type_emb': raw['type_emb'],
        'w_ih': jnp.concatenate([raw['w_ih_f'].T, raw['w_ih_b'].T], axis=1),  # (D_IN, 8H)
        'b_gate': jnp.concatenate([raw['b_ih_f'] + raw['b_hh_f'],
                                   raw['b_ih_b'] + raw['b_hh_b']]).reshape(1, 8 * H),
        'w_hh_f': raw['w_hh_f'].T,                                             # (H, 4H)
        'w_hh_b': raw['w_hh_b'].T,                                             # (H, 4H)
        'w_tag_f': raw['w_tag'][:, :H].T,                                      # (H, L)
        'w_tag_b': raw['w_tag'][:, H:].T,                                      # (H, L)
        'b_tag': raw['b_tag'].reshape(1, L),
        'transition': raw['transition'],
        'trans_end': raw['transition'][:, END_IDX].reshape(1, L),
    }


# ---------------- pure-JAX reference (for a numeric sanity check) ----------------
def nncrf_reference(raw, sent_emb, type_ids, seq_lens, tags):
    b, s, _ = sent_emb.shape
    x = jnp.concatenate([sent_emb, raw['type_emb'][type_ids]], axis=-1)
    t_idx = jnp.arange(s)
    valid = t_idx[None, :] < seq_lens[:, None]

    def run(xs, w_ih, b_ih, w_hh, b_hh):
        def step(carry, xt):
            h, c = carry
            g = xt @ w_ih.T + b_ih + h @ w_hh.T + b_hh
            i, f, gg, o = jnp.split(g, 4, axis=-1)
            c = jax.nn.sigmoid(f) * c + jax.nn.sigmoid(i) * jnp.tanh(gg)
            h = jax.nn.sigmoid(o) * jnp.tanh(c)
            return (h, c), h
        init = (jnp.zeros((b, H), jnp.float32), jnp.zeros((b, H), jnp.float32))
        _, hs = jax.lax.scan(step, init, jnp.swapaxes(xs, 0, 1))
        return jnp.swapaxes(hs, 0, 1)

    h_f = run(x, raw['w_ih_f'], raw['b_ih_f'], raw['w_hh_f'], raw['b_hh_f'])
    rev_idx = jnp.where(valid, seq_lens[:, None] - 1 - t_idx[None, :], t_idx[None, :])
    x_rev = jnp.take_along_axis(x, rev_idx[:, :, None], axis=1)
    h_b = run(x_rev, raw['w_ih_b'], raw['b_ih_b'], raw['w_hh_b'], raw['b_hh_b'])
    h_b = jnp.take_along_axis(h_b, rev_idx[:, :, None], axis=1)
    h = jnp.concatenate([h_f, h_b], axis=-1) * valid[:, :, None]
    scores = h @ raw['w_tag'].T + raw['b_tag']

    trans = raw['transition']
    mask = valid.astype(jnp.float32)
    islast = (t_idx[None, :] == seq_lens[:, None] - 1).astype(jnp.float32)
    tags_oh = jax.nn.one_hot(tags, L, dtype=jnp.float32)

    alpha = trans[START_IDX][None, :] + scores[:, 0]
    final_alpha = islast[:, 0:1] * alpha
    for t in range(1, s):
        m = alpha[:, :, None] + trans[None, :, :] + scores[:, t][:, None, :]
        alpha = jax.scipy.special.logsumexp(m, axis=1)
        final_alpha = final_alpha + islast[:, t:t + 1] * alpha
    unlabeled = jnp.sum(jax.scipy.special.logsumexp(
        final_alpha + trans[:, END_IDX][None, :], axis=1))

    emit = jnp.sum(mask[:, :, None] * tags_oh * scores)
    begin = jnp.sum(tags_oh[:, 0] * trans[START_IDX][None, :])
    endsc = jnp.sum(jnp.sum(islast[:, :, None] * tags_oh, axis=1)
                    * trans[:, END_IDX][None, :])
    pair = jnp.einsum('bti,ij,btj->bt', tags_oh[:, :-1], trans, tags_oh[:, 1:])
    mid = jnp.sum(mask[:, 1:] * pair)
    return unlabeled - (emit + begin + endsc + mid)


if __name__ == "__main__":
    key = jax.random.PRNGKey(0)
    kp, k1, k2, k3 = jax.random.split(key, 4)
    raw = init_raw_params(kp)
    params = build_fused_params(raw)

    sent_emb = jax.random.normal(k1, (B, S, EMB), jnp.float32)
    type_ids = jax.random.randint(k2, (B, S), 0, TYPE_VOCAB)
    seq_lens = jnp.array([S, 5], dtype=jnp.int32)
    tags = jax.random.randint(k3, (B, S), 0, NUM_REAL_LABELS)
    batch_context_emb = jnp.zeros((B, S, 4), jnp.float32)    # unused (context_emb='none')
    chars = jnp.zeros((B, S, 4), jnp.int32)                  # unused (use_char_rnn=False)
    char_seq_lens = jnp.ones((B, S), jnp.int32)              # unused

    loss = jax.jit(nncrf_forward)(params, sent_emb, type_ids, seq_lens,
                                  batch_context_emb, chars, char_seq_lens, tags)
    loss = jax.block_until_ready(loss)

    ref = nncrf_reference(raw, sent_emb, type_ids, seq_lens, tags)
    assert loss.shape == () and bool(jnp.isfinite(loss))
    assert abs(float(loss) - float(ref)) < 1e-2 * max(1.0, abs(float(ref))), (loss, ref)
    print("KERNEL_OK")
</pallas_src>

<mosaic_0001>
module attributes {stable_mosaic.version = 11 : i64} {
  func.func @_nncrf_fused_kernel(%arg0: memref<64x40xf32, #tpu.memory_space<vmem>>, %arg1: memref<40x256xf32, #tpu.memory_space<vmem>>, %arg2: memref<1x256xf32, #tpu.memory_space<vmem>>, %arg3: memref<32x128xf32, #tpu.memory_space<vmem>>, %arg4: memref<32x128xf32, #tpu.memory_space<vmem>>, %arg5: memref<32x12xf32, #tpu.memory_space<vmem>>, %arg6: memref<32x12xf32, #tpu.memory_space<vmem>>, %arg7: memref<1x12xf32, #tpu.memory_space<vmem>>, %arg8: memref<12x12xf32, #tpu.memory_space<vmem>>, %arg9: memref<1x12xf32, #tpu.memory_space<vmem>>, %arg10: memref<64x12xf32, #tpu.memory_space<vmem>>, %arg11: memref<64x1xf32, #tpu.memory_space<vmem>>, %arg12: memref<64x1xf32, #tpu.memory_space<vmem>>, %arg13: memref<1x1xf32, #tpu.memory_space<vmem>>) attributes {dimension_semantics = [], scalar_prefetch = 0 : i64, scratch_operands = 0 : i64, tpu.core_type = #tpu.core_type<tc>} {
    %c0 = arith.constant 0 : index
    %c0_0 = arith.constant 0 : index
    %0 = vector.load %arg11[%c0, %c0_0] : memref<64x1xf32, #tpu.memory_space<vmem>>, vector<64x1xf32>
    %c0_1 = arith.constant 0 : index
    %c0_2 = arith.constant 0 : index
    %1 = vector.load %arg12[%c0_1, %c0_2] : memref<64x1xf32, #tpu.memory_space<vmem>>, vector<64x1xf32>
    %c0_3 = arith.constant 0 : index
    %c0_4 = arith.constant 0 : index
    %2 = vector.load %arg10[%c0_3, %c0_4] : memref<64x12xf32, #tpu.memory_space<vmem>>, vector<64x12xf32>
    %c0_5 = arith.constant 0 : index
    %c0_6 = arith.constant 0 : index
    %3 = vector.load %arg8[%c0_5, %c0_6] : memref<12x12xf32, #tpu.memory_space<vmem>>, vector<12x12xf32>
    %c0_7 = arith.constant 0 : index
    %c0_8 = arith.constant 0 : index
    %4 = vector.load %arg9[%c0_7, %c0_8] : memref<1x12xf32, #tpu.memory_space<vmem>>, vector<1x12xf32>
    %c0_9 = arith.constant 0 : index
    %c0_10 = arith.constant 0 : index
    %5 = vector.load %arg3[%c0_9, %c0_10] : memref<32x128xf32, #tpu.memory_space<vmem>>, vector<32x128xf32>
    %c0_11 = arith.constant 0 : index
    %c0_12 = arith.constant 0 : index
    %6 = vector.load %arg4[%c0_11, %c0_12] : memref<32x128xf32, #tpu.memory_space<vmem>>, vector<32x128xf32>
    %c0_13 = arith.constant 0 : index
    %c0_14 = arith.constant 0 : index
    %7 = vector.load %arg0[%c0_13, %c0_14] : memref<64x40xf32, #tpu.memory_space<vmem>>, vector<64x40xf32>
    %c0_15 = arith.constant 0 : index
    %c0_16 = arith.constant 0 : index
    %8 = vector.load %arg1[%c0_15, %c0_16] : memref<40x256xf32, #tpu.memory_space<vmem>>, vector<40x256xf32>
    %cst = arith.constant dense<0.000000e+00> : vector<64x256xf32>
    %9 = tpu.matmul %7, %8, %cst {dimension_numbers = #tpu.dot_dimension_numbers<[1], [0], [0], [1], [0, 0, 1, 1], [], []>} : vector<64x40xf32>, vector<40x256xf32>, vector<64x256xf32> -> vector<64x256xf32>
    %c0_17 = arith.constant 0 : index
    %c0_18 = arith.constant 0 : index
    %10 = vector.load %arg2[%c0_17, %c0_18] : memref<1x256xf32, #tpu.memory_space<vmem>>, vector<1x256xf32>
    %11 = vector.broadcast %10 : vector<1x256xf32> to vector<64x256xf32>
    %12 = arith.addf %9, %11 : vector<64x256xf32>
    %cst_19 = arith.constant 0.000000e+00 : f32
    %13 = vector.broadcast %cst_19 : f32 to vector<8x32xf32>
    %cst_20 = arith.constant 0.000000e+00 : f32
    %14 = vector.broadcast %cst_20 : f32 to vector<8x32xf32>
    %cst_21 = arith.constant 0.000000e+00 : f32
    %15 = vector.broadcast %cst_21 : f32 to vector<8x32xf32>
    %cst_22 = arith.constant 0.000000e+00 : f32
    %16 = vector.broadcast %cst_22 : f32 to vector<8x32xf32>
    %cst_23 = arith.constant dense<0.000000e+00> : vector<8x128xf32>
    %17 = tpu.matmul %13, %5, %cst_23 {dimension_numbers = #tpu.dot_dimension_numbers<[1], [0], [0], [1], [0, 0, 1, 1], [], []>} : vector<8x32xf32>, vector<32x128xf32>, vector<8x128xf32> -> vector<8x128xf32>
    %cst_24 = arith.constant dense<0.000000e+00> : vector<8x128xf32>
    %18 = tpu.matmul %15, %6, %cst_24 {dimension_numbers = #tpu.dot_dimension_numbers<[1], [0], [0], [1], [0, 0, 1, 1], [], []>} : vector<8x32xf32>, vector<32x128xf32>, vector<8x128xf32> -> vector<8x128xf32>
    %19 = vector.extract_strided_slice %12 {offsets = [0, 0], sizes = [8, 128], strides = [1, 1]} : vector<64x256xf32> to vector<8x128xf32>
    %20 = arith.addf %19, %17 : vector<8x128xf32>
    %21 = vector.extract_strided_slice %12 {offsets = [56, 128], sizes = [8, 128], strides = [1, 1]} : vector<64x256xf32> to vector<8x128xf32>
    %22 = arith.addf %21, %18 : vector<8x128xf32>
    %23 = vector.extract_strided_slice %20 {offsets = [0, 0], sizes = [8, 32], strides = [1, 1]} : vector<8x128xf32> to vector<8x32xf32>
    %24 = arith.negf %23 : vector<8x32xf32>
    %25 = math.exp %24 : vector<8x32xf32>
    %cst_25 = arith.constant 1.000000e+00 : f32
    %26 = vector.broadcast %cst_25 : f32 to vector<8x32xf32>
    %27 = arith.addf %26, %25 : vector<8x32xf32>
    %28 = arith.divf %26, %27 : vector<8x32xf32>
    %29 = vector.extract_strided_slice %20 {offsets = [0, 32], sizes = [8, 32], strides = [1, 1]} : vector<8x128xf32> to vector<8x32xf32>
    %30 = arith.negf %29 : vector<8x32xf32>
    %31 = math.exp %30 : vector<8x32xf32>
    %cst_26 = arith.constant 1.000000e+00 : f32
    %32 = vector.broadcast %cst_26 : f32 to vector<8x32xf32>
    %33 = arith.addf %32, %31 : vector<8x32xf32>
    %34 = arith.divf %32, %33 : vector<8x32xf32>
    %35 = vector.extract_strided_slice %20 {offsets = [0, 64], sizes = [8, 32], strides = [1, 1]} : vector<8x128xf32> to vector<8x32xf32>
    %36 = math.tanh %35 : vector<8x32xf32>
    %37 = vector.extract_strided_slice %20 {offsets = [0, 96], sizes = [8, 32], strides = [1, 1]} : vector<8x128xf32> to vector<8x32xf32>
    %38 = arith.negf %37 : vector<8x32xf32>
    %39 = math.exp %38 : vector<8x32xf32>
    %cst_27 = arith.constant 1.000000e+00 : f32
    %40 = vector.broadcast %cst_27 : f32 to vector<8x32xf32>
    %41 = arith.addf %40, %39 : vector<8x32xf32>
    %42 = arith.divf %40, %41 : vector<8x32xf32>
    %43 = arith.mulf %34, %14 : vector<8x32xf32>
    %44 = arith.mulf %28, %36 : vector<8x32xf32>
    %45 = arith.addf %43, %44 : vector<8x32xf32>
    %46 = math.tanh %45 : vector<8x32xf32>
    %47 = arith.mulf %42, %46 : vector<8x32xf32>
    %48 = vector.extract_strided_slice %22 {offsets = [0, 0], sizes = [8, 32], strides = [1, 1]} : vector<8x128xf32> to vector<8x32xf32>
    %49 = arith.negf %48 : vector<8x32xf32>
    %50 = math.exp %49 : vector<8x32xf32>
    %cst_28 = arith.constant 1.000000e+00 : f32
    %51 = vector.broadcast %cst_28 : f32 to vector<8x32xf32>
    %52 = arith.addf %51, %50 : vector<8x32xf32>
    %53 = arith.divf %51, %52 : vector<8x32xf32>
    %54 = vector.extract_strided_slice %22 {offsets = [0, 32], sizes = [8, 32], strides = [1, 1]} : vector<8x128xf32> to vector<8x32xf32>
    %55 = arith.negf %54 : vector<8x32xf32>
    %56 = math.exp %55 : vector<8x32xf32>
    %cst_29 = arith.constant 1.000000e+00 : f32
    %57 = vector.broadcast %cst_29 : f32 to vector<8x32xf32>
    %58 = arith.addf %57, %56 : vector<8x32xf32>
    %59 = arith.divf %57, %58 : vector<8x32xf32>
    %60 = vector.extract_strided_slice %22 {offsets = [0, 64], sizes = [8, 32], strides = [1, 1]} : vector<8x128xf32> to vector<8x32xf32>
    %61 = math.tanh %60 : vector<8x32xf32>
    %62 = vector.extract_strided_slice %22 {offsets = [0, 96], sizes = [8, 32], strides = [1, 1]} : vector<8x128xf32> to vector<8x32xf32>
    %63 = arith.negf %62 : vector<8x32xf32>
    %64 = math.exp %63 : vector<8x32xf32>
    %cst_30 = arith.constant 1.000000e+00 : f32
    %65 = vector.broadcast %cst_30 : f32 to vector<8x32xf32>
    %66 = arith.addf %65, %64 : vector<8x32xf32>
    %67 = arith.divf %65, %66 : vector<8x32xf32>
    %68 = arith.mulf %59, %16 : vector<8x32xf32>
    %69 = arith.mulf %53, %61 : vector<8x32xf32>
    %70 = arith.addf %68, %69 : vector<8x32xf32>
    %71 = math.tanh %70 : vector<8x32xf32>
    %72 = arith.mulf %67, %71 : vector<8x32xf32>
    %73 = vector.extract_strided_slice %0 {offsets = [56, 0], sizes = [8, 1], strides = [1, 1]} : vector<64x1xf32> to vector<8x1xf32>
    %74 = vector.broadcast %73 : vector<8x1xf32> to vector<8x32xf32>
    %75 = arith.mulf %74, %72 : vector<8x32xf32>
    %cst_31 = arith.constant 1.000000e+00 : f32
    %76 = vector.broadcast %cst_31 : f32 to vector<8x1xf32>
    %77 = arith.subf %76, %73 : vector<8x1xf32>
    %78 = vector.broadcast %77 : vector<8x1xf32> to vector<8x32xf32>
    %79 = arith.mulf %78, %15 : vector<8x32xf32>
    %80 = arith.addf %75, %79 : vector<8x32xf32>
    %81 = vector.broadcast %73 : vector<8x1xf32> to vector<8x32xf32>
    %82 = arith.mulf %81, %70 : vector<8x32xf32>
    %cst_32 = arith.constant 1.000000e+00 : f32
    %83 = vector.broadcast %cst_32 : f32 to vector<8x1xf32>
    %84 = arith.subf %83, %73 : vector<8x1xf32>
    %85 = vector.broadcast %84 : vector<8x1xf32> to vector<8x32xf32>
    %86 = arith.mulf %85, %16 : vector<8x32xf32>
    %87 = arith.addf %82, %86 : vector<8x32xf32>
    %cst_33 = arith.constant dense<0.000000e+00> : vector<8x128xf32>
    %88 = tpu.matmul %47, %5, %cst_33 {dimension_numbers = #tpu.dot_dimension_numbers<[1], [0], [0], [1], [0, 0, 1, 1], [], []>} : vector<8x32xf32>, vector<32x128xf32>, vector<8x128xf32> -> vector<8x128xf32>
    %cst_34 = arith.constant dense<0.000000e+00> : vector<8x128xf32>
    %89 = tpu.matmul %80, %6, %cst_34 {dimension_numbers = #tpu.dot_dimension_numbers<[1], [0], [0], [1], [0, 0, 1, 1], [], []>} : vector<8x32xf32>, vector<32x128xf32>, vector<8x128xf32> -> vector<8x128xf32>
    %90 = vector.extract_strided_slice %12 {offsets = [8, 0], sizes = [8, 128], strides = [1, 1]} : vector<64x256xf32> to vector<8x128xf32>
    %91 = arith.addf %90, %88 : vector<8x128xf32>
    %92 = vector.extract_strided_slice %12 {offsets = [48, 128], sizes = [8, 128], strides = [1, 1]} : vector<64x256xf32> to vector<8x128xf32>
    %93 = arith.addf %92, %89 : vector<8x128xf32>
    %94 = vector.extract_strided_slice %91 {offsets = [0, 0], sizes = [8, 32], strides = [1, 1]} : vector<8x128xf32> to vector<8x32xf32>
    %95 = arith.negf %94 : vector<8x32xf32>
    %96 = math.exp %95 : vector<8x32xf32>
    %cst_35 = arith.constant 1.000000e+00 : f32
    %97 = vector.broadcast %cst_35 : f32 to vector<8x32xf32>
    %98 = arith.addf %97, %96 : vector<8x32xf32>
    %99 = arith.divf %97, %98 : vector<8x32xf32>
    %100 = vector.extract_strided_slice %91 {offsets = [0, 32], sizes = [8, 32], strides = [1, 1]} : vector<8x128xf32> to vector<8x32xf32>
    %101 = arith.negf %100 : vector<8x32xf32>
    %102 = math.exp %101 : vector<8x32xf32>
    %cst_36 = arith.constant 1.000000e+00 : f32
    %103 = vector.broadcast %cst_36 : f32 to vector<8x32xf32>
    %104 = arith.addf %103, %102 : vector<8x32xf32>
    %105 = arith.divf %103, %104 : vector<8x32xf32>
    %106 = vector.extract_strided_slice %91 {offsets = [0, 64], sizes = [8, 32], strides = [1, 1]} : vector<8x128xf32> to vector<8x32xf32>
    %107 = math.tanh %106 : vector<8x32xf32>
    %108 = vector.extract_strided_slice %91 {offsets = [0, 96], sizes = [8, 32], strides = [1, 1]} : vector<8x128xf32> to vector<8x32xf32>
    %109 = arith.negf %108 : vector<8x32xf32>
    %110 = math.exp %109 : vector<8x32xf32>
    %cst_37 = arith.constant 1.000000e+00 : f32
    %111 = vector.broadcast %cst_37 : f32 to vector<8x32xf32>
    %112 = arith.addf %111, %110 : vector<8x32xf32>
    %113 = arith.divf %111, %112 : vector<8x32xf32>
    %114 = arith.mulf %105, %45 : vector<8x32xf32>
    %115 = arith.mulf %99, %107 : vector<8x32xf32>
    %116 = arith.addf %114, %115 : vector<8x32xf32>
    %117 = math.tanh %116 : vector<8x32xf32>
    %118 = arith.mulf %113, %117 : vector<8x32xf32>
    %119 = vector.extract_strided_slice %93 {offsets = [0, 0], sizes = [8, 32], strides = [1, 1]} : vector<8x128xf32> to vector<8x32xf32>
    %120 = arith.negf %119 : vector<8x32xf32>
    %121 = math.exp %120 : vector<8x32xf32>
    %cst_38 = arith.constant 1.000000e+00 : f32
    %122 = vector.broadcast %cst_38 : f32 to vector<8x32xf32>
    %123 = arith.addf %122, %121 : vector<8x32xf32>
    %124 = arith.divf %122, %123 : vector<8x32xf32>
    %125 = vector.extract_strided_slice %93 {offsets = [0, 32], sizes = [8, 32], strides = [1, 1]} : vector<8x128xf32> to vector<8x32xf32>
    %126 = arith.negf %125 : vector<8x32xf32>
    %127 = math.exp %126 : vector<8x32xf32>
    %cst_39 = arith.constant 1.000000e+00 : f32
    %128 = vector.broadcast %cst_39 : f32 to vector<8x32xf32>
    %129 = arith.addf %128, %127 : vector<8x32xf32>
    %130 = arith.divf %128, %129 : vector<8x32xf32>
    %131 = vector.extract_strided_slice %93 {offsets = [0, 64], sizes = [8, 32], strides = [1, 1]} : vector<8x128xf32> to vector<8x32xf32>
    %132 = math.tanh %131 : vector<8x32xf32>
    %133 = vector.extract_strided_slice %93 {offsets = [0, 96], sizes = [8, 32], strides = [1, 1]} : vector<8x128xf32> to vector<8x32xf32>
    %134 = arith.negf %133 : vector<8x32xf32>
    %135 = math.exp %134 : vector<8x32xf32>
    %cst_40 = arith.constant 1.000000e+00 : f32
    %136 = vector.broadcast %cst_40 : f32 to vector<8x32xf32>
    %137 = arith.addf %136, %135 : vector<8x32xf32>
    %138 = arith.divf %136, %137 : vector<8x32xf32>
    %139 = arith.mulf %130, %87 : vector<8x32xf32>
    %140 = arith.mulf %124, %132 : vector<8x32xf32>
    %141 = arith.addf %139, %140 : vector<8x32xf32>
    %142 = math.tanh %141 : vector<8x32xf32>
    %143 = arith.mulf %138, %142 : vector<8x32xf32>
    %144 = vector.extract_strided_slice %0 {offsets = [48, 0], sizes = [8, 1], strides = [1, 1]} : vector<64x1xf32> to vector<8x1xf32>
    %145 = vector.broadcast %144 : vector<8x1xf32> to vector<8x32xf32>
    %146 = arith.mulf %145, %143 : vector<8x32xf32>
    %cst_41 = arith.constant 1.000000e+00 : f32
    %147 = vector.broadcast %cst_41 : f32 to vector<8x1xf32>
    %148 = arith.subf %147, %144 : vector<8x1xf32>
    %149 = vector.broadcast %148 : vector<8x1xf32> to vector<8x32xf32>
    %150 = arith.mulf %149, %80 : vector<8x32xf32>
    %151 = arith.addf %146, %150 : vector<8x32xf32>
    %152 = vector.broadcast %144 : vector<8x1xf32> to vector<8x32xf32>
    %153 = arith.mulf %152, %141 : vector<8x32xf32>
    %cst_42 = arith.constant 1.000000e+00 : f32
    %154 = vector.broadcast %cst_42 : f32 to vector<8x1xf32>
    %155 = arith.subf %154, %144 : vector<8x1xf32>
    %156 = vector.broadcast %155 : vector<8x1xf32> to vector<8x32xf32>
    %157 = arith.mulf %156, %87 : vector<8x32xf32>
    %158 = arith.addf %153, %157 : vector<8x32xf32>
    %cst_43 = arith.constant dense<0.000000e+00> : vector<8x128xf32>
    %159 = tpu.matmul %118, %5, %cst_43 {dimension_numbers = #tpu.dot_dimension_numbers<[1], [0], [0], [1], [0, 0, 1, 1], [], []>} : vector<8x32xf32>, vector<32x128xf32>, vector<8x128xf32> -> vector<8x128xf32>
    %cst_44 = arith.constant dense<0.000000e+00> : vector<8x128xf32>
    %160 = tpu.matmul %151, %6, %cst_44 {dimension_numbers = #tpu.dot_dimension_numbers<[1], [0], [0], [1], [0, 0, 1, 1], [], []>} : vector<8x32xf32>, vector<32x128xf32>, vector<8x128xf32> -> vector<8x128xf32>
    %161 = vector.extract_strided_slice %12 {offsets = [16, 0], sizes = [8, 128], strides = [1, 1]} : vector<64x256xf32> to vector<8x128xf32>
    %162 = arith.addf %161, %159 : vector<8x128xf32>
    %163 = vector.extract_strided_slice %12 {offsets = [40, 128], sizes = [8, 128], strides = [1, 1]} : vector<64x256xf32> to vector<8x128xf32>
    %164 = arith.addf %163, %160 : vector<8x128xf32>
    %165 = vector.extract_strided_slice %162 {offsets = [0, 0], sizes = [8, 32], strides = [1, 1]} : vector<8x128xf32> to vector<8x32xf32>
    %166 = arith.negf %165 : vector<8x32xf32>
    %167 = math.exp %166 : vector<8x32xf32>
    %cst_45 = arith.constant 1.000000e+00 : f32
    %168 = vector.broadcast %cst_45 : f32 to vector<8x32xf32>
    %169 = arith.addf %168, %167 : vector<8x32xf32>
    %170 = arith.divf %168, %169 : vector<8x32xf32>
    %171 = vector.extract_strided_slice %162 {offsets = [0, 32], sizes = [8, 32], strides = [1, 1]} : vector<8x128xf32> to vector<8x32xf32>
    %172 = arith.negf %171 : vector<8x32xf32>
    %173 = math.exp %172 : vector<8x32xf32>
    %cst_46 = arith.constant 1.000000e+00 : f32
    %174 = vector.broadcast %cst_46 : f32 to vector<8x32xf32>
    %175 = arith.addf %174, %173 : vector<8x32xf32>
    %176 = arith.divf %174, %175 : vector<8x32xf32>
    %177 = vector.extract_strided_slice %162 {offsets = [0, 64], sizes = [8, 32], strides = [1, 1]} : vector<8x128xf32> to vector<8x32xf32>
    %178 = math.tanh %177 : vector<8x32xf32>
    %179 = vector.extract_strided_slice %162 {offsets = [0, 96], sizes = [8, 32], strides = [1, 1]} : vector<8x128xf32> to vector<8x32xf32>
    %180 = arith.negf %179 : vector<8x32xf32>
    %181 = math.exp %180 : vector<8x32xf32>
    %cst_47 = arith.constant 1.000000e+00 : f32
    %182 = vector.broadcast %cst_47 : f32 to vector<8x32xf32>
    %183 = arith.addf %182, %181 : vector<8x32xf32>
    %184 = arith.divf %182, %183 : vector<8x32xf32>
    %185 = arith.mulf %176, %116 : vector<8x32xf32>
    %186 = arith.mulf %170, %178 : vector<8x32xf32>
    %187 = arith.addf %185, %186 : vector<8x32xf32>
    %188 = math.tanh %187 : vector<8x32xf32>
    %189 = arith.mulf %184, %188 : vector<8x32xf32>
    %190 = vector.extract_strided_slice %164 {offsets = [0, 0], sizes = [8, 32], strides = [1, 1]} : vector<8x128xf32> to vector<8x32xf32>
    %191 = arith.negf %190 : vector<8x32xf32>
    %192 = math.exp %191 : vector<8x32xf32>
    %cst_48 = arith.constant 1.000000e+00 : f32
    %193 = vector.broadcast %cst_48 : f32 to vector<8x32xf32>
    %194 = arith.addf %193, %192 : vector<8x32xf32>
    %195 = arith.divf %193, %194 : vector<8x32xf32>
    %196 = vector.extract_strided_slice %164 {offsets = [0, 32], sizes = [8, 32], strides = [1, 1]} : vector<8x128xf32> to vector<8x32xf32>
    %197 = arith.negf %196 : vector<8x32xf32>
    %198 = math.exp %197 : vector<8x32xf32>
    %cst_49 = arith.constant 1.000000e+00 : f32
    %199 = vector.broadcast %cst_49 : f32 to vector<8x32xf32>
    %200 = arith.addf %199, %198 : vector<8x32xf32>
    %201 = arith.divf %199, %200 : vector<8x32xf32>
    %202 = vector.extract_strided_slice %164 {offsets = [0, 64], sizes = [8, 32], strides = [1, 1]} : vector<8x128xf32> to vector<8x32xf32>
    %203 = math.tanh %202 : vector<8x32xf32>
    %204 = vector.extract_strided_slice %164 {offsets = [0, 96], sizes = [8, 32], strides = [1, 1]} : vector<8x128xf32> to vector<8x32xf32>
    %205 = arith.negf %204 : vector<8x32xf32>
    %206 = math.exp %205 : vector<8x32xf32>
    %cst_50 = arith.constant 1.000000e+00 : f32
    %207 = vector.broadcast %cst_50 : f32 to vector<8x32xf32>
    %208 = arith.addf %207, %206 : vector<8x32xf32>
    %209 = arith.divf %207, %208 : vector<8x32xf32>
    %210 = arith.mulf %201, %158 : vector<8x32xf32>
    %211 = arith.mulf %195, %203 : vector<8x32xf32>
    %212 = arith.addf %210, %211 : vector<8x32xf32>
    %213 = math.tanh %212 : vector<8x32xf32>
    %214 = arith.mulf %209, %213 : vector<8x32xf32>
    %215 = vector.extract_strided_slice %0 {offsets = [40, 0], sizes = [8, 1], strides = [1, 1]} : vector<64x1xf32> to vector<8x1xf32>
    %216 = vector.broadcast %215 : vector<8x1xf32> to vector<8x32xf32>
    %217 = arith.mulf %216, %214 : vector<8x32xf32>
    %cst_51 = arith.constant 1.000000e+00 : f32
    %218 = vector.broadcast %cst_51 : f32 to vector<8x1xf32>
    %219 = arith.subf %218, %215 : vector<8x1xf32>
    %220 = vector.broadcast %219 : vector<8x1xf32> to vector<8x32xf32>
    %221 = arith.mulf %220, %151 : vector<8x32xf32>
    %222 = arith.addf %217, %221 : vector<8x32xf32>
    %223 = vector.broadcast %215 : vector<8x1xf32> to vector<8x32xf32>
    %224 = arith.mulf %223, %212 : vector<8x32xf32>
    %cst_52 = arith.constant 1.000000e+00 : f32
    %225 = vector.broadcast %cst_52 : f32 to vector<8x1xf32>
    %226 = arith.subf %225, %215 : vector<8x1xf32>
    %227 = vector.broadcast %226 : vector<8x1xf32> to vector<8x32xf32>
    %228 = arith.mulf %227, %158 : vector<8x32xf32>
    %229 = arith.addf %224, %228 : vector<8x32xf32>
    %cst_53 = arith.constant dense<0.000000e+00> : vector<8x128xf32>
    %230 = tpu.matmul %189, %5, %cst_53 {dimension_numbers = #tpu.dot_dimension_numbers<[1], [0], [0], [1], [0, 0, 1, 1], [], []>} : vector<8x32xf32>, vector<32x128xf32>, vector<8x128xf32> -> vector<8x128xf32>
    %cst_54 = arith.constant dense<0.000000e+00> : vector<8x128xf32>
    %231 = tpu.matmul %222, %6, %cst_54 {dimension_numbers = #tpu.dot_dimension_numbers<[1], [0], [0], [1], [0, 0, 1, 1], [], []>} : vector<8x32xf32>, vector<32x128xf32>, vector<8x128xf32> -> vector<8x128xf32>
    %232 = vector.extract_strided_slice %12 {offsets = [24, 0], sizes = [8, 128], strides = [1, 1]} : vector<64x256xf32> to vector<8x128xf32>
    %233 = arith.addf %232, %230 : vector<8x128xf32>
    %234 = vector.extract_strided_slice %12 {offsets = [32, 128], sizes = [8, 128], strides = [1, 1]} : vector<64x256xf32> to vector<8x128xf32>
    %235 = arith.addf %234, %231 : vector<8x128xf32>
    %236 = vector.extract_strided_slice %233 {offsets = [0, 0], sizes = [8, 32], strides = [1, 1]} : vector<8x128xf32> to vector<8x32xf32>
    %237 = arith.negf %236 : vector<8x32xf32>
    %238 = math.exp %237 : vector<8x32xf32>
    %cst_55 = arith.constant 1.000000e+00 : f32
    %239 = vector.broadcast %cst_55 : f32 to vector<8x32xf32>
    %240 = arith.addf %239, %238 : vector<8x32xf32>
    %241 = arith.divf %239, %240 : vector<8x32xf32>
    %242 = vector.extract_strided_slice %233 {offsets = [0, 32], sizes = [8, 32], strides = [1, 1]} : vector<8x128xf32> to vector<8x32xf32>
    %243 = arith.negf %242 : vector<8x32xf32>
    %244 = math.exp %243 : vector<8x32xf32>
    %cst_56 = arith.constant 1.000000e+00 : f32
    %245 = vector.broadcast %cst_56 : f32 to vector<8x32xf32>
    %246 = arith.addf %245, %244 : vector<8x32xf32>
    %247 = arith.divf %245, %246 : vector<8x32xf32>
    %248 = vector.extract_strided_slice %233 {offsets = [0, 64], sizes = [8, 32], strides = [1, 1]} : vector<8x128xf32> to vector<8x32xf32>
    %249 = math.tanh %248 : vector<8x32xf32>
    %250 = vector.extract_strided_slice %233 {offsets = [0, 96], sizes = [8, 32], strides = [1, 1]} : vector<8x128xf32> to vector<8x32xf32>
    %251 = arith.negf %250 : vector<8x32xf32>
    %252 = math.exp %251 : vector<8x32xf32>
    %cst_57 = arith.constant 1.000000e+00 : f32
    %253 = vector.broadcast %cst_57 : f32 to vector<8x32xf32>
    %254 = arith.addf %253, %252 : vector<8x32xf32>
    %255 = arith.divf %253, %254 : vector<8x32xf32>
    %256 = arith.mulf %247, %187 : vector<8x32xf32>
    %257 = arith.mulf %241, %249 : vector<8x32xf32>
    %258 = arith.addf %256, %257 : vector<8x32xf32>
    %259 = math.tanh %258 : vector<8x32xf32>
    %260 = arith.mulf %255, %259 : vector<8x32xf32>
    %261 = vector.extract_strided_slice %235 {offsets = [0, 0], sizes = [8, 32], strides = [1, 1]} : vector<8x128xf32> to vector<8x32xf32>
    %262 = arith.negf %261 : vector<8x32xf32>
    %263 = math.exp %262 : vector<8x32xf32>
    %cst_58 = arith.constant 1.000000e+00 : f32
    %264 = vector.broadcast %cst_58 : f32 to vector<8x32xf32>
    %265 = arith.addf %264, %263 : vector<8x32xf32>
    %266 = arith.divf %264, %265 : vector<8x32xf32>
    %267 = vector.extract_strided_slice %235 {offsets = [0, 32], sizes = [8, 32], strides = [1, 1]} : vector<8x128xf32> to vector<8x32xf32>
    %268 = arith.negf %267 : vector<8x32xf32>
    %269 = math.exp %268 : vector<8x32xf32>
    %cst_59 = arith.constant 1.000000e+00 : f32
    %270 = vector.broadcast %cst_59 : f32 to vector<8x32xf32>
    %271 = arith.addf %270, %269 : vector<8x32xf32>
    %272 = arith.divf %270, %271 : vector<8x32xf32>
    %273 = vector.extract_strided_slice %235 {offsets = [0, 64], sizes = [8, 32], strides = [1, 1]} : vector<8x128xf32> to vector<8x32xf32>
    %274 = math.tanh %273 : vector<8x32xf32>
    %275 = vector.extract_strided_slice %235 {offsets = [0, 96], sizes = [8, 32], strides = [1, 1]} : vector<8x128xf32> to vector<8x32xf32>
    %276 = arith.negf %275 : vector<8x32xf32>
    %277 = math.exp %276 : vector<8x32xf32>
    %cst_60 = arith.constant 1.000000e+00 : f32
    %278 = vector.broadcast %cst_60 : f32 to vector<8x32xf32>
    %279 = arith.addf %278, %277 : vector<8x32xf32>
    %280 = arith.divf %278, %279 : vector<8x32xf32>
    %281 = arith.mulf %272, %229 : vector<8x32xf32>
    %282 = arith.mulf %266, %274 : vector<8x32xf32>
    %283 = arith.addf %281, %282 : vector<8x32xf32>
    %284 = math.tanh %283 : vector<8x32xf32>
    %285 = arith.mulf %280, %284 : vector<8x32xf32>
    %286 = vector.extract_strided_slice %0 {offsets = [32, 0], sizes = [8, 1], strides = [1, 1]} : vector<64x1xf32> to vector<8x1xf32>
    %287 = vector.broadcast %286 : vector<8x1xf32> to vector<8x32xf32>
    %288 = arith.mulf %287, %285 : vector<8x32xf32>
    %cst_61 = arith.constant 1.000000e+00 : f32
    %289 = vector.broadcast %cst_61 : f32 to vector<8x1xf32>
    %290 = arith.subf %289, %286 : vector<8x1xf32>
    %291 = vector.broadcast %290 : vector<8x1xf32> to vector<8x32xf32>
    %292 = arith.mulf %291, %222 : vector<8x32xf32>
    %293 = arith.addf %288, %292 : vector<8x32xf32>
    %294 = vector.broadcast %286 : vector<8x1xf32> to vector<8x32xf32>
    %295 = arith.mulf %294, %283 : vector<8x32xf32>
    %cst_62 = arith.constant 1.000000e+00 : f32
    %296 = vector.broadcast %cst_62 : f32 to vector<8x1xf32>
    %297 = arith.subf %296, %286 : vector<8x1xf32>
    %298 = vector.broadcast %297 : vector<8x1xf32> to vector<8x32xf32>
    %299 = arith.mulf %298, %229 : vector<8x32xf32>
    %300 = arith.addf %295, %299 : vector<8x32xf32>
    %cst_63 = arith.constant dense<0.000000e+00> : vector<8x128xf32>
    %301 = tpu.matmul %260, %5, %cst_63 {dimension_numbers = #tpu.dot_dimension_numbers<[1], [0], [0], [1], [0, 0, 1, 1], [], []>} : vector<8x32xf32>, vector<32x128xf32>, vector<8x128xf32> -> vector<8x128xf32>
    %cst_64 = arith.constant dense<0.000000e+00> : vector<8x128xf32>
    %302 = tpu.matmul %293, %6, %cst_64 {dimension_numbers = #tpu.dot_dimension_numbers<[1], [0], [0], [1], [0, 0, 1, 1], [], []>} : vector<8x32xf32>, vector<32x128xf32>, vector<8x128xf32> -> vector<8x128xf32>
    %303 = vector.extract_strided_slice %12 {offsets = [32, 0], sizes = [8, 128], strides = [1, 1]} : vector<64x256xf32> to vector<8x128xf32>
    %304 = arith.addf %303, %301 : vector<8x128xf32>
    %305 = vector.extract_strided_slice %12 {offsets = [24, 128], sizes = [8, 128], strides = [1, 1]} : vector<64x256xf32> to vector<8x128xf32>
    %306 = arith.addf %305, %302 : vector<8x128xf32>
    %307 = vector.extract_strided_slice %304 {offsets = [0, 0], sizes = [8, 32], strides = [1, 1]} : vector<8x128xf32> to vector<8x32xf32>
    %308 = arith.negf %307 : vector<8x32xf32>
    %309 = math.exp %308 : vector<8x32xf32>
    %cst_65 = arith.constant 1.000000e+00 : f32
    %310 = vector.broadcast %cst_65 : f32 to vector<8x32xf32>
    %311 = arith.addf %310, %309 : vector<8x32xf32>
    %312 = arith.divf %310, %311 : vector<8x32xf32>
    %313 = vector.extract_strided_slice %304 {offsets = [0, 32], sizes = [8, 32], strides = [1, 1]} : vector<8x128xf32> to vector<8x32xf32>
    %314 = arith.negf %313 : vector<8x32xf32>
    %315 = math.exp %314 : vector<8x32xf32>
    %cst_66 = arith.constant 1.000000e+00 : f32
    %316 = vector.broadcast %cst_66 : f32 to vector<8x32xf32>
    %317 = arith.addf %316, %315 : vector<8x32xf32>
    %318 = arith.divf %316, %317 : vector<8x32xf32>
    %319 = vector.extract_strided_slice %304 {offsets = [0, 64], sizes = [8, 32], strides = [1, 1]} : vector<8x128xf32> to vector<8x32xf32>
    %320 = math.tanh %319 : vector<8x32xf32>
    %321 = vector.extract_strided_slice %304 {offsets = [0, 96], sizes = [8, 32], strides = [1, 1]} : vector<8x128xf32> to vector<8x32xf32>
    %322 = arith.negf %321 : vector<8x32xf32>
    %323 = math.exp %322 : vector<8x32xf32>
    %cst_67 = arith.constant 1.000000e+00 : f32
    %324 = vector.broadcast %cst_67 : f32 to vector<8x32xf32>
    %325 = arith.addf %324, %323 : vector<8x32xf32>
    %326 = arith.divf %324, %325 : vector<8x32xf32>
    %327 = arith.mulf %318, %258 : vector<8x32xf32>
    %328 = arith.mulf %312, %320 : vector<8x32xf32>
    %329 = arith.addf %327, %328 : vector<8x32xf32>
    %330 = math.tanh %329 : vector<8x32xf32>
    %331 = arith.mulf %326, %330 : vector<8x32xf32>
    %332 = vector.extract_strided_slice %306 {offsets = [0, 0], sizes = [8, 32], strides = [1, 1]} : vector<8x128xf32> to vector<8x32xf32>
    %333 = arith.negf %332 : vector<8x32xf32>
    %334 = math.exp %333 : vector<8x32xf32>
    %cst_68 = arith.constant 1.000000e+00 : f32
    %335 = vector.broadcast %cst_68 : f32 to vector<8x32xf32>
    %336 = arith.addf %335, %334 : vector<8x32xf32>
    %337 = arith.divf %335, %336 : vector<8x32xf32>
    %338 = vector.extract_strided_slice %306 {offsets = [0, 32], sizes = [8, 32], strides = [1, 1]} : vector<8x128xf32> to vector<8x32xf32>
    %339 = arith.negf %338 : vector<8x32xf32>
    %340 = math.exp %339 : vector<8x32xf32>
    %cst_69 = arith.constant 1.000000e+00 : f32
    %341 = vector.broadcast %cst_69 : f32 to vector<8x32xf32>
    %342 = arith.addf %341, %340 : vector<8x32xf32>
    %343 = arith.divf %341, %342 : vector<8x32xf32>
    %344 = vector.extract_strided_slice %306 {offsets = [0, 64], sizes = [8, 32], strides = [1, 1]} : vector<8x128xf32> to vector<8x32xf32>
    %345 = math.tanh %344 : vector<8x32xf32>
    %346 = vector.extract_strided_slice %306 {offsets = [0, 96], sizes = [8, 32], strides = [1, 1]} : vector<8x128xf32> to vector<8x32xf32>
    %347 = arith.negf %346 : vector<8x32xf32>
    %348 = math.exp %347 : vector<8x32xf32>
    %cst_70 = arith.constant 1.000000e+00 : f32
    %349 = vector.broadcast %cst_70 : f32 to vector<8x32xf32>
    %350 = arith.addf %349, %348 : vector<8x32xf32>
    %351 = arith.divf %349, %350 : vector<8x32xf32>
    %352 = arith.mulf %343, %300 : vector<8x32xf32>
    %353 = arith.mulf %337, %345 : vector<8x32xf32>
    %354 = arith.addf %352, %353 : vector<8x32xf32>
    %355 = math.tanh %354 : vector<8x32xf32>
    %356 = arith.mulf %351, %355 : vector<8x32xf32>
    %357 = vector.extract_strided_slice %0 {offsets = [24, 0], sizes = [8, 1], strides = [1, 1]} : vector<64x1xf32> to vector<8x1xf32>
    %358 = vector.broadcast %357 : vector<8x1xf32> to vector<8x32xf32>
    %359 = arith.mulf %358, %356 : vector<8x32xf32>
    %cst_71 = arith.constant 1.000000e+00 : f32
    %360 = vector.broadcast %cst_71 : f32 to vector<8x1xf32>
    %361 = arith.subf %360, %357 : vector<8x1xf32>
    %362 = vector.broadcast %361 : vector<8x1xf32> to vector<8x32xf32>
    %363 = arith.mulf %362, %293 : vector<8x32xf32>
    %364 = arith.addf %359, %363 : vector<8x32xf32>
    %365 = vector.broadcast %357 : vector<8x1xf32> to vector<8x32xf32>
    %366 = arith.mulf %365, %354 : vector<8x32xf32>
    %cst_72 = arith.constant 1.000000e+00 : f32
    %367 = vector.broadcast %cst_72 : f32 to vector<8x1xf32>
    %368 = arith.subf %367, %357 : vector<8x1xf32>
    %369 = vector.broadcast %368 : vector<8x1xf32> to vector<8x32xf32>
    %370 = arith.mulf %369, %300 : vector<8x32xf32>
    %371 = arith.addf %366, %370 : vector<8x32xf32>
    %cst_73 = arith.constant dense<0.000000e+00> : vector<8x128xf32>
    %372 = tpu.matmul %331, %5, %cst_73 {dimension_numbers = #tpu.dot_dimension_numbers<[1], [0], [0], [1], [0, 0, 1, 1], [], []>} : vector<8x32xf32>, vector<32x128xf32>, vector<8x128xf32> -> vector<8x128xf32>
    %cst_74 = arith.constant dense<0.000000e+00> : vector<8x128xf32>
    %373 = tpu.matmul %364, %6, %cst_74 {dimension_numbers = #tpu.dot_dimension_numbers<[1], [0], [0], [1], [0, 0, 1, 1], [], []>} : vector<8x32xf32>, vector<32x128xf32>, vector<8x128xf32> -> vector<8x128xf32>
    %374 = vector.extract_strided_slice %12 {offsets = [40, 0], sizes = [8, 128], strides = [1, 1]} : vector<64x256xf32> to vector<8x128xf32>
    %375 = arith.addf %374, %372 : vector<8x128xf32>
    %376 = vector.extract_strided_slice %12 {offsets = [16, 128], sizes = [8, 128], strides = [1, 1]} : vector<64x256xf32> to vector<8x128xf32>
    %377 = arith.addf %376, %373 : vector<8x128xf32>
    %378 = vector.extract_strided_slice %375 {offsets = [0, 0], sizes = [8, 32], strides = [1, 1]} : vector<8x128xf32> to vector<8x32xf32>
    %379 = arith.negf %378 : vector<8x32xf32>
    %380 = math.exp %379 : vector<8x32xf32>
    %cst_75 = arith.constant 1.000000e+00 : f32
    %381 = vector.broadcast %cst_75 : f32 to vector<8x32xf32>
    %382 = arith.addf %381, %380 : vector<8x32xf32>
    %383 = arith.divf %381, %382 : vector<8x32xf32>
    %384 = vector.extract_strided_slice %375 {offsets = [0, 32], sizes = [8, 32], strides = [1, 1]} : vector<8x128xf32> to vector<8x32xf32>
    %385 = arith.negf %384 : vector<8x32xf32>
    %386 = math.exp %385 : vector<8x32xf32>
    %cst_76 = arith.constant 1.000000e+00 : f32
    %387 = vector.broadcast %cst_76 : f32 to vector<8x32xf32>
    %388 = arith.addf %387, %386 : vector<8x32xf32>
    %389 = arith.divf %387, %388 : vector<8x32xf32>
    %390 = vector.extract_strided_slice %375 {offsets = [0, 64], sizes = [8, 32], strides = [1, 1]} : vector<8x128xf32> to vector<8x32xf32>
    %391 = math.tanh %390 : vector<8x32xf32>
    %392 = vector.extract_strided_slice %375 {offsets = [0, 96], sizes = [8, 32], strides = [1, 1]} : vector<8x128xf32> to vector<8x32xf32>
    %393 = arith.negf %392 : vector<8x32xf32>
    %394 = math.exp %393 : vector<8x32xf32>
    %cst_77 = arith.constant 1.000000e+00 : f32
    %395 = vector.broadcast %cst_77 : f32 to vector<8x32xf32>
    %396 = arith.addf %395, %394 : vector<8x32xf32>
    %397 = arith.divf %395, %396 : vector<8x32xf32>
    %398 = arith.mulf %389, %329 : vector<8x32xf32>
    %399 = arith.mulf %383, %391 : vector<8x32xf32>
    %400 = arith.addf %398, %399 : vector<8x32xf32>
    %401 = math.tanh %400 : vector<8x32xf32>
    %402 = arith.mulf %397, %401 : vector<8x32xf32>
    %403 = vector.extract_strided_slice %377 {offsets = [0, 0], sizes = [8, 32], strides = [1, 1]} : vector<8x128xf32> to vector<8x32xf32>
    %404 = arith.negf %403 : vector<8x32xf32>
    %405 = math.exp %404 : vector<8x32xf32>
    %cst_78 = arith.constant 1.000000e+00 : f32
    %406 = vector.broadcast %cst_78 : f32 to vector<8x32xf32>
    %407 = arith.addf %406, %405 : vector<8x32xf32>
    %408 = arith.divf %406, %407 : vector<8x32xf32>
    %409 = vector.extract_strided_slice %377 {offsets = [0, 32], sizes = [8, 32], strides = [1, 1]} : vector<8x128xf32> to vector<8x32xf32>
    %410 = arith.negf %409 : vector<8x32xf32>
    %411 = math.exp %410 : vector<8x32xf32>
    %cst_79 = arith.constant 1.000000e+00 : f32
    %412 = vector.broadcast %cst_79 : f32 to vector<8x32xf32>
    %413 = arith.addf %412, %411 : vector<8x32xf32>
    %414 = arith.divf %412, %413 : vector<8x32xf32>
    %415 = vector.extract_strided_slice %377 {offsets = [0, 64], sizes = [8, 32], strides = [1, 1]} : vector<8x128xf32> to vector<8x32xf32>
    %416 = math.tanh %415 : vector<8x32xf32>
    %417 = vector.extract_strided_slice %377 {offsets = [0, 96], sizes = [8, 32], strides = [1, 1]} : vector<8x128xf32> to vector<8x32xf32>
    %418 = arith.negf %417 : vector<8x32xf32>
    %419 = math.exp %418 : vector<8x32xf32>
    %cst_80 = arith.constant 1.000000e+00 : f32
    %420 = vector.broadcast %cst_80 : f32 to vector<8x32xf32>
    %421 = arith.addf %420, %419 : vector<8x32xf32>
    %422 = arith.divf %420, %421 : vector<8x32xf32>
    %423 = arith.mulf %414, %371 : vector<8x32xf32>
    %424 = arith.mulf %408, %416 : vector<8x32xf32>
    %425 = arith.addf %423, %424 : vector<8x32xf32>
    %426 = math.tanh %425 : vector<8x32xf32>
    %427 = arith.mulf %422, %426 : vector<8x32xf32>
    %428 = vector.extract_strided_slice %0 {offsets = [16, 0], sizes = [8, 1], strides = [1, 1]} : vector<64x1xf32> to vector<8x1xf32>
    %429 = vector.broadcast %428 : vector<8x1xf32> to vector<8x32xf32>
    %430 = arith.mulf %429, %427 : vector<8x32xf32>
    %cst_81 = arith.constant 1.000000e+00 : f32
    %431 = vector.broadcast %cst_81 : f32 to vector<8x1xf32>
    %432 = arith.subf %431, %428 : vector<8x1xf32>
    %433 = vector.broadcast %432 : vector<8x1xf32> to vector<8x32xf32>
    %434 = arith.mulf %433, %364 : vector<8x32xf32>
    %435 = arith.addf %430, %434 : vector<8x32xf32>
    %436 = vector.broadcast %428 : vector<8x1xf32> to vector<8x32xf32>
    %437 = arith.mulf %436, %425 : vector<8x32xf32>
    %cst_82 = arith.constant 1.000000e+00 : f32
    %438 = vector.broadcast %cst_82 : f32 to vector<8x1xf32>
    %439 = arith.subf %438, %428 : vector<8x1xf32>
    %440 = vector.broadcast %439 : vector<8x1xf32> to vector<8x32xf32>
    %441 = arith.mulf %440, %371 : vector<8x32xf32>
    %442 = arith.addf %437, %441 : vector<8x32xf32>
    %cst_83 = arith.constant dense<0.000000e+00> : vector<8x128xf32>
    %443 = tpu.matmul %402, %5, %cst_83 {dimension_numbers = #tpu.dot_dimension_numbers<[1], [0], [0], [1], [0, 0, 1, 1], [], []>} : vector<8x32xf32>, vector<32x128xf32>, vector<8x128xf32> -> vector<8x128xf32>
    %cst_84 = arith.constant dense<0.000000e+00> : vector<8x128xf32>
    %444 = tpu.matmul %435, %6, %cst_84 {dimension_numbers = #tpu.dot_dimension_numbers<[1], [0], [0], [1], [0, 0, 1, 1], [], []>} : vector<8x32xf32>, vector<32x128xf32>, vector<8x128xf32> -> vector<8x128xf32>
    %445 = vector.extract_strided_slice %12 {offsets = [48, 0], sizes = [8, 128], strides = [1, 1]} : vector<64x256xf32> to vector<8x128xf32>
    %446 = arith.addf %445, %443 : vector<8x128xf32>
    %447 = vector.extract_strided_slice %12 {offsets = [8, 128], sizes = [8, 128], strides = [1, 1]} : vector<64x256xf32> to vector<8x128xf32>
    %448 = arith.addf %447, %444 : vector<8x128xf32>
    %449 = vector.extract_strided_slice %446 {offsets = [0, 0], sizes = [8, 32], strides = [1, 1]} : vector<8x128xf32> to vector<8x32xf32>
    %450 = arith.negf %449 : vector<8x32xf32>
    %451 = math.exp %450 : vector<8x32xf32>
    %cst_85 = arith.constant 1.000000e+00 : f32
    %452 = vector.broadcast %cst_85 : f32 to vector<8x32xf32>
    %453 = arith.addf %452, %451 : vector<8x32xf32>
    %454 = arith.divf %452, %453 : vector<8x32xf32>
    %455 = vector.extract_strided_slice %446 {offsets = [0, 32], sizes = [8, 32], strides = [1, 1]} : vector<8x128xf32> to vector<8x32xf32>
    %456 = arith.negf %455 : vector<8x32xf32>
    %457 = math.exp %456 : vector<8x32xf32>
    %cst_86 = arith.constant 1.000000e+00 : f32
    %458 = vector.broadcast %cst_86 : f32 to vector<8x32xf32>
    %459 = arith.addf %458, %457 : vector<8x32xf32>
    %460 = arith.divf %458, %459 : vector<8x32xf32>
    %461 = vector.extract_strided_slice %446 {offsets = [0, 64], sizes = [8, 32], strides = [1, 1]} : vector<8x128xf32> to vector<8x32xf32>
    %462 = math.tanh %461 : vector<8x32xf32>
    %463 = vector.extract_strided_slice %446 {offsets = [0, 96], sizes = [8, 32], strides = [1, 1]} : vector<8x128xf32> to vector<8x32xf32>
    %464 = arith.negf %463 : vector<8x32xf32>
    %465 = math.exp %464 : vector<8x32xf32>
    %cst_87 = arith.constant 1.000000e+00 : f32
    %466 = vector.broadcast %cst_87 : f32 to vector<8x32xf32>
    %467 = arith.addf %466, %465 : vector<8x32xf32>
    %468 = arith.divf %466, %467 : vector<8x32xf32>
    %469 = arith.mulf %460, %400 : vector<8x32xf32>
    %470 = arith.mulf %454, %462 : vector<8x32xf32>
    %471 = arith.addf %469, %470 : vector<8x32xf32>
    %472 = math.tanh %471 : vector<8x32xf32>
    %473 = arith.mulf %468, %472 : vector<8x32xf32>
    %474 = vector.extract_strided_slice %448 {offsets = [0, 0], sizes = [8, 32], strides = [1, 1]} : vector<8x128xf32> to vector<8x32xf32>
    %475 = arith.negf %474 : vector<8x32xf32>
    %476 = math.exp %475 : vector<8x32xf32>
    %cst_88 = arith.constant 1.000000e+00 : f32
    %477 = vector.broadcast %cst_88 : f32 to vector<8x32xf32>
    %478 = arith.addf %477, %476 : vector<8x32xf32>
    %479 = arith.divf %477, %478 : vector<8x32xf32>
    %480 = vector.extract_strided_slice %448 {offsets = [0, 32], sizes = [8, 32], strides = [1, 1]} : vector<8x128xf32> to vector<8x32xf32>
    %481 = arith.negf %480 : vector<8x32xf32>
    %482 = math.exp %481 : vector<8x32xf32>
    %cst_89 = arith.constant 1.000000e+00 : f32
    %483 = vector.broadcast %cst_89 : f32 to vector<8x32xf32>
    %484 = arith.addf %483, %482 : vector<8x32xf32>
    %485 = arith.divf %483, %484 : vector<8x32xf32>
    %486 = vector.extract_strided_slice %448 {offsets = [0, 64], sizes = [8, 32], strides = [1, 1]} : vector<8x128xf32> to vector<8x32xf32>
    %487 = math.tanh %486 : vector<8x32xf32>
    %488 = vector.extract_strided_slice %448 {offsets = [0, 96], sizes = [8, 32], strides = [1, 1]} : vector<8x128xf32> to vector<8x32xf32>
    %489 = arith.negf %488 : vector<8x32xf32>
    %490 = math.exp %489 : vector<8x32xf32>
    %cst_90 = arith.constant 1.000000e+00 : f32
    %491 = vector.broadcast %cst_90 : f32 to vector<8x32xf32>
    %492 = arith.addf %491, %490 : vector<8x32xf32>
    %493 = arith.divf %491, %492 : vector<8x32xf32>
    %494 = arith.mulf %485, %442 : vector<8x32xf32>
    %495 = arith.mulf %479, %487 : vector<8x32xf32>
    %496 = arith.addf %494, %495 : vector<8x32xf32>
    %497 = math.tanh %496 : vector<8x32xf32>
    %498 = arith.mulf %493, %497 : vector<8x32xf32>
    %499 = vector.extract_strided_slice %0 {offsets = [8, 0], sizes = [8, 1], strides = [1, 1]} : vector<64x1xf32> to vector<8x1xf32>
    %500 = vector.broadcast %499 : vector<8x1xf32> to vector<8x32xf32>
    %501 = arith.mulf %500, %498 : vector<8x32xf32>
    %cst_91 = arith.constant 1.000000e+00 : f32
    %502 = vector.broadcast %cst_91 : f32 to vector<8x1xf32>
    %503 = arith.subf %502, %499 : vector<8x1xf32>
    %504 = vector.broadcast %503 : vector<8x1xf32> to vector<8x32xf32>
    %505 = arith.mulf %504, %435 : vector<8x32xf32>
    %506 = arith.addf %501, %505 : vector<8x32xf32>
    %507 = vector.broadcast %499 : vector<8x1xf32> to vector<8x32xf32>
    %508 = arith.mulf %507, %496 : vector<8x32xf32>
    %cst_92 = arith.constant 1.000000e+00 : f32
    %509 = vector.broadcast %cst_92 : f32 to vector<8x1xf32>
    %510 = arith.subf %509, %499 : vector<8x1xf32>
    %511 = vector.broadcast %510 : vector<8x1xf32> to vector<8x32xf32>
    %512 = arith.mulf %511, %442 : vector<8x32xf32>
    %513 = arith.addf %508, %512 : vector<8x32xf32>
    %cst_93 = arith.constant dense<0.000000e+00> : vector<8x128xf32>
    %514 = tpu.matmul %473, %5, %cst_93 {dimension_numbers = #tpu.dot_dimension_numbers<[1], [0], [0], [1], [0, 0, 1, 1], [], []>} : vector<8x32xf32>, vector<32x128xf32>, vector<8x128xf32> -> vector<8x128xf32>
    %cst_94 = arith.constant dense<0.000000e+00> : vector<8x128xf32>
    %515 = tpu.matmul %506, %6, %cst_94 {dimension_numbers = #tpu.dot_dimension_numbers<[1], [0], [0], [1], [0, 0, 1, 1], [], []>} : vector<8x32xf32>, vector<32x128xf32>, vector<8x128xf32> -> vector<8x128xf32>
    %516 = vector.extract_strided_slice %12 {offsets = [56, 0], sizes = [8, 128], strides = [1, 1]} : vector<64x256xf32> to vector<8x128xf32>
    %517 = arith.addf %516, %514 : vector<8x128xf32>
    %518 = vector.extract_strided_slice %12 {offsets = [0, 128], sizes = [8, 128], strides = [1, 1]} : vector<64x256xf32> to vector<8x128xf32>
    %519 = arith.addf %518, %515 : vector<8x128xf32>
    %520 = vector.extract_strided_slice %517 {offsets = [0, 0], sizes = [8, 32], strides = [1, 1]} : vector<8x128xf32> to vector<8x32xf32>
    %521 = arith.negf %520 : vector<8x32xf32>
    %522 = math.exp %521 : vector<8x32xf32>
    %cst_95 = arith.constant 1.000000e+00 : f32
    %523 = vector.broadcast %cst_95 : f32 to vector<8x32xf32>
    %524 = arith.addf %523, %522 : vector<8x32xf32>
    %525 = arith.divf %523, %524 : vector<8x32xf32>
    %526 = vector.extract_strided_slice %517 {offsets = [0, 32], sizes = [8, 32], strides = [1, 1]} : vector<8x128xf32> to vector<8x32xf32>
    %527 = arith.negf %526 : vector<8x32xf32>
    %528 = math.exp %527 : vector<8x32xf32>
    %cst_96 = arith.constant 1.000000e+00 : f32
    %529 = vector.broadcast %cst_96 : f32 to vector<8x32xf32>
    %530 = arith.addf %529, %528 : vector<8x32xf32>
    %531 = arith.divf %529, %530 : vector<8x32xf32>
    %532 = vector.extract_strided_slice %517 {offsets = [0, 64], sizes = [8, 32], strides = [1, 1]} : vector<8x128xf32> to vector<8x32xf32>
    %533 = math.tanh %532 : vector<8x32xf32>
    %534 = vector.extract_strided_slice %517 {offsets = [0, 96], sizes = [8, 32], strides = [1, 1]} : vector<8x128xf32> to vector<8x32xf32>
    %535 = arith.negf %534 : vector<8x32xf32>
    %536 = math.exp %535 : vector<8x32xf32>
    %cst_97 = arith.constant 1.000000e+00 : f32
    %537 = vector.broadcast %cst_97 : f32 to vector<8x32xf32>
    %538 = arith.addf %537, %536 : vector<8x32xf32>
    %539 = arith.divf %537, %538 : vector<8x32xf32>
    %540 = arith.mulf %531, %471 : vector<8x32xf32>
    %541 = arith.mulf %525, %533 : vector<8x32xf32>
    %542 = arith.addf %540, %541 : vector<8x32xf32>
    %543 = math.tanh %542 : vector<8x32xf32>
    %544 = arith.mulf %539, %543 : vector<8x32xf32>
    %545 = vector.extract_strided_slice %519 {offsets = [0, 0], sizes = [8, 32], strides = [1, 1]} : vector<8x128xf32> to vector<8x32xf32>
    %546 = arith.negf %545 : vector<8x32xf32>
    %547 = math.exp %546 : vector<8x32xf32>
    %cst_98 = arith.constant 1.000000e+00 : f32
    %548 = vector.broadcast %cst_98 : f32 to vector<8x32xf32>
    %549 = arith.addf %548, %547 : vector<8x32xf32>
    %550 = arith.divf %548, %549 : vector<8x32xf32>
    %551 = vector.extract_strided_slice %519 {offsets = [0, 32], sizes = [8, 32], strides = [1, 1]} : vector<8x128xf32> to vector<8x32xf32>
    %552 = arith.negf %551 : vector<8x32xf32>
    %553 = math.exp %552 : vector<8x32xf32>
    %cst_99 = arith.constant 1.000000e+00 : f32
    %554 = vector.broadcast %cst_99 : f32 to vector<8x32xf32>
    %555 = arith.addf %554, %553 : vector<8x32xf32>
    %556 = arith.divf %554, %555 : vector<8x32xf32>
    %557 = vector.extract_strided_slice %519 {offsets = [0, 64], sizes = [8, 32], strides = [1, 1]} : vector<8x128xf32> to vector<8x32xf32>
    %558 = math.tanh %557 : vector<8x32xf32>
    %559 = vector.extract_strided_slice %519 {offsets = [0, 96], sizes = [8, 32], strides = [1, 1]} : vector<8x128xf32> to vector<8x32xf32>
    %560 = arith.negf %559 : vector<8x32xf32>
    %561 = math.exp %560 : vector<8x32xf32>
    %cst_100 = arith.constant 1.000000e+00 : f32
    %562 = vector.broadcast %cst_100 : f32 to vector<8x32xf32>
    %563 = arith.addf %562, %561 : vector<8x32xf32>
    %564 = arith.divf %562, %563 : vector<8x32xf32>
    %565 = arith.mulf %556, %513 : vector<8x32xf32>
    %566 = arith.mulf %550, %558 : vector<8x32xf32>
    %567 = arith.addf %565, %566 : vector<8x32xf32>
    %568 = math.tanh %567 : vector<8x32xf32>
    %569 = arith.mulf %564, %568 : vector<8x32xf32>
    %570 = tpu.concatenate %47, %118, %189, %260, %331, %402, %473, %544 in 0 : vector<8x32xf32>, vector<8x32xf32>, vector<8x32xf32>, vector<8x32xf32>, vector<8x32xf32>, vector<8x32xf32>, vector<8x32xf32>, vector<8x32xf32> -> vector<64x32xf32>
    %571 = tpu.concatenate %569, %498, %427, %356, %285, %214, %143, %72 in 0 : vector<8x32xf32>, vector<8x32xf32>, vector<8x32xf32>, vector<8x32xf32>, vector<8x32xf32>, vector<8x32xf32>, vector<8x32xf32>, vector<8x32xf32> -> vector<64x32xf32>
    %c0_101 = arith.constant 0 : index
    %c0_102 = arith.constant 0 : index
    %572 = vector.load %arg5[%c0_101, %c0_102] : memref<32x12xf32, #tpu.memory_space<vmem>>, vector<32x12xf32>
    %cst_103 = arith.constant dense<0.000000e+00> : vector<64x12xf32>
    %573 = tpu.matmul %570, %572, %cst_103 {dimension_numbers = #tpu.dot_dimension_numbers<[1], [0], [0], [1], [0, 0, 1, 1], [], []>} : vector<64x32xf32>, vector<32x12xf32>, vector<64x12xf32> -> vector<64x12xf32>
    %c0_104 = arith.constant 0 : index
    %c0_105 = arith.constant 0 : index
    %574 = vector.load %arg6[%c0_104, %c0_105] : memref<32x12xf32, #tpu.memory_space<vmem>>, vector<32x12xf32>
    %cst_106 = arith.constant dense<0.000000e+00> : vector<64x12xf32>
    %575 = tpu.matmul %571, %574, %cst_106 {dimension_numbers = #tpu.dot_dimension_numbers<[1], [0], [0], [1], [0, 0, 1, 1], [], []>} : vector<64x32xf32>, vector<32x12xf32>, vector<64x12xf32> -> vector<64x12xf32>
    %576 = arith.addf %573, %575 : vector<64x12xf32>
    %c0_107 = arith.constant 0 : index
    %c0_108 = arith.constant 0 : index
    %577 = vector.load %arg7[%c0_107, %c0_108] : memref<1x12xf32, #tpu.memory_space<vmem>>, vector<1x12xf32>
    %578 = vector.broadcast %577 : vector<1x12xf32> to vector<64x12xf32>
    %579 = arith.addf %576, %578 : vector<64x12xf32>
    %580 = vector.extract_strided_slice %3 {offsets = [10, 0], sizes = [1, 12], strides = [1, 1]} : vector<12x12xf32> to vector<1x12xf32>
    %581 = math.exp %3 : vector<12x12xf32>
    %582 = vector.extract_strided_slice %579 {offsets = [0, 0], sizes = [8, 12], strides = [1, 1]} : vector<64x12xf32> to vector<8x12xf32>
    %583 = vector.broadcast %580 : vector<1x12xf32> to vector<8x12xf32>
    %584 = arith.addf %583, %582 : vector<8x12xf32>
    %585 = vector.extract_strided_slice %1 {offsets = [0, 0], sizes = [8, 1], strides = [1, 1]} : vector<64x1xf32> to vector<8x1xf32>
    %cst_109 = arith.constant 5.000000e-01 : f32
    %586 = vector.broadcast %cst_109 : f32 to vector<8x1xf32>
    %587 = arith.cmpf ogt, %585, %586 : vector<8x1xf32>
    %cst_110 = arith.constant 0.000000e+00 : f32
    %588 = vector.shape_cast %587 : vector<8x1xi1> to vector<8x1xi1>
    %589 = vector.broadcast %588 : vector<8x1xi1> to vector<8x12xi1>
    %590 = vector.broadcast %cst_110 : f32 to vector<8x12xf32>
    %591 = arith.select %589, %584, %590 : vector<8x12xi1>, vector<8x12xf32>
    %cst_111 = arith.constant dense<0xFF800000> : vector<8xf32>
    %592 = vector.multi_reduction <maximumf>, %584, %cst_111 [1] : vector<8x12xf32> to vector<8xf32>
    %593 = vector.shape_cast %592 : vector<8xf32> to vector<8x1xf32>
    %594 = vector.broadcast %593 : vector<8x1xf32> to vector<8x12xf32>
    %595 = arith.subf %584, %594 : vector<8x12xf32>
    %596 = math.exp %595 : vector<8x12xf32>
    %cst_112 = arith.constant dense<0.000000e+00> : vector<8x12xf32>
    %597 = tpu.matmul %596, %581, %cst_112 {dimension_numbers = #tpu.dot_dimension_numbers<[1], [0], [0], [1], [0, 0, 1, 1], [], []>} : vector<8x12xf32>, vector<12x12xf32>, vector<8x12xf32> -> vector<8x12xf32>
    %598 = math.log %597 : vector<8x12xf32>
    %599 = vector.broadcast %593 : vector<8x1xf32> to vector<8x12xf32>
    %600 = arith.addf %598, %599 : vector<8x12xf32>
    %601 = vector.extract_strided_slice %579 {offsets = [8, 0], sizes = [8, 12], strides = [1, 1]} : vector<64x12xf32> to vector<8x12xf32>
    %602 = arith.addf %600, %601 : vector<8x12xf32>
    %603 = vector.extract_strided_slice %1 {offsets = [8, 0], sizes = [8, 1], strides = [1, 1]} : vector<64x1xf32> to vector<8x1xf32>
    %cst_113 = arith.constant 5.000000e-01 : f32
    %604 = vector.broadcast %cst_113 : f32 to vector<8x1xf32>
    %605 = arith.cmpf ogt, %603, %604 : vector<8x1xf32>
    %606 = vector.shape_cast %605 : vector<8x1xi1> to vector<8x1xi1>
    %607 = vector.broadcast %606 : vector<8x1xi1> to vector<8x12xi1>
    %608 = arith.select %607, %602, %591 : vector<8x12xi1>, vector<8x12xf32>
    %cst_114 = arith.constant dense<0xFF800000> : vector<8xf32>
    %609 = vector.multi_reduction <maximumf>, %602, %cst_114 [1] : vector<8x12xf32> to vector<8xf32>
    %610 = vector.shape_cast %609 : vector<8xf32> to vector<8x1xf32>
    %611 = vector.broadcast %610 : vector<8x1xf32> to vector<8x12xf32>
    %612 = arith.subf %602, %611 : vector<8x12xf32>
    %613 = math.exp %612 : vector<8x12xf32>
    %cst_115 = arith.constant dense<0.000000e+00> : vector<8x12xf32>
    %614 = tpu.matmul %613, %581, %cst_115 {dimension_numbers = #tpu.dot_dimension_numbers<[1], [0], [0], [1], [0, 0, 1, 1], [], []>} : vector<8x12xf32>, vector<12x12xf32>, vector<8x12xf32> -> vector<8x12xf32>
    %615 = math.log %614 : vector<8x12xf32>
    %616 = vector.broadcast %610 : vector<8x1xf32> to vector<8x12xf32>
    %617 = arith.addf %615, %616 : vector<8x12xf32>
    %618 = vector.extract_strided_slice %579 {offsets = [16, 0], sizes = [8, 12], strides = [1, 1]} : vector<64x12xf32> to vector<8x12xf32>
    %619 = arith.addf %617, %618 : vector<8x12xf32>
    %620 = vector.extract_strided_slice %1 {offsets = [16, 0], sizes = [8, 1], strides = [1, 1]} : vector<64x1xf32> to vector<8x1xf32>
    %cst_116 = arith.constant 5.000000e-01 : f32
    %621 = vector.broadcast %cst_116 : f32 to vector<8x1xf32>
    %622 = arith.cmpf ogt, %620, %621 : vector<8x1xf32>
    %623 = vector.shape_cast %622 : vector<8x1xi1> to vector<8x1xi1>
    %624 = vector.broadcast %623 : vector<8x1xi1> to vector<8x12xi1>
    %625 = arith.select %624, %619, %608 : vector<8x12xi1>, vector<8x12xf32>
    %cst_117 = arith.constant dense<0xFF800000> : vector<8xf32>
    %626 = vector.multi_reduction <maximumf>, %619, %cst_117 [1] : vector<8x12xf32> to vector<8xf32>
    %627 = vector.shape_cast %626 : vector<8xf32> to vector<8x1xf32>
    %628 = vector.broadcast %627 : vector<8x1xf32> to vector<8x12xf32>
    %629 = arith.subf %619, %628 : vector<8x12xf32>
    %630 = math.exp %629 : vector<8x12xf32>
    %cst_118 = arith.constant dense<0.000000e+00> : vector<8x12xf32>
    %631 = tpu.matmul %630, %581, %cst_118 {dimension_numbers = #tpu.dot_dimension_numbers<[1], [0], [0], [1], [0, 0, 1, 1], [], []>} : vector<8x12xf32>, vector<12x12xf32>, vector<8x12xf32> -> vector<8x12xf32>
    %632 = math.log %631 : vector<8x12xf32>
    %633 = vector.broadcast %627 : vector<8x1xf32> to vector<8x12xf32>
    %634 = arith.addf %632, %633 : vector<8x12xf32>
    %635 = vector.extract_strided_slice %579 {offsets = [24, 0], sizes = [8, 12], strides = [1, 1]} : vector<64x12xf32> to vector<8x12xf32>
    %636 = arith.addf %634, %635 : vector<8x12xf32>
    %637 = vector.extract_strided_slice %1 {offsets = [24, 0], sizes = [8, 1], strides = [1, 1]} : vector<64x1xf32> to vector<8x1xf32>
    %cst_119 = arith.constant 5.000000e-01 : f32
    %638 = vector.broadcast %cst_119 : f32 to vector<8x1xf32>
    %639 = arith.cmpf ogt, %637, %638 : vector<8x1xf32>
    %640 = vector.shape_cast %639 : vector<8x1xi1> to vector<8x1xi1>
    %641 = vector.broadcast %640 : vector<8x1xi1> to vector<8x12xi1>
    %642 = arith.select %641, %636, %625 : vector<8x12xi1>, vector<8x12xf32>
    %cst_120 = arith.constant dense<0xFF800000> : vector<8xf32>
    %643 = vector.multi_reduction <maximumf>, %636, %cst_120 [1] : vector<8x12xf32> to vector<8xf32>
    %644 = vector.shape_cast %643 : vector<8xf32> to vector<8x1xf32>
    %645 = vector.broadcast %644 : vector<8x1xf32> to vector<8x12xf32>
    %646 = arith.subf %636, %645 : vector<8x12xf32>
    %647 = math.exp %646 : vector<8x12xf32>
    %cst_121 = arith.constant dense<0.000000e+00> : vector<8x12xf32>
    %648 = tpu.matmul %647, %581, %cst_121 {dimension_numbers = #tpu.dot_dimension_numbers<[1], [0], [0], [1], [0, 0, 1, 1], [], []>} : vector<8x12xf32>, vector<12x12xf32>, vector<8x12xf32> -> vector<8x12xf32>
    %649 = math.log %648 : vector<8x12xf32>
    %650 = vector.broadcast %644 : vector<8x1xf32> to vector<8x12xf32>
    %651 = arith.addf %649, %650 : vector<8x12xf32>
    %652 = vector.extract_strided_slice %579 {offsets = [32, 0], sizes = [8, 12], strides = [1, 1]} : vector<64x12xf32> to vector<8x12xf32>
    %653 = arith.addf %651, %652 : vector<8x12xf32>
    %654 = vector.extract_strided_slice %1 {offsets = [32, 0], sizes = [8, 1], strides = [1, 1]} : vector<64x1xf32> to vector<8x1xf32>
    %cst_122 = arith.constant 5.000000e-01 : f32
    %655 = vector.broadcast %cst_122 : f32 to vector<8x1xf32>
    %656 = arith.cmpf ogt, %654, %655 : vector<8x1xf32>
    %657 = vector.shape_cast %656 : vector<8x1xi1> to vector<8x1xi1>
    %658 = vector.broadcast %657 : vector<8x1xi1> to vector<8x12xi1>
    %659 = arith.select %658, %653, %642 : vector<8x12xi1>, vector<8x12xf32>
    %cst_123 = arith.constant dense<0xFF800000> : vector<8xf32>
    %660 = vector.multi_reduction <maximumf>, %653, %cst_123 [1] : vector<8x12xf32> to vector<8xf32>
    %661 = vector.shape_cast %660 : vector<8xf32> to vector<8x1xf32>
    %662 = vector.broadcast %661 : vector<8x1xf32> to vector<8x12xf32>
    %663 = arith.subf %653, %662 : vector<8x12xf32>
    %664 = math.exp %663 : vector<8x12xf32>
    %cst_124 = arith.constant dense<0.000000e+00> : vector<8x12xf32>
    %665 = tpu.matmul %664, %581, %cst_124 {dimension_numbers = #tpu.dot_dimension_numbers<[1], [0], [0], [1], [0, 0, 1, 1], [], []>} : vector<8x12xf32>, vector<12x12xf32>, vector<8x12xf32> -> vector<8x12xf32>
    %666 = math.log %665 : vector<8x12xf32>
    %667 = vector.broadcast %661 : vector<8x1xf32> to vector<8x12xf32>
    %668 = arith.addf %666, %667 : vector<8x12xf32>
    %669 = vector.extract_strided_slice %579 {offsets = [40, 0], sizes = [8, 12], strides = [1, 1]} : vector<64x12xf32> to vector<8x12xf32>
    %670 = arith.addf %668, %669 : vector<8x12xf32>
    %671 = vector.extract_strided_slice %1 {offsets = [40, 0], sizes = [8, 1], strides = [1, 1]} : vector<64x1xf32> to vector<8x1xf32>
    %cst_125 = arith.constant 5.000000e-01 : f32
    %672 = vector.broadcast %cst_125 : f32 to vector<8x1xf32>
    %673 = arith.cmpf ogt, %671, %672 : vector<8x1xf32>
    %674 = vector.shape_cast %673 : vector<8x1xi1> to vector<8x1xi1>
    %675 = vector.broadcast %674 : vector<8x1xi1> to vector<8x12xi1>
    %676 = arith.select %675, %670, %659 : vector<8x12xi1>, vector<8x12xf32>
    %cst_126 = arith.constant dense<0xFF800000> : vector<8xf32>
    %677 = vector.multi_reduction <maximumf>, %670, %cst_126 [1] : vector<8x12xf32> to vector<8xf32>
    %678 = vector.shape_cast %677 : vector<8xf32> to vector<8x1xf32>
    %679 = vector.broadcast %678 : vector<8x1xf32> to vector<8x12xf32>
    %680 = arith.subf %670, %679 : vector<8x12xf32>
    %681 = math.exp %680 : vector<8x12xf32>
    %cst_127 = arith.constant dense<0.000000e+00> : vector<8x12xf32>
    %682 = tpu.matmul %681, %581, %cst_127 {dimension_numbers = #tpu.dot_dimension_numbers<[1], [0], [0], [1], [0, 0, 1, 1], [], []>} : vector<8x12xf32>, vector<12x12xf32>, vector<8x12xf32> -> vector<8x12xf32>
    %683 = math.log %682 : vector<8x12xf32>
    %684 = vector.broadcast %678 : vector<8x1xf32> to vector<8x12xf32>
    %685 = arith.addf %683, %684 : vector<8x12xf32>
    %686 = vector.extract_strided_slice %579 {offsets = [48, 0], sizes = [8, 12], strides = [1, 1]} : vector<64x12xf32> to vector<8x12xf32>
    %687 = arith.addf %685, %686 : vector<8x12xf32>
    %688 = vector.extract_strided_slice %1 {offsets = [48, 0], sizes = [8, 1], strides = [1, 1]} : vector<64x1xf32> to vector<8x1xf32>
    %cst_128 = arith.constant 5.000000e-01 : f32
    %689 = vector.broadcast %cst_128 : f32 to vector<8x1xf32>
    %690 = arith.cmpf ogt, %688, %689 : vector<8x1xf32>
    %691 = vector.shape_cast %690 : vector<8x1xi1> to vector<8x1xi1>
    %692 = vector.broadcast %691 : vector<8x1xi1> to vector<8x12xi1>
    %693 = arith.select %692, %687, %676 : vector<8x12xi1>, vector<8x12xf32>
    %cst_129 = arith.constant dense<0xFF800000> : vector<8xf32>
    %694 = vector.multi_reduction <maximumf>, %687, %cst_129 [1] : vector<8x12xf32> to vector<8xf32>
    %695 = vector.shape_cast %694 : vector<8xf32> to vector<8x1xf32>
    %696 = vector.broadcast %695 : vector<8x1xf32> to vector<8x12xf32>
    %697 = arith.subf %687, %696 : vector<8x12xf32>
    %698 = math.exp %697 : vector<8x12xf32>
    %cst_130 = arith.constant dense<0.000000e+00> : vector<8x12xf32>
    %699 = tpu.matmul %698, %581, %cst_130 {dimension_numbers = #tpu.dot_dimension_numbers<[1], [0], [0], [1], [0, 0, 1, 1], [], []>} : vector<8x12xf32>, vector<12x12xf32>, vector<8x12xf32> -> vector<8x12xf32>
    %700 = math.log %699 : vector<8x12xf32>
    %701 = vector.broadcast %695 : vector<8x1xf32> to vector<8x12xf32>
    %702 = arith.addf %700, %701 : vector<8x12xf32>
    %703 = vector.extract_strided_slice %579 {offsets = [56, 0], sizes = [8, 12], strides = [1, 1]} : vector<64x12xf32> to vector<8x12xf32>
    %704 = arith.addf %702, %703 : vector<8x12xf32>
    %705 = vector.extract_strided_slice %1 {offsets = [56, 0], sizes = [8, 1], strides = [1, 1]} : vector<64x1xf32> to vector<8x1xf32>
    %cst_131 = arith.constant 5.000000e-01 : f32
    %706 = vector.broadcast %cst_131 : f32 to vector<8x1xf32>
    %707 = arith.cmpf ogt, %705, %706 : vector<8x1xf32>
    %708 = vector.shape_cast %707 : vector<8x1xi1> to vector<8x1xi1>
    %709 = vector.broadcast %708 : vector<8x1xi1> to vector<8x12xi1>
    %710 = arith.select %709, %704, %693 : vector<8x12xi1>, vector<8x12xf32>
    %711 = vector.broadcast %4 : vector<1x12xf32> to vector<8x12xf32>
    %712 = arith.addf %710, %711 : vector<8x12xf32>
    %cst_132 = arith.constant dense<0xFF800000> : vector<8xf32>
    %713 = vector.multi_reduction <maximumf>, %712, %cst_132 [1] : vector<8x12xf32> to vector<8xf32>
    %714 = vector.shape_cast %713 : vector<8xf32> to vector<8x1xf32>
    %715 = vector.broadcast %714 : vector<8x1xf32> to vector<8x12xf32>
    %716 = arith.subf %712, %715 : vector<8x12xf32>
    %717 = math.exp %716 : vector<8x12xf32>
    %cst_133 = arith.constant dense<0.000000e+00> : vector<8xf32>
    %718 = vector.multi_reduction <add>, %717, %cst_133 [1] : vector<8x12xf32> to vector<8xf32>
    %719 = vector.shape_cast %718 : vector<8xf32> to vector<8x1xf32>
    %720 = math.log %719 : vector<8x1xf32>
    %721 = arith.addf %720, %714 : vector<8x1xf32>
    %722 = vector.extract_strided_slice %0 {offsets = [0, 0], sizes = [8, 1], strides = [1, 1]} : vector<64x1xf32> to vector<8x1xf32>
    %723 = arith.mulf %722, %721 : vector<8x1xf32>
    %cst_134 = arith.constant dense<0.000000e+00> : vector<1xf32>
    %724 = vector.multi_reduction <add>, %723, %cst_134 [0] : vector<8x1xf32> to vector<1xf32>
    %725 = vector.shape_cast %724 : vector<1xf32> to vector<1x1xf32>
    %726 = arith.mulf %2, %579 : vector<64x12xf32>
    %cst_135 = arith.constant dense<0.000000e+00> : vector<64xf32>
    %727 = vector.multi_reduction <add>, %726, %cst_135 [1] : vector<64x12xf32> to vector<64xf32>
    %728 = vector.shape_cast %727 : vector<64xf32> to vector<64x1xf32>
    %cst_136 = arith.constant dense<0.000000e+00> : vector<1xf32>
    %729 = vector.multi_reduction <add>, %728, %cst_136 [0] : vector<64x1xf32> to vector<1xf32>
    %730 = vector.shape_cast %729 : vector<1xf32> to vector<1x1xf32>
    %731 = vector.extract_strided_slice %2 {offsets = [0, 0], sizes = [8, 12], strides = [1, 1]} : vector<64x12xf32> to vector<8x12xf32>
    %732 = vector.broadcast %580 : vector<1x12xf32> to vector<8x12xf32>
    %733 = arith.mulf %731, %732 : vector<8x12xf32>
    %cst_137 = arith.constant dense<0.000000e+00> : vector<8xf32>
    %734 = vector.multi_reduction <add>, %733, %cst_137 [1] : vector<8x12xf32> to vector<8xf32>
    %735 = vector.shape_cast %734 : vector<8xf32> to vector<8x1xf32>
    %cst_138 = arith.constant dense<0.000000e+00> : vector<1xf32>
    %736 = vector.multi_reduction <add>, %735, %cst_138 [0] : vector<8x1xf32> to vector<1xf32>
    %737 = vector.shape_cast %736 : vector<1xf32> to vector<1x1xf32>
    %738 = vector.broadcast %1 : vector<64x1xf32> to vector<64x12xf32>
    %739 = arith.mulf %738, %2 : vector<64x12xf32>
    %740 = vector.broadcast %4 : vector<1x12xf32> to vector<64x12xf32>
    %741 = arith.mulf %739, %740 : vector<64x12xf32>
    %cst_139 = arith.constant dense<0.000000e+00> : vector<64xf32>
    %742 = vector.multi_reduction <add>, %741, %cst_139 [1] : vector<64x12xf32> to vector<64xf32>
    %743 = vector.shape_cast %742 : vector<64xf32> to vector<64x1xf32>
    %cst_140 = arith.constant dense<0.000000e+00> : vector<1xf32>
    %744 = vector.multi_reduction <add>, %743, %cst_140 [0] : vector<64x1xf32> to vector<1xf32>
    %745 = vector.shape_cast %744 : vector<1xf32> to vector<1x1xf32>
    %746 = vector.extract_strided_slice %2 {offsets = [0, 0], sizes = [56, 12], strides = [1, 1]} : vector<64x12xf32> to vector<56x12xf32>
    %747 = vector.extract_strided_slice %2 {offsets = [8, 0], sizes = [56, 12], strides = [1, 1]} : vector<64x12xf32> to vector<56x12xf32>
    %cst_141 = arith.constant dense<0.000000e+00> : vector<56x12xf32>
    %748 = tpu.matmul %746, %3, %cst_141 {dimension_numbers = #tpu.dot_dimension_numbers<[1], [0], [0], [1], [0, 0, 1, 1], [], []>} : vector<56x12xf32>, vector<12x12xf32>, vector<56x12xf32> -> vector<56x12xf32>
    %749 = arith.mulf %748, %747 : vector<56x12xf32>
    %cst_142 = arith.constant dense<0.000000e+00> : vector<56xf32>
    %750 = vector.multi_reduction <add>, %749, %cst_142 [1] : vector<56x12xf32> to vector<56xf32>
    %751 = vector.shape_cast %750 : vector<56xf32> to vector<56x1xf32>
    %cst_143 = arith.constant dense<0.000000e+00> : vector<1xf32>
    %752 = vector.multi_reduction <add>, %751, %cst_143 [0] : vector<56x1xf32> to vector<1xf32>
    %753 = vector.shape_cast %752 : vector<1xf32> to vector<1x1xf32>
    %754 = arith.addf %730, %737 : vector<1x1xf32>
    %755 = arith.addf %754, %745 : vector<1x1xf32>
    %756 = arith.addf %755, %753 : vector<1x1xf32>
    %757 = arith.subf %725, %756 : vector<1x1xf32>
    %c0_144 = arith.constant 0 : index
    %c0_145 = arith.constant 0 : index
    %758 = vector.load %arg13[%c0_144, %c0_145] : memref<1x1xf32, #tpu.memory_space<vmem>>, vector<1x1xf32>
    tpu.vector_store %arg13[%c0_144, %c0_145], %757 {strides = array<i32>} : memref<1x1xf32, #tpu.memory_space<vmem>>, vector<1x1xf32>,
    return
  }
}

</mosaic_0001>

<bundles_post_ra>
// kernel: nncrf_forward.1
= control target key start
LH: loop header
LB: loop body
LE: loop exit
PB: predicated region body
PF: predicated region fallthrough
CT: control target
= control target key end

     0   :  { %v4115_v7 = vmov 0.0   ;;  %s5157_s0 = inlined_call_operand.vmem [shape: f32[64,40], index: 0, kind: input, shape index: {}]   ;;  %s5158_s1 = inlined_call_operand.vmem [shape: f32[40,256], index: 1, kind: input, shape index: {}]   ;;  %s5159_s2 = inlined_call_operand.vmem [shape: f32[1,256], index: 2, kind: input, shape index: {}]   ;;  %s5160_s3 = inlined_call_operand.vmem [shape: f32[32,128], index: 3, kind: input, shape index: {}]   ;;  %s5161_s4 = inlined_call_operand.vmem [shape: f32[32,128], index: 4, kind: input, shape index: {}]   ;;  %s5162_s5 = inlined_call_operand.vmem [shape: f32[32,12], index: 5, kind: input, shape index: {}]   ;;  %s5163_s6 = inlined_call_operand.vmem [shape: f32[32,12], index: 6, kind: input, shape index: {}]   ;;  %s5164_s7 = inlined_call_operand.vmem [shape: f32[1,12], index: 7, kind: input, shape index: {}]   ;;  %s5165_s8 = inlined_call_operand.vmem [shape: f32[12,12], index: 8, kind: input, shape index: {}]   ;;  %s5166_s9 = inlined_call_operand.vmem [shape: f32[1,12], index: 9, kind: input, shape index: {}]   ;;  %s5167_s10 = inlined_call_operand.vmem [shape: f32[64,12], index: 10, kind: input, shape index: {}]   ;;  %s5168_s11 = inlined_call_operand.vmem [shape: f32[64,1], index: 11, kind: input, shape index: {}]   ;;  %s5169_s12 = inlined_call_operand.vmem [shape: f32[64,1], index: 12, kind: input, shape index: {}]   ;;  %s5170_s13 = inlined_call_operand.hbm [shape: f32[1,1], index: 13, kind: output, shape index: {}]  }
   0x1   :  { %v89_v0 = vld [vmem:[%s5158_s1 + $0x8] sm:$0xff]  ;;  %v91_v1 = vld [vmem:[%s5158_s1 + $0x18] sm:$0xff]  ;;  %v88_v2 = vld [vmem:[%s5158_s1] sm:$0xff]  ;;  %235 = vmatprep.mubr.f32.mxu1 %v4115_v7  ;;  %199 = vmatprep.mubr.f32.mxu0 %v4115_v7 }
   0x2   :  { %v3751_v3 = vpack.c.bf16 %v91_v1, %v89_v0  ;;  %v90_v4 = vld [vmem:[%s5158_s1 + $0x10] sm:$0xff]  ;;  %v93_v5 = vld [vmem:[%s5158_s1 + $0x28] sm:$0xff]  ;;  %v95_v6 = vld [vmem:[%s5158_s1 + $0x38] sm:$0xff] }
   0x3   :  { %v3753_v8 = vpack.c.bf16 %v90_v4, %v88_v2  ;;  %v3755_v9 = vpack.c.bf16 %v95_v6, %v93_v5  ;;  %v92_v10 = vld [vmem:[%s5158_s1 + $0x20] sm:$0xff]  ;;  %v94_v11 = vld [vmem:[%s5158_s1 + $0x30] sm:$0xff]  ;;  %v97_v13 = vld [vmem:[%s5158_s1 + $0x48] sm:$0xff] }
   0x4   :  { %3903 = vmatprep.subr.bf16.mxu1 %v3751_v3  ;;  %3752 = vmatprep.subr.bf16.mxu0 %v3751_v3  ;;  %v3757_v12 = vpack.c.bf16 %v94_v11, %v92_v10  ;;  %v72_v14 = vld [vmem:[%s5160_s3] sm:$0xff]  ;;  %v73_v15 = vld [vmem:[%s5160_s3 + $0x8] sm:$0xff] }
   0x5   :  { %3906 = vmatpush1.bf16.msra.mxu1 %v3753_v8  ;;  %3754 = vmatpush1.bf16.msra.mxu0 %v3753_v8 }
   0x6   :  { %3904 = vmatprep.subr.bf16.mxu1 %v3755_v9  ;;  %3756 = vmatprep.subr.bf16.mxu0 %v3755_v9 }
   0x7   :  { %18 = vsyncpa [#allocation3], 0  ;;  %v96_v16 = vld [vmem:[%s5158_s1 + $0x40] sm:$0xff]  ;;  %v86_v17 = vld [vmem:[%s5157_s0 + $0x30] sm:$0xff]  ;;  %vm110_vm0 = vcmask 326656   ;;  %v4234_v18 = vpack.c.bf16 %v73_v15, %v72_v14  ;;  %v4116_v24 = vmov 0.0|0.0   ;;  %v100_v32 = vlaneseq }
   0x8   :  { %v74_v19 = vld [vmem:[%s5160_s3 + $0x10] sm:$0xff]  ;;  %v75_v20 = vld [vmem:[%s5160_s3 + $0x18] sm:$0xff]  ;;  %v80_v21 = vld [vmem:[%s5157_s0] sm:$0xff]  ;;  %vm4117_vm1 = vmmov 0   ;;  %v4118_v31 = vmov 0   ;;  %s4120_s17 = smov 32  }
   0x9   :  { %3907 = vmatpush1.bf16.msra.mxu1 %v3757_v12  ;;  %3758 = vmatpush1.bf16.msra.mxu0 %v3757_v12  ;;  %v76_v22 = vld [vmem:[%s5161_s4] sm:$0xff]  ;;  %v77_v23 = vld [vmem:[%s5161_s4 + $0x8] sm:$0xff]  ;;  %v87_v25 = vld [vmem:[%s5157_s0 + $0x38] sm:$0xff]  ;;  %v4258_v26 = vpack.c.bf16 %v75_v20, %v74_v19  ;;  %v4299_v33 = vshrl.u32 %v100_v32, 7  ;;  %vm248_vm2 = vcmask 261120   ;;  %vm2254_vm3 = vcmask 97280  }
   0xa   :  { %3905 = vmatprep.subr.mxu1 %v97_v13  ;;  %143 = vmatprep.subr.mxu0 %v97_v13  ;;  %v4262_v27 = vpack.c.bf16 %v77_v23, %v76_v22  ;;  %v78_v28 = vld [vmem:[%s5161_s4 + $0x10] sm:$0xff]  ;;  %v79_v29 = vld [vmem:[%s5161_s4 + $0x18] sm:$0xff]  ;;  %v98_v35 = vld [vmem:[%s5159_s2] sm:$0x3]  ;;  %s4119_s2 = smov 64   ;;  %vm2264_vm4 = vcmask 1043456  }
   0xb   :  { %v4278_v30 = vpack.c.bf16 %v79_v29, %v78_v28  ;;  %3925 = vset.pattern.permute.xlu0 %v4118_v31  ;;  %3926 = vset.pattern.permute.xlu1 %v4118_v31  ;;  %v102_v34 = vsub.s32 0, %v4299_v33  ;;  %v106_v45 = vsub.s32 1, %v4299_v33  ;;  %v52_v55 = vld [vmem:[%s5168_s11 + $0x38] sm:$0xff]  ;;  %v81_v13 = vld [vmem:[%s5157_s0 + $0x8] sm:$0xff]  ;;  %vm4121_vm5 = vmmov 1  }
   0xc   :  { %v448_v4 = vsub.f32 1.0, %v52_v55  ;;  %vm4812_vm6 = vmpackc.low %vm2264_vm4, %vm4121_vm5 }
   0xd   :  { %3908 = vmatpush1.msra.mxu1 %v96_v16  ;;  %144 = vmatpush1.msra.mxu0 %v96_v16  ;;  %v4309_v39 = vrot.slane %v98_v35, %v102_v34  ;;  %v4317_v48 = vrot.slane %v98_v35, %v106_v45 }
   0xe   :  { %3255 = vmatmul.mubr.msk.f32.vlgmr.msra.gmra.mrb[0].mxu1 %vm110_vm0, %v86_v17  ;;  %3759 = vmatprep.subr.bf16.mxu1 %v4116_v24 }
   0xf   :  { %3761 = vmatpush3.bf16.msra.mxu1 %v4234_v18  ;;  %241 = vmatprep.mubr.f32.mxu1 %v4115_v7 }
  0x10   :  { %3762 = vmatprep.subr.bf16.mxu1 %v4116_v24  ;;  %3249 = vmatmul.mubr.msk.f32.vlgmr.msra.gmra.mrb[0].mxu0 %vm110_vm0, %v80_v21 }
  0x11   :  { %205 = vmatprep.mubr.f32.mxu0 %v4115_v7  ;;  %3789 = vmatprep.subr.bf16.mxu0 %v4116_v24 }
  0x12   :  { %3256 = vmatmul.mubr.msk.f32.gmra.mrb[2].mxu1 %vm110_vm0, %v87_v25  ;;  %3791 = vmatpush3.bf16.msra.mxu0 %v4262_v27 }
  0x13   :  { %3764 = vmatpush3.bf16.msra.mxu1 %v4258_v26  ;;  %3469 = vmatprep.mubr.msk.f32.mxu1 %vm4117_vm1, %v4115_v7 }
  0x14   :  { %3765 = vmatprep.subr.bf16.mxu1 %v4116_v24  ;;  %3792 = vmatprep.subr.bf16.mxu0 %v4116_v24 }
  0x15   :  { %3250 = vmatmul.mubr.msk.f32.gmra.mrb[2].mxu0 %vm110_vm0, %v81_v13 }
  0x16   :  { %3470 = vmatmul.mubr.f32.vlgmr.msra.gmra.mrb[4].mxu1 %v4115_v7  ;;  %3794 = vmatpush3.bf16.msra.mxu0 %v4278_v30 }
  0x17   :  { %3767 = vmatpush3.bf16.msra.mxu1 %v4262_v27  ;;  %3480 = vmatprep.mubr.msk.f32.mxu1 %vm4117_vm1, %v4115_v7 }
  0x18   :  { %3768 = vmatprep.subr.bf16.mxu1 %v4116_v24  ;;  %3801 = vmatprep.subr.bf16.mxu0 %v4116_v24 }
  0x19   :  { %211 = vmatprep.mubr.f32.mxu0 %v4115_v7 }
  0x1b   :  { %3770 = vmatpush3.bf16.msra.mxu1 %v4278_v30 }
  0x1c   :  { %3771 = vmatprep.subr.bf16.mxu1 %v4116_v24 }
  0x1e   :  { %3481 = vmatmul.mubr.f32.vlgmr.msra.gmra.mrb[6].mxu1 %v4115_v7 }
  0x1f   :  { %3773 = vmatpush3.bf16.msra.mxu1 %v4234_v18  ;;  %3491 = vmatprep.mubr.msk.f32.mxu1 %vm4117_vm1, %v4115_v7 }
  0x20   :  { %3774 = vmatprep.subr.bf16.mxu1 %v4116_v24 }
  0x23   :  { %3776 = vmatpush3.bf16.msra.mxu1 %v4258_v26 }
  0x24   :  { %3777 = vmatprep.subr.bf16.mxu1 %v4116_v24 }
  0xe1   :  { %v4305_v36 = vpop.f32.mrb[0].mxu1 }
  0xe2   :  { %v4307_v37 = vpop.f32.mrb[1].mxu1 }
  0xe3   :  { %v201_v38 = vpop.f32.mrb[0].mxu0 }
  0xe4   :  { %v4311_v40 = vpop.f32.mrb[1].mxu0  ;;  %v202_v43 = vadd.f32 %v201_v38, %v4309_v39 }
  0xe5   :  { %v4313_v41 = vpop.f32.mrb[2].mxu1 }
  0xe6   :  { %v245_v42 = vpop.f32.mrb[3].mxu1 }
  0xe7   :  { %v246_v49 = vadd.f32 %v245_v42, %v4317_v48 }
  0xe8   :  { %v207_v28 = vpop.f32.mrb[2].mxu0 }
  0xe9   :  { %v318_v44 = vpop.f32.mrb[4].mxu1  ;;  %v208_v34 = vadd.f32 %v207_v28, %v4309_v39 }
  0xea   :  { %v392_v46 = vadd.f32 %v318_v44, %v202_v43  ;;  %v3471_v47 = vpop.f32.mrb[5].mxu1  ;;  %v240_v43 = vadd.f32 %v4307_v37, %v4317_v48 }
  0xec   :  { %3927 = vtanh.f32 %v392_v46  ;;  %v3257_v56 = vmul.f32 -1.442695, %v392_v46 }
  0xf1   :  { %v388_v50 = vpop.f32.mrb[6].mxu1 }
  0xf2   :  { %v393_v51 = vadd.f32 %v388_v50, %v246_v49  ;;  %v3482_v52 = vpop.f32.mrb[7].mxu1  ;;  %v51_v49 = vld [vmem:[%s5168_s11 + $0x30] sm:$0xff] }
  0xf4   :  { %3929 = vtanh.f32 %v393_v51  ;;  %v3258_v57 = vmul.f32 -1.442695, %v393_v51 }
  0xf5   :  { %3931 = vpow2.f32 %v3257_v56 }
  0xf6   :  { %v3928_v53 = vpop.eup %3927  ;;  %3933 = vpow2.f32 %v3258_v57 }
  0xf7   :  { %403 = vrot.lane.b32.xlu0 %v3928_v53, %s4119_s2 }
  0xfe   :  { %v3930_v54 = vpop.eup %3929 }
  0xff   :  { %427 = vrot.lane.b32.xlu0 %v3930_v54, %s4119_s2  ;;  %v3932_v58 = vpop.eup %3931 }
 0x100   :  { %v397_v59 = vadd.f32 1.0, %v3932_v58  ;;  %v3934_v60 = vpop.eup %3933 }
 0x101   :  { %v421_v61 = vadd.f32 1.0, %v3934_v60 }
 0x102   :  { %3935 = vrcp.f32 %v397_v59 }
 0x103   :  { %444 = vperm.xlu0 %3925, %v52_v55   ;;  %3937 = vrcp.f32 %v421_v61  ;;  %v664_v55 = vsub.f32 1.0, %v51_v49  ;;  %v82_v61 = vld [vmem:[%s5157_s0 + $0x10] sm:$0xff] }
 0x104   :  { %3251 = vmatmul.mubr.msk.f32.gmra.mrb[4].mxu0 %vm110_vm0, %v82_v61 }
 0x105   :  { %217 = vmatprep.mubr.f32.mxu0 %v4115_v7 }
 0x10c   :  { %v3936_v62 = vpop.eup %3935 }
 0x10d   :  { %v3938_v1 = vpop.eup %3937  ;;  %v401_v5 = vmul.f32 0.0, %v3936_v62 }
 0x10e   :  { %v425_v9 = vmul.f32 0.0, %v3938_v1 }
 0x169   :  { %v404_v63 = vpop.permute.xlu0 %403 }
 0x16a   :  { %v406_v0 = vmul.f32 %v3936_v62, %v404_v63  ;;  %v83_v63 = vld [vmem:[%s5157_s0 + $0x18] sm:$0xff] }
 0x16b   :  { %3252 = vmatmul.mubr.msk.f32.gmra.mrb[6].mxu0 %vm110_vm0, %v83_v63 }
 0x16c   :  { %408 = vrot.lane.b32.xlu1 %v406_v0, %s4120_s17  ;;  %223 = vmatprep.mubr.f32.mxu0 %v4115_v7  ;;  %v84_v0 = vld [vmem:[%s5157_s0 + $0x20] sm:$0xff] }
 0x16f   :  { %3253 = vmatmul.mubr.msk.f32.gmra.mrb[8].mxu0 %vm110_vm0, %v84_v0 }
 0x170   :  { %229 = vmatprep.mubr.f32.mxu0 %v4115_v7 }
 0x171   :  { %v428_v2 = vpop.permute.xlu0 %427 }
 0x172   :  { %v430_v3 = vmul.f32 %v3938_v1, %v428_v2 }
 0x174   :  { %432 = vrot.lane.b32.xlu1 %v430_v3, %s4120_s17 }
 0x178   :  { %451 = vperm.xlu1 %3926, %v448_v4  }
 0x182   :  { %v445_v19 = vpop.permute.xlu0 %444 }
 0x1de   :  { %v409_v6 = vpop.permute.xlu1 %408 }
 0x1df   :  { %v4327_v8 = vadd.f32 %v409_v6, %v401_v5 }
 0x1e1   :  { %3939 = vtanh.f32 %v4327_v8 }
 0x1e6   :  { %v433_v10 = vpop.permute.xlu1 %432 }
 0x1e7   :  { %v435_v11 = vadd.f32 %v433_v10, %v425_v9 }
 0x1e9   :  { %3941 = vtanh.f32 %v435_v11  ;;  %v456_v56 = vmul.f32 %v445_v19, %v435_v11 }
 0x1eb   :  { %v3940_v12 = vpop.eup %3939 }
 0x1ec   :  { %414 = vrot.lane.b32.xlu1 %v3940_v12, %s4119_s2 }
 0x1f3   :  { %v3942_v14 = vpop.eup %3941 }
 0x1f4   :  { %438 = vrot.lane.b32.xlu0 %v3942_v14, %s4119_s2 }
 0x1f7   :  { %v452_v15 = vpop.permute.xlu1 %451 }
 0x1f8   :  { %v454_v22 = vmul.f32 0.0, %v452_v15 }
 0x1fa   :  { %v4370_v57 = vadd.f32 %v456_v56, %v454_v22 }
 0x25e   :  { %v415_v16 = vpop.permute.xlu1 %414 }
 0x25f   :  { %v417_v17 = vmul.f32 %v3936_v62, %v415_v16 }
 0x261   :  { %459 = vrot.lane.b32.xlu1 %v417_v17, %s4120_s17 }
 0x266   :  { %v439_v20 = vpop.permute.xlu0 %438 }
 0x267   :  { %v4338_v21 = vmul.f32 %v3938_v1, %v439_v20  ;;  %v85_v1 = vld [vmem:[%s5157_s0 + $0x28] sm:$0xff] }
 0x268   :  { %3254 = vmatmul.mubr.msk.f32.gmra.mrb[10].mxu0 %vm110_vm0, %v85_v1 }
 0x269   :  { %v447_v23 = vmul.f32 %v445_v19, %v4338_v21  ;;  %3524 = vmatprep.mubr.msk.f32.mxu0 %vm4117_vm1, %v4115_v7  ;;  %v50_v19 = vld [vmem:[%s5168_s11 + $0x28] sm:$0xff] }
 0x26b   :  { %v4341_v25 = vadd.f32 %v454_v22, %v447_v23  ;;  %v881_v22 = vsub.f32 1.0, %v50_v19  ;;  %v4424_v23 = vpop.f32.mrb[3].mxu0 }
 0x26d   :  { %534 = vrot.lane.b32.xlu0 %v4341_v25, %s4120_s17 }
 0x2d3   :  { %v4345_v29 = vpop.permute.xlu1 %459 }
 0x2d4   :  { %3492 = vmatmul.mubr.msk.f32.vlgmr.msra.gmra.mrb[8].mxu1 %vm248_vm2, %v4345_v29 }
 0x2d5   :  { %3779 = vmatpush3.bf16.msra.mxu1 %v4262_v27  ;;  %3502 = vmatprep.mubr.msk.f32.mxu1 %vm4117_vm1, %v4115_v7 }
 0x2d6   :  { %3780 = vmatprep.subr.bf16.mxu1 %v4116_v24 }
 0x2d9   :  { %3782 = vmatpush3.bf16.msra.mxu1 %v4278_v30 }
 0x2da   :  { %3783 = vmatprep.subr.bf16.mxu1 %v4116_v24 }
 0x2df   :  { %v535_v32 = vpop.permute.xlu0 %534 }
 0x2e0   :  { %3503 = vmatmul.mubr.msk.f32.vlgmr.msra.gmra.mrb[10].mxu1 %vm248_vm2, %v535_v32 }
 0x2e1   :  { %3785 = vmatpush3.bf16.msra.mxu1 %v4234_v18  ;;  %3513 = vmatprep.mubr.msk.f32.mxu1 %vm4117_vm1, %v4115_v7 }
 0x2e2   :  { %3786 = vmatprep.subr.bf16.mxu1 %v4116_v24 }
 0x2e5   :  { %3788 = vmatpush3.bf16.msra.mxu1 %v4258_v26 }
 0x2e6   :  { %3795 = vmatprep.subr.bf16.mxu1 %v4116_v24 }
 0x3a7   :  { %v529_v35 = vpop.f32.mrb[8].mxu1 }
 0x3a8   :  { %v608_v38 = vadd.f32 %v529_v35, %v208_v34  ;;  %v3493_v42 = vpop.f32.mrb[9].mxu1 }
 0x3aa   :  { %v3261_v12 = vmul.f32 -1.442695, %v608_v38 }
 0x3b3   :  { %v604_v44 = vpop.f32.mrb[10].mxu1 }
 0x3b4   :  { %v609_v45 = vadd.f32 %v604_v44, %v240_v43  ;;  %v3504_v46 = vpop.f32.mrb[11].mxu1 }
 0x3b6   :  { %3943 = vtanh.f32 %v609_v45  ;;  %v3262_v50 = vmul.f32 -1.442695, %v609_v45 }
 0x3b8   :  { %3945 = vpow2.f32 %v3262_v50 }
 0x3c0   :  { %v3944_v47 = vpop.eup %3943 }
 0x3c1   :  { %643 = vrot.lane.b32.xlu1 %v3944_v47, %s4119_s2 }
 0x3c2   :  { %v3946_v51 = vpop.eup %3945 }
 0x3c3   :  { %v637_v52 = vadd.f32 1.0, %v3946_v51 }
 0x3c5   :  { %660 = vperm.xlu1 %3926, %v51_v49   ;;  %3947 = vrcp.f32 %v637_v52 }
 0x3cf   :  { %v3948_v53 = vpop.eup %3947 }
 0x3d0   :  { %v641_v58 = vmul.f32 %v3948_v53, %v4370_v57 }
 0x433   :  { %v644_v54 = vpop.permute.xlu1 %643 }
 0x434   :  { %v646_v37 = vmul.f32 %v3948_v53, %v644_v54 }
 0x436   :  { %648 = vrot.lane.b32.xlu0 %v646_v37, %s4120_s17 }
 0x43a   :  { %667 = vperm.xlu0 %3925, %v664_v55  }
 0x444   :  { %v4398_v2 = vpop.permute.xlu1 %660 }
 0x4a8   :  { %v649_v59 = vpop.permute.xlu0 %648 }
 0x4a9   :  { %v4373_v60 = vadd.f32 %v649_v59, %v641_v58 }
 0x4ab   :  { %3949 = vtanh.f32 %v4373_v60  ;;  %v672_v1 = vmul.f32 %v4398_v2, %v4373_v60 }
 0x4ac   :  { %3951 = vtanh.f32 %v608_v38 }
 0x4ad   :  { %3953 = vpow2.f32 %v3261_v12 }
 0x4b5   :  { %v3950_v62 = vpop.eup %3949 }
 0x4b6   :  { %654 = vrot.lane.b32.xlu1 %v3950_v62, %s4119_s2  ;;  %v3952_v11 = vpop.eup %3951 }
 0x4b7   :  { %v3954_v13 = vpop.eup %3953 }
 0x4b8   :  { %v613_v14 = vadd.f32 1.0, %v3954_v13 }
 0x4b9   :  { %v4400_v3 = vpop.permute.xlu0 %667 }
 0x4ba   :  { %v670_v6 = vmul.f32 %v4400_v3, %v4341_v25  ;;  %3955 = vrcp.f32 %v613_v14  ;;  %v213_v25 = vpop.f32.mrb[4].mxu0  ;;  %v673_v0 = vmul.f32 %v4400_v3, %v4370_v57 }
 0x4bb   :  { %v4426_v28 = vpop.f32.mrb[5].mxu0  ;;  %v214_v13 = vadd.f32 %v213_v25, %v4309_v39 }
 0x4bc   :  { %v4428_v32 = vpop.f32.mrb[6].mxu0 }
 0x4bd   :  { %v4430_v34 = vpop.f32.mrb[7].mxu0 }
 0x4be   :  { %v4432_v35 = vpop.f32.mrb[8].mxu0 }
 0x4bf   :  { %v4434_v38 = vpop.f32.mrb[9].mxu0 }
 0x4c0   :  { %v4436_v42 = vpop.f32.mrb[10].mxu0 }
 0x4c1   :  { %v233_v43 = vpop.f32.mrb[11].mxu0 }
 0x4c2   :  { %v234_v49 = vadd.f32 %v233_v43, %v4317_v48 }
 0x4c4   :  { %v3956_v16 = vpop.eup %3955 }
 0x4c5   :  { %v617_v44 = vmul.f32 %v3956_v16, %v4327_v8 }
 0x528   :  { %v655_v4 = vpop.permute.xlu1 %654 }
 0x529   :  { %v4402_v5 = vmul.f32 %v3948_v53, %v655_v4  ;;  %v4463_v4 = vadd.f32 %v673_v0, %v672_v1 }
 0x52b   :  { %v663_v9 = vmul.f32 %v4398_v2, %v4402_v5 }
 0x52d   :  { %v4408_v10 = vadd.f32 %v670_v6, %v663_v9 }
 0x52f   :  { %751 = vrot.lane.b32.xlu0 %v4408_v10, %s4120_s17 }
 0x533   :  { %619 = vrot.lane.b32.xlu0 %v3952_v11, %s4119_s2 }
 0x5a1   :  { %v752_v15 = vpop.permute.xlu0 %751 }
 0x5a2   :  { %3525 = vmatmul.mubr.msk.f32.vlgmr.msra.gmra.mrb[12].mxu0 %vm248_vm2, %v752_v15 }
 0x5a3   :  { %3803 = vmatpush3.bf16.msra.mxu0 %v4262_v27  ;;  %3546 = vmatprep.mubr.msk.f32.mxu0 %vm4117_vm1, %v4115_v7 }
 0x5a4   :  { %3804 = vmatprep.subr.bf16.mxu0 %v4116_v24 }
 0x5a5   :  { %v620_v17 = vpop.permute.xlu0 %619 }
 0x5a6   :  { %v622_v20 = vmul.f32 %v3956_v16, %v620_v17 }
 0x5a7   :  { %3806 = vmatpush3.bf16.msra.mxu0 %v4278_v30 }
 0x5a8   :  { %624 = vrot.lane.b32.xlu0 %v622_v20, %s4120_s17  ;;  %3813 = vmatprep.subr.bf16.mxu0 %v4116_v24 }
 0x5ac   :  { %884 = vperm.xlu0 %3925, %v881_v22  }
 0x61a   :  { %v625_v45 = vpop.permute.xlu0 %624 }
 0x61b   :  { %v4439_v46 = vadd.f32 %v625_v45, %v617_v44 }
 0x61d   :  { %3957 = vtanh.f32 %v4439_v46 }
 0x627   :  { %v3958_v47 = vpop.eup %3957 }
 0x628   :  { %630 = vrot.lane.b32.xlu0 %v3958_v47, %s4119_s2 }
 0x62b   :  { %v4445_v54 = vpop.permute.xlu0 %884 }
 0x675   :  { %v821_v50 = vpop.f32.mrb[12].mxu0 }
 0x676   :  { %v826_v51 = vadd.f32 %v821_v50, %v234_v49  ;;  %v3526_v52 = vpop.f32.mrb[13].mxu0 }
 0x678   :  { %3959 = vtanh.f32 %v826_v51  ;;  %v3266_v55 = vmul.f32 -1.442695, %v826_v51 }
 0x67a   :  { %3961 = vpow2.f32 %v3266_v55 }
 0x682   :  { %v3960_v53 = vpop.eup %3959 }
 0x683   :  { %860 = vrot.lane.b32.xlu1 %v3960_v53, %s4119_s2 }
 0x684   :  { %v3962_v56 = vpop.eup %3961 }
 0x685   :  { %v854_v58 = vadd.f32 1.0, %v3962_v56 }
 0x687   :  { %3963 = vrcp.f32 %v854_v58 }
 0x691   :  { %v3964_v59 = vpop.eup %3963 }
 0x692   :  { %v858_v6 = vmul.f32 %v3964_v59, %v4463_v4 }
 0x69a   :  { %v631_v8 = vpop.permute.xlu0 %630 }
 0x69b   :  { %v633_v37 = vmul.f32 %v3956_v16, %v631_v8  ;;  %v887_v16 = vmul.f32 %v4445_v54, %v4408_v10  ;;  %v49_v10 = vld [vmem:[%s5168_s11 + $0x20] sm:$0xff] }
 0x69c   :  { %v1098_v50 = vsub.f32 1.0, %v49_v10 }
 0x69d   :  { %676 = vrot.lane.b32.xlu0 %v633_v37, %s4120_s17  ;;  %v228_v37 = vadd.f32 %v4434_v38, %v4317_v48 }
 0x6f5   :  { %v861_v61 = vpop.permute.xlu1 %860 }
 0x6f6   :  { %v863_v62 = vmul.f32 %v3964_v59, %v861_v61 }
 0x6f8   :  { %865 = vrot.lane.b32.xlu1 %v863_v62, %s4120_s17 }
 0x6fc   :  { %877 = vperm.xlu1 %3926, %v50_v19  }
 0x70f   :  { %v4449_v63 = vpop.permute.xlu0 %676 }
 0x710   :  { %3514 = vmatmul.mubr.msk.f32.vlgmr.msra.gmra.mrb[12].mxu1 %vm248_vm2, %v4449_v63 }
 0x711   :  { %3797 = vmatpush3.bf16.msra.mxu1 %v4234_v18  ;;  %3535 = vmatprep.mubr.msk.f32.mxu1 %vm4117_vm1, %v4115_v7 }
 0x712   :  { %3798 = vmatprep.subr.bf16.mxu1 %v4116_v24 }
 0x715   :  { %3800 = vmatpush3.bf16.msra.mxu1 %v4258_v26 }
 0x716   :  { %3807 = vmatprep.subr.bf16.mxu1 %v4116_v24 }
 0x76a   :  { %v866_v9 = vpop.permute.xlu1 %865 }
 0x76b   :  { %v4466_v11 = vadd.f32 %v866_v9, %v858_v6 }
 0x76d   :  { %3965 = vtanh.f32 %v4466_v11 }
 0x777   :  { %v3966_v12 = vpop.eup %3965 }
 0x778   :  { %871 = vrot.lane.b32.xlu1 %v3966_v12, %s4119_s2 }
 0x77b   :  { %v4471_v3 = vpop.permute.xlu1 %877 }
 0x7e3   :  { %v746_v14 = vpop.f32.mrb[12].mxu1 }
 0x7e4   :  { %v825_v15 = vadd.f32 %v746_v14, %v214_v13  ;;  %v3515_v57 = vpop.f32.mrb[13].mxu1  ;;  %v889_v14 = vmul.f32 %v4471_v3, %v4466_v11 }
 0x7e6   :  { %3967 = vtanh.f32 %v825_v15  ;;  %v3265_v22 = vmul.f32 -1.442695, %v825_v15  ;;  %v890_v15 = vmul.f32 %v4445_v54, %v4463_v4 }
 0x7e8   :  { %3969 = vpow2.f32 %v3265_v22  ;;  %v4521_v57 = vadd.f32 %v890_v15, %v889_v14  ;;  %v220_v22 = vadd.f32 %v4428_v32, %v4309_v39 }
 0x7ea   :  { %v872_v60 = vpop.permute.xlu1 %871 }
 0x7eb   :  { %v4473_v2 = vmul.f32 %v3964_v59, %v872_v60 }
 0x7ed   :  { %v880_v17 = vmul.f32 %v4471_v3, %v4473_v2 }
 0x7ef   :  { %v4479_v19 = vadd.f32 %v887_v16, %v880_v17 }
 0x7f0   :  { %v3968_v20 = vpop.eup %3967 }
 0x7f1   :  { %968 = vrot.lane.b32.xlu1 %v4479_v19, %s4120_s17  ;;  %836 = vrot.lane.b32.xlu0 %v3968_v20, %s4119_s2 }
 0x7f2   :  { %v3970_v25 = vpop.eup %3969 }
 0x7f3   :  { %v830_v43 = vadd.f32 1.0, %v3970_v25 }
 0x7f5   :  { %3971 = vrcp.f32 %v830_v43 }
 0x7ff   :  { %v3972_v44 = vpop.eup %3971 }
 0x800   :  { %v834_v51 = vmul.f32 %v3972_v44, %v4439_v46 }
 0x863   :  { %v969_v45 = vpop.permute.xlu1 %968  ;;  %v837_v47 = vpop.permute.xlu0 %836 }
 0x864   :  { %v839_v49 = vmul.f32 %v3972_v44, %v837_v47  ;;  %3547 = vmatmul.mubr.msk.f32.vlgmr.msra.gmra.mrb[14].mxu0 %vm248_vm2, %v969_v45 }
 0x865   :  { %3815 = vmatpush3.bf16.msra.mxu0 %v4262_v27  ;;  %3568 = vmatprep.mubr.msk.f32.mxu0 %vm4117_vm1, %v4115_v7 }
 0x866   :  { %841 = vrot.lane.b32.xlu0 %v839_v49, %s4120_s17  ;;  %3816 = vmatprep.subr.bf16.mxu0 %v4116_v24 }
 0x869   :  { %3818 = vmatpush3.bf16.msra.mxu0 %v4278_v30 }
 0x86a   :  { %1101 = vperm.xlu0 %3925, %v1098_v50   ;;  %3825 = vmatprep.subr.bf16.mxu0 %v4116_v24 }
 0x8d8   :  { %v842_v52 = vpop.permute.xlu0 %841 }
 0x8d9   :  { %v4496_v53 = vadd.f32 %v842_v52, %v834_v51 }
 0x8db   :  { %3973 = vtanh.f32 %v4496_v53 }
 0x8e5   :  { %v3974_v8 = vpop.eup %3973 }
 0x8e6   :  { %847 = vrot.lane.b32.xlu0 %v3974_v8, %s4119_s2 }
 0x8e9   :  { %v4503_v61 = vpop.permute.xlu0 %1101 }
 0x8ea   :  { %v1104_v45 = vmul.f32 %v4503_v61, %v4479_v19  ;;  %v48_v19 = vld [vmem:[%s5168_s11 + $0x18] sm:$0xff] }
 0x937   :  { %v1038_v55 = vpop.f32.mrb[14].mxu0 }
 0x938   :  { %v1043_v56 = vadd.f32 %v1038_v55, %v228_v37  ;;  %v3548_v58 = vpop.f32.mrb[15].mxu0  ;;  %v1315_v37 = vsub.f32 1.0, %v48_v19 }
 0x93a   :  { %3975 = vtanh.f32 %v1043_v56  ;;  %v3270_v0 = vmul.f32 -1.442695, %v1043_v56 }
 0x93c   :  { %3977 = vpow2.f32 %v3270_v0 }
 0x944   :  { %v3976_v59 = vpop.eup %3975 }
 0x945   :  { %1077 = vrot.lane.b32.xlu1 %v3976_v59, %s4119_s2 }
 0x946   :  { %v3978_v1 = vpop.eup %3977 }
 0x947   :  { %v1071_v6 = vadd.f32 1.0, %v3978_v1 }
 0x949   :  { %3979 = vrcp.f32 %v1071_v6 }
 0x953   :  { %v3980_v9 = vpop.eup %3979 }
 0x954   :  { %v1075_v60 = vmul.f32 %v3980_v9, %v4521_v57 }
 0x958   :  { %v848_v46 = vpop.permute.xlu0 %847 }
 0x959   :  { %v850_v62 = vmul.f32 %v3972_v44, %v848_v46 }
 0x95b   :  { %893 = vrot.lane.b32.xlu0 %v850_v62, %s4120_s17  ;;  %v222_v62 = vadd.f32 %v4430_v34, %v4317_v48 }
 0x9b7   :  { %v1078_v38 = vpop.permute.xlu1 %1077 }
 0x9b8   :  { %v1080_v12 = vmul.f32 %v3980_v9, %v1078_v38 }
 0x9ba   :  { %1082 = vrot.lane.b32.xlu1 %v1080_v12, %s4120_s17 }
 0x9be   :  { %1094 = vperm.xlu1 %3926, %v49_v10  }
 0x9cd   :  { %v4507_v13 = vpop.permute.xlu0 %893 }
 0x9ce   :  { %3536 = vmatmul.mubr.msk.f32.vlgmr.msra.gmra.mrb[14].mxu1 %vm248_vm2, %v4507_v13 }
 0x9cf   :  { %3809 = vmatpush3.bf16.msra.mxu1 %v4234_v18  ;;  %3557 = vmatprep.mubr.msk.f32.mxu1 %vm4117_vm1, %v4115_v7 }
 0x9d0   :  { %3810 = vmatprep.subr.bf16.mxu1 %v4116_v24 }
 0x9d3   :  { %3812 = vmatpush3.bf16.msra.mxu1 %v4258_v26 }
 0x9d4   :  { %3819 = vmatprep.subr.bf16.mxu1 %v4116_v24 }
 0xa2c   :  { %v1083_v16 = vpop.permute.xlu1 %1082 }
 0xa2d   :  { %v4524_v17 = vadd.f32 %v1083_v16, %v1075_v60 }
 0xa2f   :  { %3981 = vtanh.f32 %v4524_v17 }
 0xa39   :  { %v3982_v20 = vpop.eup %3981 }
 0xa3a   :  { %1088 = vrot.lane.b32.xlu1 %v3982_v20, %s4119_s2 }
 0xa3d   :  { %v1095_v54 = vpop.permute.xlu1 %1094 }
 0xaa1   :  { %v963_v25 = vpop.f32.mrb[14].mxu1 }
 0xaa2   :  { %v1042_v11 = vadd.f32 %v963_v25, %v220_v22  ;;  %v3537_v3 = vpop.f32.mrb[15].mxu1  ;;  %v1106_v25 = vmul.f32 %v1095_v54, %v4524_v17 }
 0xaa4   :  { %3983 = vtanh.f32 %v1042_v11  ;;  %v3269_v32 = vmul.f32 -1.442695, %v1042_v11  ;;  %v1107_v11 = vmul.f32 %v4503_v61, %v4521_v57 }
 0xaa6   :  { %3985 = vpow2.f32 %v3269_v32  ;;  %v4576_v3 = vadd.f32 %v1107_v11, %v1106_v25  ;;  %v226_v32 = vadd.f32 %v4432_v35, %v4309_v39 }
 0xaac   :  { %v1089_v4 = vpop.permute.xlu1 %1088 }
 0xaad   :  { %v4530_v43 = vmul.f32 %v3980_v9, %v1089_v4 }
 0xaae   :  { %v3984_v44 = vpop.eup %3983 }
 0xaaf   :  { %v1097_v47 = vmul.f32 %v1095_v54, %v4530_v43  ;;  %1053 = vrot.lane.b32.xlu0 %v3984_v44, %s4119_s2 }
 0xab0   :  { %v3986_v49 = vpop.eup %3985 }
 0xab1   :  { %v4536_v10 = vadd.f32 %v1104_v45, %v1097_v47  ;;  %v1047_v50 = vadd.f32 1.0, %v3986_v49 }
 0xab3   :  { %1185 = vrot.lane.b32.xlu1 %v4536_v10, %s4120_s17  ;;  %3987 = vrcp.f32 %v1047_v50 }
 0xabd   :  { %v3988_v51 = vpop.eup %3987 }
 0xabe   :  { %v1051_v56 = vmul.f32 %v3988_v51, %v4496_v53 }
 0xb21   :  { %v1054_v52 = vpop.permute.xlu0 %1053 }
 0xb22   :  { %v1056_v8 = vmul.f32 %v3988_v51, %v1054_v52 }
 0xb24   :  { %1058 = vrot.lane.b32.xlu0 %v1056_v8, %s4120_s17 }
 0xb25   :  { %v1186_v55 = vpop.permute.xlu1 %1185 }
 0xb26   :  { %3569 = vmatmul.mubr.msk.f32.vlgmr.msra.gmra.mrb[16].mxu0 %vm248_vm2, %v1186_v55 }
 0xb27   :  { %3827 = vmatpush3.bf16.msra.mxu0 %v4262_v27  ;;  %3590 = vmatprep.mubr.msk.f32.mxu0 %vm4117_vm1, %v4115_v7 }
 0xb28   :  { %1318 = vperm.xlu0 %3925, %v1315_v37   ;;  %3828 = vmatprep.subr.bf16.mxu0 %v4116_v24 }
 0xb2b   :  { %3830 = vmatpush3.bf16.msra.mxu0 %v4278_v30 }
 0xb2c   :  { %3837 = vmatprep.subr.bf16.mxu0 %v4116_v24 }
 0xb96   :  { %v1059_v58 = vpop.permute.xlu0 %1058 }
 0xb97   :  { %v4552_v59 = vadd.f32 %v1059_v58, %v1051_v56 }
 0xb99   :  { %3989 = vtanh.f32 %v4552_v59 }
 0xba3   :  { %v3990_v46 = vpop.eup %3989 }
 0xba4   :  { %1064 = vrot.lane.b32.xlu0 %v3990_v46, %s4119_s2  ;;  %v47_v46 = vld [vmem:[%s5168_s11 + $0x10] sm:$0xff] }
 0xba7   :  { %v4559_v38 = vpop.permute.xlu0 %1318 }
 0xba8   :  { %v1321_v52 = vmul.f32 %v4559_v38, %v4536_v10  ;;  %v1532_v10 = vsub.f32 1.0, %v47_v46 }
 0xbf9   :  { %v1255_v0 = vpop.f32.mrb[16].mxu0 }
 0xbfa   :  { %v1260_v1 = vadd.f32 %v1255_v0, %v222_v62  ;;  %v3570_v6 = vpop.f32.mrb[17].mxu0 }
 0xbfc   :  { %3991 = vtanh.f32 %v1260_v1  ;;  %v3274_v14 = vmul.f32 -1.442695, %v1260_v1 }
 0xbfe   :  { %3993 = vpow2.f32 %v3274_v14 }
 0xc06   :  { %v3992_v9 = vpop.eup %3991 }
 0xc07   :  { %1294 = vrot.lane.b32.xlu1 %v3992_v9, %s4119_s2 }
 0xc08   :  { %v3994_v15 = vpop.eup %3993 }
 0xc09   :  { %v1288_v60 = vadd.f32 1.0, %v3994_v15 }
 0xc0b   :  { %3995 = vrcp.f32 %v1288_v60 }
 0xc15   :  { %v3996_v16 = vpop.eup %3995 }
 0xc16   :  { %v1065_v53 = vpop.permute.xlu0 %1064  ;;  %v1292_v4 = vmul.f32 %v3996_v16, %v4576_v3 }
 0xc17   :  { %v1067_v12 = vmul.f32 %v3988_v51, %v1065_v53 }
 0xc19   :  { %1110 = vrot.lane.b32.xlu0 %v1067_v12, %s4120_s17  ;;  %v216_v12 = vadd.f32 %v4426_v28, %v4317_v48  ;;  %v1324_v28 = vmul.f32 %v4559_v38, %v4576_v3 }
 0xc79   :  { %v1295_v34 = vpop.permute.xlu1 %1294 }
 0xc7a   :  { %v1297_v20 = vmul.f32 %v3996_v16, %v1295_v34 }
 0xc7c   :  { %1299 = vrot.lane.b32.xlu1 %v1297_v20, %s4120_s17 }
 0xc80   :  { %1311 = vperm.xlu1 %3926, %v48_v19  }
 0xc8b   :  { %v4563_v22 = vpop.permute.xlu0 %1110 }
 0xc8c   :  { %3558 = vmatmul.mubr.msk.f32.vlgmr.msra.gmra.mrb[16].mxu1 %vm248_vm2, %v4563_v22 }
 0xc8d   :  { %3821 = vmatpush3.bf16.msra.mxu1 %v4234_v18  ;;  %3579 = vmatprep.mubr.msk.f32.mxu1 %vm4117_vm1, %v4115_v7 }
 0xc8e   :  { %3822 = vmatprep.subr.bf16.mxu1 %v4116_v24 }
 0xc91   :  { %3824 = vmatpush3.bf16.msra.mxu1 %v4258_v26 }
 0xc92   :  { %3831 = vmatprep.subr.bf16.mxu1 %v4116_v24 }
 0xcee   :  { %v1300_v44 = vpop.permute.xlu1 %1299 }
 0xcef   :  { %v1302_v45 = vadd.f32 %v1300_v44, %v1292_v4 }
 0xcf1   :  { %3997 = vtanh.f32 %v1302_v45 }
 0xcfb   :  { %v3998_v47 = vpop.eup %3997 }
 0xcfc   :  { %1305 = vrot.lane.b32.xlu1 %v3998_v47, %s4119_s2 }
 0xcff   :  { %v1312_v17 = vpop.permute.xlu1 %1311 }
 0xd00   :  { %v1323_v44 = vmul.f32 %v1312_v17, %v1302_v45 }
 0xd02   :  { %v4611_v47 = vadd.f32 %v1324_v28, %v1323_v44 }
 0xd5f   :  { %v1180_v49 = vpop.f32.mrb[16].mxu1 }
 0xd60   :  { %v1259_v50 = vadd.f32 %v1180_v49, %v226_v32  ;;  %v3559_v51 = vpop.f32.mrb[17].mxu1 }
 0xd62   :  { %3999 = vtanh.f32 %v1259_v50  ;;  %v3273_v35 = vmul.f32 -1.442695, %v1259_v50 }
 0xd64   :  { %4001 = vpow2.f32 %v3273_v35 }
 0xd6c   :  { %v4000_v54 = vpop.eup %3999 }
 0xd6d   :  { %1270 = vrot.lane.b32.xlu0 %v4000_v54, %s4119_s2 }
 0xd6e   :  { %v1306_v61 = vpop.permute.xlu1 %1305  ;;  %v4002_v37 = vpop.eup %4001 }
 0xd6f   :  { %v4583_v57 = vmul.f32 %v3996_v16, %v1306_v61  ;;  %v1264_v55 = vadd.f32 1.0, %v4002_v37 }
 0xd71   :  { %v1314_v19 = vmul.f32 %v1312_v17, %v4583_v57  ;;  %4003 = vrcp.f32 %v1264_v55  ;;  %v232_v55 = vadd.f32 %v4436_v42, %v4309_v39 }
 0xd73   :  { %v1322_v8 = vadd.f32 %v1321_v52, %v1314_v19 }
 0xd75   :  { %1402 = vrot.lane.b32.xlu1 %v1322_v8, %s4120_s17 }
 0xd7b   :  { %v4004_v56 = vpop.eup %4003 }
 0xd7c   :  { %v1268_v1 = vmul.f32 %v4004_v56, %v4552_v59 }
 0xddf   :  { %v1271_v58 = vpop.permute.xlu0 %1270 }
 0xde0   :  { %v1273_v62 = vmul.f32 %v4004_v56, %v1271_v58 }
 0xde2   :  { %1275 = vrot.lane.b32.xlu0 %v1273_v62, %s4120_s17 }
 0xde6   :  { %1535 = vperm.xlu0 %3925, %v1532_v10  }
 0xde7   :  { %v1403_v0 = vpop.permute.xlu1 %1402 }
 0xde8   :  { %3591 = vmatmul.mubr.msk.f32.vlgmr.msra.gmra.mrb[18].mxu0 %vm248_vm2, %v1403_v0 }
 0xde9   :  { %3839 = vmatpush3.bf16.msra.mxu0 %v4262_v27  ;;  %3612 = vmatprep.mubr.msk.f32.mxu0 %vm4117_vm1, %v4115_v7 }
 0xdea   :  { %3840 = vmatprep.subr.bf16.mxu0 %v4116_v24 }
 0xded   :  { %3842 = vmatpush3.bf16.msra.mxu0 %v4278_v30 }
 0xdee   :  { %3849 = vmatprep.subr.bf16.mxu0 %v4116_v24 }
 0xe54   :  { %v1276_v6 = vpop.permute.xlu0 %1275 }
 0xe55   :  { %v4601_v9 = vadd.f32 %v1276_v6, %v1268_v1  ;;  %v210_v1 = vadd.f32 %v4424_v23, %v4317_v48 }
 0xe57   :  { %4005 = vtanh.f32 %v4601_v9 }
 0xe61   :  { %v4006_v53 = vpop.eup %4005 }
 0xe62   :  { %1281 = vrot.lane.b32.xlu0 %v4006_v53, %s4119_s2 }
 0xe65   :  { %v4617_v51 = vpop.permute.xlu0 %1535 }
 0xe66   :  { %v1538_v17 = vmul.f32 %v4617_v51, %v1322_v8 }
 0xebb   :  { %v1472_v14 = vpop.f32.mrb[18].mxu0 }
 0xebc   :  { %v1477_v15 = vadd.f32 %v1472_v14, %v216_v12  ;;  %v3592_v60 = vpop.f32.mrb[19].mxu0 }
 0xebd   :  { %v46_v60 = vld [vmem:[%s5168_s11 + $0x8] sm:$0xff] }
 0xebe   :  { %4007 = vtanh.f32 %v1477_v15  ;;  %v3278_v34 = vmul.f32 -1.442695, %v1477_v15  ;;  %v1749_v28 = vsub.f32 1.0, %v46_v60 }
 0xec0   :  { %4009 = vpow2.f32 %v3278_v34 }
 0xec8   :  { %v4008_v16 = vpop.eup %4007 }
 0xec9   :  { %1511 = vrot.lane.b32.xlu1 %v4008_v16, %s4119_s2 }
 0xeca   :  { %v4010_v59 = vpop.eup %4009 }
 0xecb   :  { %v1505_v20 = vadd.f32 1.0, %v4010_v59 }
 0xecd   :  { %4011 = vrcp.f32 %v1505_v20 }
 0xed4   :  { %v1282_v61 = vpop.permute.xlu0 %1281 }
 0xed5   :  { %v1284_v52 = vmul.f32 %v4004_v56, %v1282_v61 }
 0xed7   :  { %v4012_v25 = vpop.eup %4011 }
 0xed8   :  { %v1509_v32 = vmul.f32 %v4012_v25, %v4611_v47 }
 0xf3b   :  { %v1512_v11 = vpop.permute.xlu1 %1511 }
 0xf3c   :  { %v1514_v4 = vmul.f32 %v4012_v25, %v1512_v11 }
 0xf3e   :  { %1516 = vrot.lane.b32.xlu1 %v1514_v4, %s4120_s17 }
 0xf42   :  { %1528 = vperm.xlu1 %3926, %v47_v46  }
 0xfb0   :  { %v1517_v49 = vpop.permute.xlu1 %1516 }
 0xfb1   :  { %v4614_v50 = vadd.f32 %v1517_v49, %v1509_v32 }
 0xfb3   :  { %4013 = vtanh.f32 %v4614_v50 }
 0xfbd   :  { %v4014_v54 = vpop.eup %4013 }
 0xfbe   :  { %1522 = vrot.lane.b32.xlu1 %v4014_v54, %s4119_s2 }
 0xfc1   :  { %v4621_v45 = vpop.permute.xlu1 %1528 }
 0xfc2   :  { %1327 = vrot.lane.b32.xlu1 %v1284_v52, %s4120_s17  ;;  %v1540_v49 = vmul.f32 %v4621_v45, %v4614_v50 }
0x1030   :  { %v1523_v38 = vpop.permute.xlu1 %1522 }
0x1031   :  { %v4623_v3 = vmul.f32 %v4012_v25, %v1523_v38 }
0x1033   :  { %v1531_v19 = vmul.f32 %v4621_v45, %v4623_v3 }
0x1034   :  { %v4628_v35 = vpop.permute.xlu1 %1327 }
0x1035   :  { %3580 = vmatmul.mubr.msk.f32.vlgmr.msra.gmra.mrb[18].mxu1 %vm248_vm2, %v4628_v35  ;;  %v4632_v37 = vadd.f32 %v1538_v17, %v1531_v19 }
0x1036   :  { %3833 = vmatpush3.bf16.msra.mxu1 %v4234_v18  ;;  %3601 = vmatprep.mubr.msk.f32.mxu1 %vm4117_vm1, %v4115_v7 }
0x1037   :  { %1619 = vrot.lane.b32.xlu0 %v4632_v37, %s4120_s17  ;;  %3834 = vmatprep.subr.bf16.mxu1 %v4116_v24 }
0x103a   :  { %3836 = vmatpush3.bf16.msra.mxu1 %v4258_v26 }
0x103b   :  { %3843 = vmatprep.subr.bf16.mxu1 %v4116_v24 }
0x10a9   :  { %v1620_v8 = vpop.permute.xlu0 %1619 }
0x10aa   :  { %3613 = vmatmul.mubr.msk.f32.vlgmr.msra.gmra.mrb[20].mxu0 %vm248_vm2, %v1620_v8 }
0x10ab   :  { %3851 = vmatpush3.bf16.msra.mxu0 %v4262_v27  ;;  %3634 = vmatprep.mubr.msk.f32.mxu0 %vm4117_vm1, %v4115_v7 }
0x10ac   :  { %3852 = vmatprep.subr.bf16.mxu0 %v4116_v24 }
0x10af   :  { %3854 = vmatpush3.bf16.msra.mxu0 %v4278_v30 }
0x10b0   :  { %3871 = vmatprep.subr.bf16.mxu0 %v4116_v24 }
0x1108   :  { %v1397_v56 = vpop.f32.mrb[18].mxu1 }
0x1109   :  { %v1476_v58 = vadd.f32 %v1397_v56, %v232_v55  ;;  %v3581_v46 = vpop.f32.mrb[19].mxu1 }
0x110b   :  { %4015 = vtanh.f32 %v1476_v58  ;;  %v3277_v27 = vmul.f32 -1.442695, %v1476_v58 }
0x110d   :  { %4017 = vpow2.f32 %v3277_v27 }
0x1115   :  { %v4016_v62 = vpop.eup %4015 }
0x1116   :  { %1487 = vrot.lane.b32.xlu1 %v4016_v62, %s4119_s2 }
0x1117   :  { %v4018_v10 = vpop.eup %4017 }
0x1118   :  { %v1481_v0 = vadd.f32 1.0, %v4018_v10 }
0x111a   :  { %4019 = vrcp.f32 %v1481_v0 }
0x1124   :  { %v4020_v42 = vpop.eup %4019 }
0x1125   :  { %v1485_v59 = vmul.f32 %v4020_v42, %v4601_v9  ;;  %v1541_v9 = vmul.f32 %v4617_v51, %v4611_v47 }
0x1127   :  { %v4669_v54 = vadd.f32 %v1541_v9, %v1540_v49 }
0x117d   :  { %v1689_v30 = vpop.f32.mrb[20].mxu0 }
0x117e   :  { %v1694_v6 = vadd.f32 %v1689_v30, %v210_v1  ;;  %v3614_v53 = vpop.f32.mrb[21].mxu0 }
0x1180   :  { %4021 = vtanh.f32 %v1694_v6  ;;  %v3282_v16 = vmul.f32 -1.442695, %v1694_v6  ;;  %v204_v6 = vadd.f32 %v4311_v40, %v4317_v48 }
0x1182   :  { %4023 = vpow2.f32 %v3282_v16 }
0x1188   :  { %v1488_v12 = vpop.permute.xlu1 %1487 }
0x1189   :  { %v1490_v14 = vmul.f32 %v4020_v42, %v1488_v12 }
0x118a   :  { %v4022_v15 = vpop.eup %4021 }
0x118b   :  { %1492 = vrot.lane.b32.xlu1 %v1490_v14, %s4120_s17  ;;  %1728 = vrot.lane.b32.xlu0 %v4022_v15, %s4119_s2 }
0x118c   :  { %v4024_v23 = vpop.eup %4023 }
0x118d   :  { %v1722_v34 = vadd.f32 1.0, %v4024_v23 }
0x118f   :  { %1745 = vperm.xlu1 %3926, %v46_v60   ;;  %4025 = vrcp.f32 %v1722_v34 }
0x1199   :  { %v4026_v20 = vpop.eup %4025 }
0x119a   :  { %v1726_v61 = vmul.f32 %v4026_v20, %v4669_v54 }
0x11fd   :  { %v1493_v25 = vpop.permute.xlu1 %1492  ;;  %v1729_v11 = vpop.permute.xlu0 %1728 }
0x11fe   :  { %v4660_v4 = vadd.f32 %v1493_v25, %v1485_v59  ;;  %v1731_v44 = vmul.f32 %v4026_v20, %v1729_v11 }
0x1200   :  { %4027 = vtanh.f32 %v4660_v4  ;;  %1733 = vrot.lane.b32.xlu0 %v1731_v44, %s4120_s17 }
0x1204   :  { %1752 = vperm.xlu0 %3925, %v1749_v28  }
0x120a   :  { %v4028_v32 = vpop.eup %4027 }
0x120b   :  { %1498 = vrot.lane.b32.xlu1 %v4028_v32, %s4119_s2 }
0x120e   :  { %v1746_v17 = vpop.permute.xlu1 %1745 }
0x1272   :  { %v1734_v52 = vpop.permute.xlu0 %1733 }
0x1273   :  { %v4672_v38 = vadd.f32 %v1734_v52, %v1726_v61 }
0x1275   :  { %4029 = vtanh.f32 %v4672_v38  ;;  %v1757_v32 = vmul.f32 %v1746_v17, %v4672_v38  ;;  %v1965_v38 = vld [vmem:[%s5163_s6 + $0x8] sm:$0xff] }
0x127d   :  { %v1499_v19 = vpop.permute.xlu1 %1498 }
0x127e   :  { %v1501_v8 = vmul.f32 %v4020_v42, %v1499_v19 }
0x127f   :  { %v4030_v55 = vpop.eup %4029 }
0x1280   :  { %1544 = vrot.lane.b32.xlu1 %v1501_v8, %s4120_s17  ;;  %1739 = vrot.lane.b32.xlu0 %v4030_v55, %s4119_s2  ;;  %v1966_v55 = vld [vmem:[%s5163_s6 + $0x10] sm:$0xff] }
0x1283   :  { %v1753_v50 = vpop.permute.xlu0 %1752 }
0x1284   :  { %v1755_v56 = vmul.f32 %v1753_v50, %v4632_v37  ;;  %v1758_v28 = vmul.f32 %v1753_v50, %v4669_v54  ;;  %v1964_v54 = vld [vmem:[%s5163_s6] sm:$0xff]  ;;  %v1967_v50 = vld [vmem:[%s5163_s6 + $0x18] sm:$0xff] }
0x1286   :  { %v1759_v49 = vadd.f32 %v1758_v28, %v1757_v32 }
0x12f2   :  { %v4677_v45 = vpop.permute.xlu1 %1544  ;;  %v1740_v47 = vpop.permute.xlu0 %1739 }
0x12f3   :  { %v1742_v51 = vmul.f32 %v4026_v20, %v1740_v47  ;;  %3602 = vmatmul.mubr.msk.f32.vlgmr.msra.gmra.mrb[20].mxu1 %vm248_vm2, %v4677_v45  ;;  %v3859_v47 = vpack.c.bf16 %v1967_v50, %v1966_v55 }
0x12f4   :  { %3845 = vmatpush3.bf16.msra.mxu1 %v4234_v18  ;;  %3623 = vmatprep.mubr.msk.f32.mxu1 %vm4117_vm1, %v4115_v7  ;;  %v238_v18 = vadd.f32 %v4305_v36, %v4309_v39 }
0x12f5   :  { %v1748_v58 = vmul.f32 %v1746_v17, %v1742_v51  ;;  %3846 = vmatprep.subr.bf16.mxu1 %v4116_v24  ;;  %v3855_v17 = vpack.c.bf16 %v1965_v38, %v1964_v54 }
0x12f7   :  { %v1756_v46 = vadd.f32 %v1755_v56, %v1748_v58 }
0x12f8   :  { %3848 = vmatpush3.bf16.msra.mxu1 %v4258_v26 }
0x12f9   :  { %1836 = vrot.lane.b32.xlu0 %v1756_v46, %s4120_s17  ;;  %3856 = vmatprep.subr.bf16.mxu1 %v3855_v17 }
0x136b   :  { %v1837_v62 = vpop.permute.xlu0 %1836 }
0x136c   :  { %3635 = vmatmul.mubr.msk.f32.vlgmr.msra.gmra.mrb[22].mxu0 %vm248_vm2, %v1837_v62  ;;  %v1962_v62 = vld [vmem:[%s5162_s5 + $0x10] sm:$0xff] }
0x136d   :  { %3681 = vmatprep.mubr.msk.f32.mxu0 %vm4117_vm1, %v4115_v7 }
0x13c6   :  { %v1614_v27 = vpop.f32.mrb[20].mxu1 }
0x13c7   :  { %v1693_v10 = vadd.f32 %v1614_v27, %v238_v18  ;;  %v3603_v37 = vpop.f32.mrb[21].mxu1  ;;  %v1963_v18 = vld [vmem:[%s5162_s5 + $0x18] sm:$0xff] }
0x13c9   :  { %4031 = vtanh.f32 %v1693_v10  ;;  %v3281_v1 = vmul.f32 -1.442695, %v1693_v10  ;;  %v3867_v10 = vpack.c.bf16 %v1963_v18, %v1962_v62 }
0x13cb   :  { %4033 = vpow2.f32 %v3281_v1 }
0x13d3   :  { %v4032_v0 = vpop.eup %4031 }
0x13d4   :  { %1704 = vrot.lane.b32.xlu1 %v4032_v0, %s4119_s2 }
0x13d5   :  { %v4034_v26 = vpop.eup %4033 }
0x13d6   :  { %v1698_v30 = vadd.f32 1.0, %v4034_v26 }
0x13d8   :  { %4035 = vrcp.f32 %v1698_v30 }
0x13e2   :  { %v4036_v36 = vpop.eup %4035 }
0x13e3   :  { %v1702_v59 = vmul.f32 %v4036_v36, %v4660_v4 }
0x143f   :  { %v1906_v53 = vpop.f32.mrb[22].mxu0 }
0x1440   :  { %v1911_v42 = vadd.f32 %v1906_v53, %v204_v6  ;;  %v3636_v12 = vpop.f32.mrb[23].mxu0 }
0x1442   :  { %4037 = vtanh.f32 %v1911_v42  ;;  %v3286_v16 = vmul.f32 -1.442695, %v1911_v42 }
0x1444   :  { %4039 = vpow2.f32 %v3286_v16 }
0x1446   :  { %v1705_v14 = vpop.permute.xlu1 %1704 }
0x1447   :  { %v1707_v15 = vmul.f32 %v4036_v36, %v1705_v14 }
0x1449   :  { %1709 = vrot.lane.b32.xlu1 %v1707_v15, %s4120_s17 }
0x144c   :  { %v4038_v60 = vpop.eup %4037 }
0x144d   :  { %1945 = vrot.lane.b32.xlu0 %v4038_v60, %s4119_s2 }
0x144e   :  { %v4040_v23 = vpop.eup %4039 }
0x144f   :  { %v1939_v34 = vadd.f32 1.0, %v4040_v23 }
0x1451   :  { %4041 = vrcp.f32 %v1939_v34 }
0x145b   :  { %v4042_v20 = vpop.eup %4041 }
0x145c   :  { %v1943_v9 = vmul.f32 %v4042_v20, %v1759_v49 }
0x14bb   :  { %v1710_v40 = vpop.permute.xlu1 %1709 }
0x14bc   :  { %v4699_v48 = vadd.f32 %v1710_v40, %v1702_v59 }
0x14be   :  { %4043 = vtanh.f32 %v4699_v48 }
0x14bf   :  { %v1946_v25 = vpop.permute.xlu0 %1945 }
0x14c0   :  { %v1948_v11 = vmul.f32 %v4042_v20, %v1946_v25 }
0x14c2   :  { %1950 = vrot.lane.b32.xlu0 %v1948_v11, %s4120_s17 }
0x14c8   :  { %v4044_v44 = vpop.eup %4043 }
0x14c9   :  { %1715 = vrot.lane.b32.xlu1 %v4044_v44, %s4119_s2 }
0x1534   :  { %v1951_v4 = vpop.permute.xlu0 %1950 }
0x1535   :  { %v1953_v61 = vadd.f32 %v1951_v4, %v1943_v9 }
0x1537   :  { %4045 = vtanh.f32 %v1953_v61 }
0x153b   :  { %v1716_v52 = vpop.permute.xlu1 %1715 }
0x153c   :  { %v1718_v19 = vmul.f32 %v4036_v36, %v1716_v52 }
0x153e   :  { %1761 = vrot.lane.b32.xlu1 %v1718_v19, %s4120_s17 }
0x1541   :  { %v4046_v8 = vpop.eup %4045 }
0x1542   :  { %1978 = vrot.lane.b32.xlu1 %v1742_v51, %s4120_s17  ;;  %1956 = vrot.lane.b32.xlu0 %v4046_v8, %s4119_s2 }
0x1546   :  { %1982 = vrot.lane.b32.xlu1 %v4583_v57, %s4120_s17  ;;  %v1960_v57 = vld [vmem:[%s5162_s5] sm:$0xff] }
0x154a   :  { %1986 = vrot.lane.b32.xlu1 %v4473_v2, %s4120_s17  ;;  %v1961_v2 = vld [vmem:[%s5162_s5 + $0x8] sm:$0xff] }
0x154e   :  { %1990 = vrot.lane.b32.xlu1 %v4338_v21, %s4120_s17  ;;  %v3863_v21 = vpack.c.bf16 %v1961_v2, %v1960_v57 }
0x15b0   :  { %v1762_v51 = vpop.permute.xlu1 %1761 }
0x15b1   :  { %3624 = vmatmul.mubr.msk.f32.vlgmr.msra.gmra.mrb[22].mxu1 %vm248_vm2, %v1762_v51 }
0x15b2   :  { %3858 = vmatpush3.bf16.msra.mxu1 %v3855_v17 }
0x15b3   :  { %3860 = vmatprep.subr.bf16.mxu1 %v3859_v47 }
0x15b4   :  { %v1957_v56 = vpop.permute.xlu0 %1956  ;;  %v1979_v46 = vpop.permute.xlu1 %1978 }
0x15b5   :  { %v1959_v58 = vmul.f32 %v4042_v20, %v1957_v56 }
0x15b6   :  { %3862 = vmatpush3.bf16.msra.mxu1 %v3859_v47 }
0x15b7   :  { %1976 = vrot.lane.b32.xlu0 %v1959_v58, %s4120_s17  ;;  %3864 = vmatprep.subr.bf16.mxu1 %v3863_v21 }
0x15b8   :  { %v1983_v37 = vpop.permute.xlu1 %1982 }
0x15bb   :  { %1980 = vrot.lane.b32.xlu0 %v4623_v3, %s4120_s17 }
0x15bf   :  { %1984 = vrot.lane.b32.xlu0 %v4530_v43, %s4120_s17 }
0x15c3   :  { %1988 = vrot.lane.b32.xlu0 %v4402_v5, %s4120_s17  ;;  %v1987_v5 = vpop.permute.xlu1 %1986 }
0x15c7   :  { %v1991_v1 = vpop.permute.xlu1 %1990 }
0x1629   :  { %v1977_v27 = vpop.permute.xlu0 %1976 }
0x162a   :  { %3645 = vmatprep.mubr.msk.f32.mxu1 %vm248_vm2, %v1977_v27 }
0x162b   :  { %3646 = vmatmul.mubr.msk.f32.vlgmr.msra.gmra.mrb[24].mxu1 %vm248_vm2, %v1979_v46 }
0x162c   :  { %3866 = vmatpush3.bf16.msra.mxu1 %v3863_v21 }
0x162d   :  { %v1981_v43 = vpop.permute.xlu0 %1980  ;;  %3868 = vmatprep.subr.bf16.mxu1 %v3867_v10 }
0x162e   :  { %3648 = vmatprep.mubr.msk.f32.mxu1 %vm248_vm2, %v1981_v43 }
0x162f   :  { %3649 = vmatmul.mubr.msk.f32.gmra.mrb[26].mxu1 %vm248_vm2, %v1983_v37 }
0x1630   :  { %3870 = vmatpush3.bf16.msra.mxu1 %v3867_v10 }
0x1631   :  { %v1985_v3 = vpop.permute.xlu0 %1984 }
0x1632   :  { %3651 = vmatprep.mubr.msk.f32.mxu1 %vm248_vm2, %v1985_v3 }
0x1633   :  { %3652 = vmatmul.mubr.msk.f32.gmra.mrb[28].mxu1 %vm248_vm2, %v1987_v5 }
0x1635   :  { %v1989_v0 = vpop.permute.xlu0 %1988 }
0x1636   :  { %3654 = vmatprep.mubr.msk.f32.mxu1 %vm248_vm2, %v1989_v0 }
0x1637   :  { %3655 = vmatmul.mubr.msk.f32.gmra.mrb[30].mxu1 %vm248_vm2, %v1991_v1 }
0x1638   :  { %3665 = vmatprep.mubr.msk.f32.mxu1 %vm248_vm2, %v4345_v29  ;;  %v244_v29 = vadd.f32 %v4313_v41, %v4309_v39  ;;  %v4788_v39 = vld [vmem:[%s5164_s7] ss:$0 sm:$0xff] }
0x163b   :  { %3666 = vmatmul.mubr.msk.f32.vlgmr.msra.gmra.mrb[24].mxu1 %vm248_vm2, %v4449_v63 }
0x163c   :  { %3668 = vmatprep.mubr.msk.f32.mxu1 %vm248_vm2, %v4507_v13  ;;  %v4775_v13 = vld [vmem:[%s5165_s8] sm:$0xff] }
0x163d   :  { %v2238_v15 = vmul.f32 1.442695, %v4775_v13 }
0x163f   :  { %3669 = vmatmul.mubr.msk.f32.gmra.mrb[26].mxu1 %vm248_vm2, %v4563_v22  ;;  %v4780_v22 = vld [vmem:[%s5165_s8 + $0x8] sm:$0xf] }
0x1640   :  { %3671 = vmatprep.mubr.msk.f32.mxu1 %vm248_vm2, %v4628_v35  ;;  %v3900_v35 = vpack.c.bf16 %v4780_v22, %v4775_v13 }
0x1643   :  { %3672 = vmatmul.mubr.msk.f32.gmra.mrb[28].mxu1 %vm248_vm2, %v4677_v45  ;;  %v2244_v45 = vsub.s32 2, %v4299_v33  ;;  %v2240_v33 = vmul.f32 1.442695, %v4780_v22 }
0x1644   :  { %3674 = vmatprep.mubr.msk.f32.mxu1 %vm248_vm2, %v1762_v51 }
0x1645   :  { %v4791_v6 = vrot.slane %v4780_v22, %v2244_v45  ;;  %4047 = vpow2.f32 %v2240_v33 }
0x1646   :  { %4049 = vpow2.f32 %v2238_v15 }
0x164f   :  { %v4048_v34 = vpop.eup %4047 }
0x1650   :  { %v4050_v59 = vpop.eup %4049 }
0x1651   :  { %v4810_v40 = vpack.c.bf16 %v4048_v34, %v4050_v59 }
0x1653   :  { %3874 = vmatpush3.bf16.msk.msra.mxu0 %vm4812_vm6, %v4810_v40 }
0x1654   :  { %3875 = vmatprep.subr.bf16.mxu0 %v4116_v24 }
0x1684   :  { %v1831_v26 = vpop.f32.mrb[22].mxu1 }
0x1685   :  { %v4770_v30 = vadd.f32 %v1831_v26, %v244_v29  ;;  %v3625_v63 = vpop.f32.mrb[23].mxu1 }
0x170e   :  { %v3667_v41 = vpop.f32.mrb[24].mxu1 }
0x170f   :  { %v2184_v53 = vpop.f32.mrb[25].mxu1  ;;  %v4829_v61 = vadd.f32 %v3667_v41, %v4788_v39 }
0x1710   :  { %v4794_v42 = vadd.f32 %v4788_v39, %v2184_v53 }
0x1712   :  { %v4798_v12 = vadd.f32 %v4791_v6, %v4794_v42  ;;  %v4800_v36 = vpop.f32.mrb[26].mxu1 }
0x1713   :  { %v2194_v14 = vpop.f32.mrb[27].mxu1  ;;  %v4862_v3 = vadd.f32 %v4800_v36, %v4788_v39 }
0x1714   :  { %v2255_v60 = vsel %vm2254_vm3, %v4798_v12, -inf  ;;  %v4845_v2 = vadd.f32 %v4788_v39, %v2194_v14  ;;  %v3285_v14 = vmul.f32 -1.442695, %v4770_v30 }
0x1715   :  { %2256 = vmax.xlane.f32.xlu0 %v2255_v60 }
0x1716   :  { %v4806_v16 = vpop.f32.mrb[28].mxu1 }
0x1717   :  { %v4808_v23 = vpop.f32.mrb[29].mxu1 }
0x1718   :  { %v4882_v34 = vadd.f32 %v4788_v39, %v4808_v23 }
0x17a2   :  { %v2257_v25 = vpop.xlane.xlu0 %2256 }
0x17a3   :  { %v2258_v11 = vsub.f32 %v4798_v12, %v2257_v25 }
0x17a5   :  { %v2259_v44 = vmul.f32 1.442695, %v2258_v11 }
0x17a7   :  { %4051 = vpow2.f32 %v2259_v44 }
0x17b1   :  { %v4052_v28 = vpop.eup %4051 }
0x17b2   :  { %3682 = vmatmul.mubr.msk.f32.vlgmr.msra.gmra.mrb[24].mxu0 %vm2254_vm3, %v4052_v28 }
0x17b3   :  { %3878 = vmatpush3.bf16.msk.msra.mxu0 %vm4812_vm6, %v4810_v40  ;;  %3688 = vmatprep.mubr.msk.f32.mxu0 %vm4117_vm1, %v4115_v7 }
0x17b4   :  { %3879 = vmatprep.subr.bf16.mxu0 %v4116_v24 }
0x1885   :  { %v2334_v32 = vpop.f32.mrb[24].mxu0 }
0x1886   :  { %4053 = vlog2.f32 %v2334_v32  ;;  %v3683_v49 = vpop.f32.mrb[25].mxu0 }
0x1890   :  { %v4054_v9 = vpop.eup %4053 }
0x1891   :  { %v2339_v4 = vmul.f32 0.6931472, %v4054_v9 }
0x1893   :  { %v2340_v52 = vadd.f32 %v2339_v4, %v2257_v25 }
0x1895   :  { %v4832_v19 = vadd.f32 %v2340_v52, %v4829_v61 }
0x1897   :  { %v2349_v8 = vsel %vm2254_vm3, %v4832_v19, -inf }
0x1898   :  { %2350 = vmax.xlane.f32.xlu1 %v2349_v8 }
0x1925   :  { %v2351_v54 = vpop.xlane.xlu1 %2350 }
0x1926   :  { %v2352_v38 = vsub.f32 %v4832_v19, %v2351_v54 }
0x1928   :  { %v2353_v17 = vmul.f32 1.442695, %v2352_v38 }
0x192a   :  { %4055 = vpow2.f32 %v2353_v17 }
0x1934   :  { %v4056_v55 = vpop.eup %4055 }
0x1935   :  { %3689 = vmatmul.mubr.msk.f32.vlgmr.msra.gmra.mrb[26].mxu0 %vm2254_vm3, %v4056_v55 }
0x1936   :  { %3882 = vmatpush3.bf16.msk.msra.mxu0 %vm4812_vm6, %v4810_v40  ;;  %3695 = vmatprep.mubr.msk.f32.mxu0 %vm4117_vm1, %v4115_v7 }
0x1937   :  { %3883 = vmatprep.subr.bf16.mxu0 %v4116_v24 }
0x1a08   :  { %v2424_v50 = vpop.f32.mrb[26].mxu0 }
0x1a09   :  { %4057 = vlog2.f32 %v2424_v50  ;;  %v3690_v47 = vpop.f32.mrb[27].mxu0 }
0x1a13   :  { %v4058_v51 = vpop.eup %4057 }
0x1a14   :  { %v2429_v57 = vmul.f32 0.6931472, %v4058_v51 }
0x1a16   :  { %v2430_v21 = vadd.f32 %v2429_v57, %v2351_v54 }
0x1a18   :  { %v4848_v56 = vadd.f32 %v2430_v21, %v4845_v2  ;;  %v4903_v21 = vadd.f32 %v4806_v16, %v4788_v39  ;;  %v4920_v16 = vld [vmem:[%s5169_s12 + $0x10] sm:$0xff] }
0x1a19   :  { %vm2432_vm8 = vcmp.gt.f32.partialorder %v4920_v16, 0.5 }
0x1a1a   :  { %v2439_v58 = vsel %vm2254_vm3, %v4848_v56, -inf }
0x1a1b   :  { %2440 = vmax.xlane.f32.xlu0 %v2439_v58 }
0x1aa8   :  { %v2441_v46 = vpop.xlane.xlu0 %2440 }
0x1aa9   :  { %v2442_v62 = vsub.f32 %v4848_v56, %v2441_v46 }
0x1aab   :  { %v2443_v18 = vmul.f32 1.442695, %v2442_v62 }
0x1aad   :  { %4059 = vpow2.f32 %v2443_v18 }
0x1ab7   :  { %v4060_v27 = vpop.eup %4059 }
0x1ab8   :  { %3696 = vmatmul.mubr.msk.f32.vlgmr.msra.gmra.mrb[28].mxu0 %vm2254_vm3, %v4060_v27  ;;  %v4914_v27 = vld [vmem:[%s5169_s12] sm:$0xff] }
0x1ab9   :  { %3886 = vmatpush3.bf16.msk.msra.mxu0 %vm4812_vm6, %v4810_v40  ;;  %3702 = vmatprep.mubr.msk.f32.mxu0 %vm4117_vm1, %v4115_v7  ;;  %vm2247_vm7 = vcmp.gt.f32.partialorder %v4914_v27, 0.5 }
0x1aba   :  { %3887 = vmatprep.subr.bf16.mxu0 %v4116_v24 }
0x1b8b   :  { %v2514_v10 = vpop.f32.mrb[28].mxu0 }
0x1b8c   :  { %4061 = vlog2.f32 %v2514_v10  ;;  %v3697_v37 = vpop.f32.mrb[29].mxu0  ;;  %v2248_v10 = vsel %vm2247_vm7, 1, %v4118_v31 }
0x1b8d   :  { %4063 = vtanh.f32 %v4770_v30  ;;  %v4927_v37 = vld [vmem:[%s5169_s12 + $0x18] sm:$0xff] }
0x1b8e   :  { %vm2522_vm9 = vcmp.gt.f32.partialorder %v4927_v37, 0.5 }
0x1b96   :  { %v4062_v43 = vpop.eup %4061 }
0x1b97   :  { %v2519_v5 = vmul.f32 0.6931472, %v4062_v43  ;;  %v4064_v26 = vpop.eup %4063  ;;  %v2433_v43 = vsel %vm2432_vm8, 1, %v4118_v31 }
0x1b99   :  { %v2520_v0 = vadd.f32 %v2519_v5, %v2441_v46  ;;  %v4934_v5 = vld [vmem:[%s5169_s12 + $0x28] sm:$0xff] }
0x1b9a   :  { %vm2702_vm10 = vcmp.gt.f32.partialorder %v4934_v5, 0.5 }
0x1b9b   :  { %v4865_v1 = vadd.f32 %v2520_v0, %v4862_v3  ;;  %v2523_v0 = vsel %vm2522_vm9, 1, %v4118_v31 }
0x1b9d   :  { %v2529_v29 = vsel %vm2254_vm3, %v4865_v1, -inf }
0x1b9e   :  { %2530 = vmax.xlane.f32.xlu0 %v2529_v29  ;;  %v4941_v29 = vld [vmem:[%s5169_s12 + $0x38] sm:$0xff] }
0x1b9f   :  { %vm2882_vm11 = vcmp.gt.f32.partialorder %v4941_v29, 0.5 }
0x1bb4   :  { %1921 = vrot.lane.b32.xlu0 %v4064_v26, %s4119_s2  ;;  %v2703_v26 = vsel %vm2702_vm10, 1, %v4118_v31 }
0x1c2b   :  { %v2531_v63 = vpop.xlane.xlu0 %2530 }
0x1c2c   :  { %v2532_v45 = vsub.f32 %v4865_v1, %v2531_v63 }
0x1c2e   :  { %v2533_v41 = vmul.f32 1.442695, %v2532_v45  ;;  %v4949_v45 = vld [vmem:[%s5167_s10] sm:$0xff] }
0x1c2f   :  { %v1922_v32 = vpop.permute.xlu0 %1921 }
0x1c30   :  { %4065 = vpow2.f32 %v2533_v41  ;;  %v2917_v41 = vmul.f32 %v4794_v42, %v4949_v45 }
0x1c3a   :  { %v4066_v53 = vpop.eup %4065 }
0x1c3b   :  { %3703 = vmatmul.mubr.msk.f32.vlgmr.msra.gmra.mrb[30].mxu0 %vm2254_vm3, %v4066_v53  ;;  %v4956_v53 = vld [vmem:[%s5167_s10 + $0x10] sm:$0xff] }
0x1c3c   :  { %3890 = vmatpush3.bf16.msk.msra.mxu0 %vm4812_vm6, %v4810_v40  ;;  %3709 = vmatprep.mubr.msk.f32.mxu0 %vm4117_vm1, %v4115_v7 }
0x1c3d   :  { %3891 = vmatprep.subr.bf16.mxu0 %v4116_v24 }
0x1d0e   :  { %v2604_v36 = vpop.f32.mrb[30].mxu0 }
0x1d0f   :  { %4067 = vlog2.f32 %v2604_v36  ;;  %v3704_v33 = vpop.f32.mrb[31].mxu0  ;;  %v2919_v36 = vmul.f32 %v4845_v2, %v4956_v53 }
0x1d10   :  { %4069 = vpow2.f32 %v3285_v14  ;;  %v2925_v33 = vsel %vm2254_vm3, %v2917_v41, 0.0  ;;  %v4964_v14 = vld [vmem:[%s5167_s10 + $0x20] sm:$0xff] }
0x1d11   :  { %v2931_v42 = vsel %vm2254_vm3, %v2919_v36, 0.0 }
0x1d19   :  { %v4068_v15 = vpop.eup %4067 }
0x1d1a   :  { %v2609_v60 = vmul.f32 0.6931472, %v4068_v15  ;;  %v4070_v25 = vpop.eup %4069  ;;  %v2921_v15 = vmul.f32 %v4882_v34, %v4964_v14 }
0x1d1b   :  { %v1915_v28 = vadd.f32 1.0, %v4070_v25 }
0x1d1c   :  { %v2610_v59 = vadd.f32 %v2609_v60, %v2531_v63  ;;  %v2883_v63 = vsel %vm2882_vm11, 1, %v4118_v31  ;;  %v2937_v60 = vsel %vm2254_vm3, %v2921_v15, 0.0 }
0x1d1d   :  { %4071 = vrcp.f32 %v1915_v28  ;;  %v4981_v28 = vld [vmem:[%s5167_s10 + $0x30] sm:$0xff] }
0x1d1e   :  { %v4885_v11 = vadd.f32 %v2610_v59, %v4882_v34 }
0x1d20   :  { %v2619_v44 = vsel %vm2254_vm3, %v4885_v11, -inf }
0x1d21   :  { %2620 = vmax.xlane.f32.xlu1 %v2619_v44 }
0x1d27   :  { %v4072_v30 = vpop.eup %4071 }
0x1d28   :  { %v1924_v49 = vmul.f32 %v4072_v30, %v1922_v32  ;;  %v1919_v52 = vmul.f32 %v4072_v30, %v4699_v48 }
0x1d32   :  { %1926 = vrot.lane.b32.xlu1 %v1924_v49, %s4120_s17 }
0x1dae   :  { %v2621_v9 = vpop.xlane.xlu1 %2620 }
0x1daf   :  { %v2622_v23 = vsub.f32 %v4885_v11, %v2621_v9 }
0x1db1   :  { %v2623_v4 = vmul.f32 1.442695, %v2622_v23 }
0x1db2   :  { %v1927_v8 = vpop.permute.xlu1 %1926 }
0x1db3   :  { %4073 = vpow2.f32 %v2623_v4  ;;  %v1929_v54 = vadd.f32 %v1927_v8, %v1919_v52  ;;  %v57_v4 = vld [vmem:[%s5169_s12 + $0x20] sm:$0xff] }
0x1db4   :  { %vm2612_vm13 = vcmp.gt.f32.partialorder %v57_v4, 0.5 }
0x1db5   :  { %4075 = vtanh.f32 %v1929_v54 }
0x1dbd   :  { %v4074_v38 = vpop.eup %4073 }
0x1dbe   :  { %3710 = vmatmul.mubr.msk.f32.vlgmr.msra.gmra.mrb[32].mxu0 %vm2254_vm3, %v4074_v38 }
0x1dbf   :  { %v4076_v17 = vpop.eup %4075  ;;  %3894 = vmatpush3.bf16.msk.msra.mxu0 %vm4812_vm6, %v4810_v40  ;;  %3716 = vmatprep.mubr.msk.f32.mxu0 %vm4117_vm1, %v4115_v7 }
0x1dc0   :  { %1932 = vrot.lane.b32.xlu1 %v4076_v17, %s4119_s2  ;;  %3895 = vmatprep.subr.bf16.mxu0 %v4116_v24 }
0x1e32   :  { %v1933_v48 = vpop.permute.xlu1 %1932 }
0x1e33   :  { %v1935_v55 = vmul.f32 %v4072_v30, %v1933_v48 }
0x1e35   :  { %2114 = vrot.lane.b32.xlu1 %v1935_v55, %s4120_s17 }
0x1e91   :  { %v2694_v50 = vpop.f32.mrb[32].mxu0 }
0x1e92   :  { %4077 = vlog2.f32 %v2694_v50  ;;  %v3711_v47 = vpop.f32.mrb[33].mxu0 }
0x1e93   :  { %v2613_v47 = vsel %vm2612_vm13, 1, %v4118_v31 }
0x1e9c   :  { %v4078_v51 = vpop.eup %4077 }
0x1e9d   :  { %v2699_v57 = vmul.f32 0.6931472, %v4078_v51 }
0x1e9f   :  { %v2700_v58 = vadd.f32 %v2699_v57, %v2621_v9  ;;  %v2962_v9 = vmul.f32 %v4791_v6, %v4949_v45  ;;  %v59_v6 = vld [vmem:[%s5169_s12 + $0x30] sm:$0xff]  ;;  %v5005_v57 = vld [vmem:[%s5167_s10 + $0x8] sm:$0xff] }
0x1ea0   :  { %vm2792_vm14 = vcmp.gt.f32.partialorder %v59_v6, 0.5 }
0x1ea1   :  { %v4906_v46 = vadd.f32 %v2700_v58, %v4903_v21  ;;  %v2963_v23 = vsel %vm2254_vm3, %v2962_v9, 0.0  ;;  %v2793_v51 = vsel %vm2792_vm14, 1, %v4118_v31  ;;  %v2918_v58 = vmul.f32 %v4829_v61, %v5005_v57 }
0x1ea3   :  { %v2709_v62 = vsel %vm2254_vm3, %v4906_v46, -inf }
0x1ea4   :  { %2710 = vmax.xlane.f32.xlu0 %v2709_v62  ;;  %v5012_v62 = vld [vmem:[%s5167_s10 + $0x18] sm:$0xff] }
0x1ea7   :  { %v2115_v18 = vpop.permute.xlu1 %2114 }
0x1ea8   :  { %3675 = vmatmul.mubr.msk.f32.gmra.mrb[30].mxu1 %vm248_vm2, %v2115_v18  ;;  %v2920_v18 = vmul.f32 %v4862_v3, %v5012_v62  ;;  %v5031_v3 = vld [vmem:[%s5167_s10 + $0x38] sm:$0xff] }
0x1eba   :  { %2250 = vperm.xlu0 %3925, %v2248_v10   ;;  %v2928_v10 = vsel %vm2254_vm3, %v2918_v58, 0.0 }
0x1ebe   :  { %2435 = vperm.xlu0 %3925, %v2433_v43  }
0x1ec2   :  { %2525 = vperm.xlu0 %3925, %v2523_v0   ;;  %v2934_v0 = vsel %vm2254_vm3, %v2920_v18, 0.0 }
0x1ec6   :  { %2705 = vperm.xlu0 %3925, %v2703_v26  }
0x1eca   :  { %2885 = vperm.xlu0 %3925, %v2883_v63  }
0x1ee9   :  { %2926 = vadd.xlane.f32.xlu0 %v2925_v33 }
0x1eed   :  { %2932 = vadd.xlane.f32.xlu0 %v2931_v42 }
0x1ef1   :  { %2938 = vadd.xlane.f32.xlu0 %v2937_v60 }
0x1f31   :  { %v2711_v59 = vpop.xlane.xlu0 %2710 }
0x1f32   :  { %v2712_v2 = vsub.f32 %v4906_v46, %v2711_v59 }
0x1f34   :  { %v2713_v25 = vmul.f32 1.442695, %v2712_v2 }
0x1f36   :  { %4079 = vpow2.f32 %v2713_v25 }
0x1f40   :  { %v4080_v44 = vpop.eup %4079 }
0x1f41   :  { %3717 = vmatmul.mubr.msk.f32.vlgmr.msra.gmra.mrb[34].mxu0 %vm2254_vm3, %v4080_v44 }
0x1f42   :  { %3898 = vmatpush3.bf16.msk.msra.mxu0 %vm4812_vm6, %v4810_v40  ;;  %3723 = vmatprep.mubr.msk.f32.mxu0 %vm4117_vm1, %v4115_v7 }
0x1f43   :  { %3899 = vmatprep.subr.bf16.mxu0 %v4116_v24  ;;  %v54_v24 = vld [vmem:[%s5169_s12 + $0x8] sm:$0xff] }
0x1f44   :  { %vm2342_vm12 = vcmp.gt.f32.partialorder %v54_v24, 0.5 }
0x1f45   :  { %v2343_v50 = vsel %vm2342_vm12, 1, %v4118_v31  ;;  %v5020_v31 = vld [vmem:[%s5167_s10 + $0x28] sm:$0xff] }
0x1f46   :  { %v2922_v43 = vmul.f32 %v4903_v21, %v5020_v31 }
0x1f48   :  { %v2940_v63 = vsel %vm2254_vm3, %v2922_v43, 0.0 }
0x1f7b   :  { %v3676_v34 = vpop.f32.mrb[30].mxu1 }
0x1f7c   :  { %v2214_v32 = vpop.f32.mrb[31].mxu1  ;;  %v5025_v61 = vadd.f32 %v3676_v34, %v4788_v39 }
0x1f7d   :  { %v2236_v30 = vadd.f32 %v4788_v39, %v2214_v32  ;;  %v2251_v39 = vpop.permute.xlu0 %2250 }
0x1f7e   :  { %v2924_v26 = vmul.f32 %v5025_v61, %v5031_v3  ;;  %vm2252_vm15 = vcmp.eq.s32.totalorder %v2251_v39, 1 }
0x1f7f   :  { %v2923_v49 = vmul.f32 %v2236_v30, %v4981_v28 }
0x1f80   :  { %v2946_v41 = vsel %vm2254_vm3, %v2924_v26, 0.0 }
0x1f81   :  { %v2943_v40 = vsel %vm2254_vm3, %v2923_v49, 0.0  ;;  %v2436_v21 = vpop.permute.xlu0 %2435 }
0x1f82   :  { %2944 = vadd.xlane.f32.xlu0 %v2943_v40  ;;  %vm2437_vm2 = vcmp.eq.s32.totalorder %v2436_v21, 1 }
0x1f85   :  { %v2526_v15 = vpop.permute.xlu0 %2525 }
0x1f86   :  { %2964 = vadd.xlane.f32.xlu0 %v2963_v23  ;;  %vm2527_vm4 = vcmp.eq.s32.totalorder %v2526_v15, 1 }
0x1f89   :  { %v2706_v2 = vpop.permute.xlu0 %2705 }
0x1f8a   :  { %vm2707_vm7 = vcmp.eq.s32.totalorder %v2706_v2, 1 }
0x1f8d   :  { %v5080_v13 = vpop.permute.xlu0 %2885 }
0x1f91   :  { %v2927_v22 = vpop.xlane.xlu0 %2926 }
0x1f9c   :  { %2979 = vperm.xlu0 %3925, %v54_v24  }
0x1fa0   :  { %2994 = vperm.xlu0 %3925, %v57_v4  }
0x1fa4   :  { %3004 = vperm.xlu0 %3925, %v59_v6  }
0x2014   :  { %v2784_v52 = vpop.f32.mrb[34].mxu0 }
0x2015   :  { %4081 = vlog2.f32 %v2784_v52  ;;  %v3718_v8 = vpop.f32.mrb[35].mxu0 }
0x201f   :  { %v4082_v54 = vpop.eup %4081 }
0x2020   :  { %v2789_v38 = vmul.f32 0.6931472, %v4082_v54 }
0x2022   :  { %v2790_v17 = vadd.f32 %v2789_v38, %v2711_v59  ;;  %v2253_v59 = vsel %vm2252_vm15, %v4798_v12, 0.0 }
0x2024   :  { %v2791_v48 = vadd.f32 %v2790_v17, %v2236_v30 }
0x2026   :  { %v2799_v55 = vsel %vm2254_vm3, %v2791_v48, -inf }
0x2027   :  { %2800 = vmax.xlane.f32.xlu1 %v2799_v55 }
0x2038   :  { %2345 = vperm.xlu1 %3926, %v2343_v50   ;;  %v5092_v50 = vld [vmem:[%s5166_s9] ss:$0 sm:$0xff] }
0x203c   :  { %2615 = vperm.xlu1 %3926, %v2613_v47  }
0x2040   :  { %2795 = vperm.xlu1 %3926, %v2793_v51  }
0x2064   :  { %2929 = vadd.xlane.f32.xlu1 %v2928_v10 }
0x2068   :  { %2935 = vadd.xlane.f32.xlu1 %v2934_v0 }
0x206c   :  { %2941 = vadd.xlane.f32.xlu1 %v2940_v63 }
0x2070   :  { %2947 = vadd.xlane.f32.xlu1 %v2946_v41 }
0x2081   :  { %2974 = vperm.xlu1 %3926, %v4914_v27  }
0x2085   :  { %2984 = vperm.xlu1 %3926, %v4920_v16  }
0x2089   :  { %2989 = vperm.xlu1 %3926, %v4927_v37  }
0x208d   :  { %2999 = vperm.xlu1 %3926, %v4934_v5  }
0x20b4   :  { %v5041_v36 = vpop.xlane.xlu1 %2800 }
0x20b5   :  { %v2802_v33 = vsub.f32 %v2791_v48, %v5041_v36 }
0x20b7   :  { %v2803_v42 = vmul.f32 1.442695, %v2802_v33 }
0x20b8   :  { %v2346_v60 = vpop.permute.xlu1 %2345 }
0x20b9   :  { %4083 = vpow2.f32 %v2803_v42  ;;  %vm2347_vm0 = vcmp.eq.s32.totalorder %v2346_v60, 1 }
0x20ba   :  { %v2348_v27 = vsel %vm2347_vm0, %v4832_v19, %v2253_v59 }
0x20bb   :  { %v2438_v16 = vsel %vm2437_vm2, %v4848_v56, %v2348_v27 }
0x20bc   :  { %v2528_v37 = vsel %vm2527_vm4, %v4865_v1, %v2438_v16  ;;  %v2616_v5 = vpop.permute.xlu1 %2615 }
0x20bd   :  { %vm2617_vm5 = vcmp.eq.s32.totalorder %v2616_v5, 1 }
0x20be   :  { %v2618_v25 = vsel %vm2617_vm5, %v4885_v11, %v2528_v37 }
0x20bf   :  { %v2708_v34 = vsel %vm2707_vm7, %v4906_v46, %v2618_v25 }
0x20c0   :  { %v2796_v44 = vpop.permute.xlu1 %2795 }
0x20c1   :  { %vm2797_vm8 = vcmp.eq.s32.totalorder %v2796_v44, 1 }
0x20c2   :  { %v5050_v12 = vsel %vm2797_vm8, %v2791_v48, %v2708_v34 }
0x20c3   :  { %v4084_v32 = vpop.eup %4083 }
0x20c4   :  { %3724 = vmatmul.mubr.msk.f32.vlgmr.msra.gmra.mrb[36].mxu0 %vm2254_vm3, %v4084_v32 }
0x20c5   :  { %3902 = vmatpush3.bf16.msk.msra.mxu0 %vm4812_vm6, %v3900_v35  ;;  %3730 = vmatprep.mubr.msk.f32.mxu0 %vm4117_vm1, %v4115_v7  ;;  %v2933_v35 = vpop.xlane.xlu0 %2932  ;;  %vm3233_vm6 = vcmask 0  }
0x20c8   :  { %3731 = vmatmul.mubr.msk.f32.vlgmr.msra.gmra.mrb[38].mxu0 %vm2254_vm3, %v4949_v45 }
0x20c9   :  { %3733 = vmatprep.mubr.msk.f32.mxu0 %vm4117_vm1, %v4115_v7  ;;  %v2939_v20 = vpop.xlane.xlu0 %2938 }
0x20cc   :  { %3734 = vmatmul.mubr.msk.f32.gmra.mrb[40].mxu0 %vm2254_vm3, %v5005_v57 }
0x20cd   :  { %3736 = vmatprep.mubr.msk.f32.mxu0 %vm4117_vm1, %v4115_v7  ;;  %v2945_v19 = vpop.xlane.xlu0 %2944 }
0x20d0   :  { %3737 = vmatmul.mubr.msk.f32.gmra.mrb[42].mxu0 %vm2254_vm3, %v4956_v53 }
0x20d1   :  { %3739 = vmatprep.mubr.msk.f32.mxu0 %vm4117_vm1, %v4115_v7  ;;  %v2965_v11 = vpop.xlane.xlu0 %2964 }
0x20d2   :  { %v2966_v46 = vrot.slane %v2965_v11, 4 }
0x20d4   :  { %3740 = vmatmul.mubr.msk.f32.gmra.mrb[44].mxu0 %vm2254_vm3, %v5012_v62  ;;  %v2967_v40 = vadd.f32 %v2966_v46, %v2965_v11 }
0x20d5   :  { %3742 = vmatprep.mubr.msk.f32.mxu0 %vm4117_vm1, %v4115_v7 }
0x20d6   :  { %v2968_v6 = vrot.slane %v2967_v40, 2 }
0x20d8   :  { %3743 = vmatmul.mubr.msk.f32.gmra.mrb[46].mxu0 %vm2254_vm3, %v4964_v14  ;;  %v2969_v54 = vadd.f32 %v2968_v6, %v2967_v40 }
0x20d9   :  { %3745 = vmatprep.mubr.msk.f32.mxu0 %vm4117_vm1, %v4115_v7 }
0x20da   :  { %v2970_v47 = vrot.slane %v2969_v54, 1 }
0x20dc   :  { %3746 = vmatmul.mubr.msk.f32.gmra.mrb[48].mxu0 %vm2254_vm3, %v5020_v31  ;;  %v2971_v26 = vadd.f32 %v2970_v47, %v2969_v54 }
0x20dd   :  { %3748 = vmatprep.mubr.msk.f32.mxu0 %vm4117_vm1, %v4115_v7  ;;  %vm2887_vm1 = vcmp.eq.s32.totalorder %v5080_v13, 1 }
0x20e0   :  { %3749 = vmatmul.mubr.msk.f32.gmra.mrb[50].mxu0 %vm2254_vm3, %v4981_v28 }
0x20f1   :  { %v2930_v56 = vpop.xlane.xlu1 %2929 }
0x20f2   :  { %v2949_v1 = vadd.f32 %v2930_v56, %v2927_v22 }
0x20f4   :  { %v2950_v30 = vadd.f32 %v2949_v1, %v2933_v35 }
0x20f5   :  { %v2936_v49 = vpop.xlane.xlu1 %2935 }
0x20f6   :  { %v2951_v9 = vadd.f32 %v2950_v30, %v2936_v49 }
0x20f8   :  { %v2952_v23 = vadd.f32 %v2951_v9, %v2939_v20 }
0x20f9   :  { %v2942_v24 = vpop.xlane.xlu1 %2941 }
0x20fa   :  { %v2953_v4 = vadd.f32 %v2952_v23, %v2942_v24 }
0x20fc   :  { %v2954_v7 = vadd.f32 %v2953_v4, %v2945_v19 }
0x20fd   :  { %v2948_v52 = vpop.xlane.xlu1 %2947 }
0x20fe   :  { %v2955_v8 = vadd.f32 %v2954_v7, %v2948_v52 }
0x2100   :  { %v2956_v38 = vrot.slane %v2955_v8, 4 }
0x2101   :  { %v2975_v17 = vpop.permute.xlu1 %2974 }
0x2102   :  { %v2957_v48 = vadd.f32 %v2956_v38, %v2955_v8  ;;  %v3012_v55 = vmul.f32 %v2975_v17, %v4949_v45 }
0x2104   :  { %v2958_v51 = vrot.slane %v2957_v48, 2  ;;  %v3020_v58 = vmul.f32 %v5092_v50, %v3012_v55 }
0x2105   :  { %v2985_v18 = vpop.permute.xlu1 %2984 }
0x2106   :  { %v2959_v10 = vadd.f32 %v2958_v51, %v2957_v48  ;;  %v3014_v43 = vmul.f32 %v2985_v18, %v4956_v53  ;;  %v3028_v0 = vsel %vm2254_vm3, %v3020_v58, 0.0 }
0x2107   :  { %3029 = vadd.xlane.f32.xlu0 %v3028_v0 }
0x2108   :  { %v2960_v63 = vrot.slane %v2959_v10, 1  ;;  %v3022_v45 = vmul.f32 %v5092_v50, %v3014_v43 }
0x2109   :  { %v2990_v41 = vpop.permute.xlu1 %2989 }
0x210a   :  { %v2961_v39 = vadd.f32 %v2960_v63, %v2959_v10  ;;  %v3015_v21 = vmul.f32 %v2990_v41, %v5012_v62  ;;  %v3034_v33 = vsel %vm2254_vm3, %v3022_v45, 0.0 }
0x210b   :  { %3035 = vadd.xlane.f32.xlu0 %v3034_v33 }
0x210c   :  { %v5100_v15 = vadd.f32 %v2971_v26, %v2961_v39  ;;  %v3023_v42 = vmul.f32 %v5092_v50, %v3015_v21 }
0x210d   :  { %v3000_v60 = vpop.permute.xlu1 %2999 }
0x210e   :  { %v3017_v59 = vmul.f32 %v3000_v60, %v5020_v31  ;;  %v3037_v27 = vsel %vm2254_vm3, %v3023_v42, 0.0 }
0x210f   :  { %3038 = vadd.xlane.f32.xlu0 %v3037_v27 }
0x2110   :  { %v3025_v16 = vmul.f32 %v5092_v50, %v3017_v59 }
0x2112   :  { %v3043_v37 = vsel %vm2254_vm3, %v3025_v16, 0.0 }
0x2113   :  { %3044 = vadd.xlane.f32.xlu0 %v3043_v37 }
0x2197   :  { %v2874_v5 = vpop.f32.mrb[36].mxu0 }
0x2198   :  { %4085 = vlog2.f32 %v2874_v5  ;;  %v3725_v2 = vpop.f32.mrb[37].mxu0 }
0x219b   :  { %v3155_v19 = vpop.f32.mrb[38].mxu0 }
0x219c   :  { %v3732_v56 = vpop.f32.mrb[39].mxu0  ;;  %v3189_v55 = vmul.f32 %v3155_v19, %v5005_v57 }
0x219e   :  { %v3196_v51 = vsel %vm2254_vm3, %v3189_v55, 0.0 }
0x219f   :  { %v3160_v1 = vpop.f32.mrb[40].mxu0 }
0x21a0   :  { %v3735_v11 = vpop.f32.mrb[41].mxu0  ;;  %v3190_v33 = vmul.f32 %v3160_v1, %v4956_v53 }
0x21a2   :  { %v4086_v25 = vpop.eup %4085  ;;  %v3199_v59 = vsel %vm2254_vm3, %v3190_v33, 0.0 }
0x21a3   :  { %v2879_v44 = vmul.f32 0.6931472, %v4086_v25  ;;  %v3165_v46 = vpop.f32.mrb[42].mxu0 }
0x21a4   :  { %v3738_v30 = vpop.f32.mrb[43].mxu0  ;;  %v3191_v58 = vmul.f32 %v3165_v46, %v5012_v62 }
0x21a5   :  { %v2880_v34 = vadd.f32 %v2879_v44, %v5041_v36 }
0x21a6   :  { %v3202_v18 = vsel %vm2254_vm3, %v3191_v58, 0.0 }
0x21a7   :  { %v2881_v32 = vadd.f32 %v2880_v34, %v5025_v61  ;;  %v3170_v36 = vpop.f32.mrb[44].mxu0 }
0x21a8   :  { %v3741_v49 = vpop.f32.mrb[45].mxu0  ;;  %v3192_v60 = vmul.f32 %v3170_v36, %v4964_v14 }
0x21a9   :  { %v2888_v22 = vsel %vm2887_vm1, %v2881_v32, %v5050_v12  ;;  %v2980_v12 = vpop.permute.xlu0 %2979 }
0x21aa   :  { %v2895_v35 = vadd.f32 %v5092_v50, %v2888_v22  ;;  %v3013_v6 = vmul.f32 %v2980_v12, %v5005_v57 }
0x21ab   :  { %v3175_v61 = vpop.f32.mrb[46].mxu0 }
0x21ac   :  { %v2896_v20 = vsel %vm2254_vm3, %v2895_v35, -inf  ;;  %v3744_v9 = vpop.f32.mrb[47].mxu0  ;;  %v3021_v7 = vmul.f32 %v5092_v50, %v3013_v6  ;;  %v3193_v10 = vmul.f32 %v3175_v61, %v5020_v31 }
0x21ad   :  { %2897 = vmax.xlane.f32.xlu1 %v2896_v20  ;;  %v2995_v4 = vpop.permute.xlu0 %2994 }
0x21ae   :  { %v3031_v38 = vsel %vm2254_vm3, %v3021_v7, 0.0  ;;  %v3208_v43 = vsel %vm2254_vm3, %v3193_v10, 0.0 }
0x21af   :  { %v3180_v13 = vpop.f32.mrb[48].mxu0 }
0x21b0   :  { %v3747_v40 = vpop.f32.mrb[49].mxu0  ;;  %v3194_v27 = vmul.f32 %v3180_v13, %v4981_v28 }
0x21b1   :  { %v3005_v52 = vpop.permute.xlu0 %3004 }
0x21b2   :  { %v3018_v54 = vmul.f32 %v3005_v52, %v4981_v28 }
0x21b3   :  { %v3185_v23 = vpop.f32.mrb[50].mxu0 }
0x21b4   :  { %v3750_v24 = vpop.f32.mrb[51].mxu0  ;;  %v3026_v17 = vmul.f32 %v5092_v50, %v3018_v54  ;;  %v3195_v0 = vmul.f32 %v3185_v23, %v5031_v3 }
0x21b5   :  { %v3030_v16 = vpop.xlane.xlu0 %3029 }
0x21b6   :  { %v3046_v47 = vsel %vm2254_vm3, %v3026_v17, 0.0  ;;  %v3214_v57 = vsel %vm2254_vm3, %v3195_v0, 0.0 }
0x21b9   :  { %v3036_v53 = vpop.xlane.xlu0 %3035 }
0x21bd   :  { %v3039_v25 = vpop.xlane.xlu0 %3038 }
0x21be   :  { %3009 = vperm.xlu1 %3926, %v4941_v29   ;;  %v3016_v29 = vmul.f32 %v2995_v4, %v4964_v14 }
0x21c0   :  { %v3024_v8 = vmul.f32 %v5092_v50, %v3016_v29  ;;  %v45_v29 = vld [vmem:[%s5168_s11] sm:$0xff]  ;;  %s4122_s11 = smov [#allocation2]  }
0x21c1   :  { %v3045_v32 = vpop.xlane.xlu0 %3044  ;;  %s3241_s22 = sshll.u32 %s4122_s11, 4  ;;  %s3242_s22 = int_to_ptr.vmem [resolvable:$true] %s3241_s22 }
0x21c2   :  { %v3040_v48 = vsel %vm2254_vm3, %v3024_v8, 0.0  ;;  %s4091_s23 = scalar_lea.vmem %s3242_s22, 16  ;;  %s4095_s24 = scalar_lea.vmem %s3242_s22, 32 }
0x21c3   :  { %p4092_p0 = scmp.ne.s32.totalorder %s3242_s22, %s4091_s23  ;;  %p4096_p1 = scmp.lt.s32.totalorder %s3242_s22, %s3242_s22 }
0x21c4   :  { %p4097_p2 = scmp.lt.s32.totalorder %s4095_s24, %s4091_s23 }
0x21c6   :  { %p4098_p3 = por %p4097_p2, %p4096_p1 }
0x21c8   :  { %p4099_p4 = pnand %p4098_p3, %p4092_p0 }
0x21e2   :  { %3032 = vadd.xlane.f32.xlu1 %v3031_v38 }
0x21e6   :  { %3041 = vadd.xlane.f32.xlu1 %v3040_v48 }
0x21ea   :  { %3047 = vadd.xlane.f32.xlu1 %v3046_v47 }
0x21ee   :  { %3197 = vadd.xlane.f32.xlu1 %v3196_v51 }
0x21f2   :  { %3203 = vadd.xlane.f32.xlu1 %v3202_v18 }
0x21f6   :  { %3209 = vadd.xlane.f32.xlu1 %v3208_v43 }
0x21fa   :  { %3215 = vadd.xlane.f32.xlu1 %v3214_v57 }
0x223a   :  { %v2898_v26 = vpop.xlane.xlu1 %2897 }
0x223b   :  { %v2899_v63 = vsub.f32 %v2895_v35, %v2898_v26 }
0x223d   :  { %v2900_v45 = vmul.f32 1.442695, %v2899_v63 }
0x223e   :  { %v3010_v41 = vpop.permute.xlu1 %3009 }
0x223f   :  { %4087 = vpow2.f32 %v2900_v45  ;;  %v3019_v62 = vmul.f32 %v3010_v41, %v5031_v3  ;;  %v3205_v3 = vsel %vm2254_vm3, %v3192_v60, 0.0 }
0x2241   :  { %v3027_v39 = vmul.f32 %v5092_v50, %v3019_v62  ;;  %v3211_v50 = vsel %vm2254_vm3, %v3194_v27, 0.0 }
0x2243   :  { %v3049_v31 = vsel %vm2254_vm3, %v3027_v39, 0.0 }
0x2244   :  { %3050 = vadd.xlane.f32.xlu0 %v3049_v31 }
0x2249   :  { %v4088_v21 = vpop.eup %4087 }
0x224a   :  { %v2902_v42 = vsel %vm2254_vm3, %v4088_v21, 0.0  ;;  %vm2909_vm3 = vcmask 7168  }
0x224b   :  { %2903 = vadd.xlane.f32.xlu0 %v2902_v42 }
0x224f   :  { %3200 = vadd.xlane.f32.xlu0 %v3199_v59 }
0x2253   :  { %3206 = vadd.xlane.f32.xlu0 %v3205_v3 }
0x2257   :  { %3212 = vadd.xlane.f32.xlu0 %v3211_v50 }
0x226f   :  { %v3033_v37 = vpop.xlane.xlu1 %3032 }
0x2270   :  { %v3052_v5 = vadd.f32 %v3033_v37, %v3030_v16 }
0x2272   :  { %v3053_v2 = vadd.f32 %v3052_v5, %v3036_v53 }
0x2273   :  { %v3042_v34 = vpop.xlane.xlu1 %3041 }
0x2274   :  { %v3054_v44 = vadd.f32 %v3053_v2, %v3039_v25 }
0x2276   :  { %v3055_v14 = vadd.f32 %v3054_v44, %v3042_v34 }
0x2277   :  { %v3048_v35 = vpop.xlane.xlu1 %3047 }
0x2278   :  { %v3056_v22 = vadd.f32 %v3055_v14, %v3045_v32 }
0x227a   :  { %v3057_v28 = vadd.f32 %v3056_v22, %v3048_v35 }
0x227b   :  { %v3198_v56 = vpop.xlane.xlu1 %3197 }
0x227f   :  { %v3204_v46 = vpop.xlane.xlu1 %3203 }
0x2283   :  { %v3210_v9 = vpop.xlane.xlu1 %3209 }
0x2287   :  { %v3216_v7 = vpop.xlane.xlu1 %3215 }
0x22d1   :  { %v3051_v20 = vpop.xlane.xlu0 %3050 }
0x22d2   :  { %v3058_v19 = vadd.f32 %v3057_v28, %v3051_v20 }
0x22d4   :  { %v3059_v11 = vrot.slane %v3058_v19, 4 }
0x22d6   :  { %v3060_v49 = vadd.f32 %v3059_v11, %v3058_v19 }
0x22d8   :  { %v2904_v1 = vpop.xlane.xlu0 %2903  ;;  %v3061_v23 = vrot.slane %v3060_v49, 2 }
0x22d9   :  { %4089 = vlog2.f32 %v2904_v1 }
0x22da   :  { %v3062_v54 = vadd.f32 %v3061_v23, %v3060_v49 }
0x22dc   :  { %v3201_v30 = vpop.xlane.xlu0 %3200  ;;  %v3063_v47 = vrot.slane %v3062_v54, 1 }
0x22dd   :  { %v3217_v36 = vadd.f32 %v3201_v30, %v3198_v56 }
0x22de   :  { %v3064_v43 = vadd.f32 %v3063_v47, %v3062_v54 }
0x22df   :  { %v3218_v61 = vadd.f32 %v3217_v36, %v3204_v46 }
0x22e0   :  { %v3207_v13 = vpop.xlane.xlu0 %3206 }
0x22e1   :  { %v3219_v40 = vadd.f32 %v3218_v61, %v3207_v13 }
0x22e3   :  { %v4090_v12 = vpop.eup %4089  ;;  %v3220_v24 = vadd.f32 %v3219_v40, %v3210_v9 }
0x22e4   :  { %v2906_v4 = vmul.f32 0.6931472, %v4090_v12  ;;  %v3213_v6 = vpop.xlane.xlu0 %3212 }
0x22e5   :  { %v3221_v52 = vadd.f32 %v3220_v24, %v3213_v6 }
0x22e6   :  { %v2907_v8 = vadd.f32 %v2906_v4, %v2898_v26  ;;  %v3230_v26 = vadd.f32 %v5100_v15, %v3064_v43 }
0x22e7   :  { %v3222_v38 = vadd.f32 %v3221_v52, %v3216_v7 }
0x22e8   :  { %v2908_v17 = vmul.f32 %v2907_v8, %v45_v29 }
0x22e9   :  { %v3223_v48 = vrot.slane %v3222_v38, 4 }
0x22ea   :  { %v2910_v55 = vsel %vm2909_vm3, %v2908_v17, 0.0 }
0x22eb   :  { %v2911_v51 = vrot.slane %v2910_v55, 4  ;;  %v3224_v58 = vadd.f32 %v3223_v48, %v3222_v38 }
0x22ed   :  { %v3225_v18 = vrot.slane %v3224_v58, 2  ;;  %v2912_v10 = vadd.f32 %v2911_v51, %v2910_v55 }
0x22ef   :  { %v3226_v0 = vadd.f32 %v3225_v18, %v3224_v58  ;;  %v2913_v57 = vrot.slane %v2912_v10, 2 }
0x22f1   :  { %v3227_v63 = vrot.slane %v3226_v0, 1  ;;  %v2914_v45 = vadd.f32 %v2913_v57, %v2912_v10 }
0x22f3   :  { %v3228_v41 = vadd.f32 %v3227_v63, %v3226_v0  ;;  %v2915_v62 = vrot.slane %v2914_v45, 1 }
0x22f5   :  { %v2916_v39 = vadd.f32 %v2915_v62, %v2914_v45  ;;  %v3231_v31 = vadd.f32 %v3230_v26, %v3228_v41 }
0x22f7   :  { %v3232_v21 = vsub.f32 %v2916_v39, %v3231_v31 }
0x22f9   :  { %3234 = vst.msk [vmem:[#allocation2] sm:$0x1] %vm3233_vm6, %v3232_v21 }
0x22fa   :  { %4102 = shalt.err (!%p4099_p4)
}
0x22fb   :  { %s4103_s26 = scalar_lea.hbm %s5170_s13, 16 }
0x22fc   :  { %p4104_p5 = scmp.ne.s32.totalorder %s5170_s13, %s4103_s26  ;;  %p4107_p6 = scmp.lt.u32.totalorder %s4103_s26, %s5170_s13 }
0x22fe   :  { %p4109_p7 = pnand %p4107_p6, %p4104_p5 }
0x2300   :  { %4112 = shalt.err (!%p4109_p7)
}
0x2301   :  { %3244 = dma.vmem_to_hbm [thread:$0]  %s3242_s22, 16, %s5170_s13, [#allocation3]  }
0x2302   :  { %4113 = dma.done.wait [#allocation3], 16  }
0x2303   :  { %4114 = vsyncadd [#allocation3], 4294967280 }
0x2304   :  { %3248 = vsyncpa [#allocation3], 1 }

</bundles_post_ra>
